<compile_context>
chip_gen: v6e
topology: v6e:2x2x1
jax: 0.10.0
libtpu: 0.0.40
codegen_flags: <defaults>
</compile_context>

<pallas_src>
import functools

import jax
import jax.numpy as jnp
from jax.experimental import pallas as pl
from jax.experimental.pallas import tpu as pltpu


# ---------------------------------------------------------------------------
# Fused DecoderBlock kernel (single invocation, everything resident in VMEM)
# ---------------------------------------------------------------------------
def _decoder_block_kernel(xw_ref, wup_ref, bup_ref,
                          w1_ref, g1_ref, be1_ref,
                          w2_ref, g2_ref, be2_ref,
                          mask_ref,
                          o_ref, pad_ref, patch_ref,
                          *, n_batch, h_in, w_in, hp, wp, guard, eps):
    # xw_ref   : (2*Cin, N*H*2W) f32   column-parity-interleaved low-res input
    # wup_ref  : (2*Cout, 2*Cin) f32   ConvTranspose weight, rows (di,co), cols (dj,ci)
    # bup_ref  : (2*Cout, 1)     f32
    # w1/w2    : (Cout, 9*Cout)  cdt   transposed im2col conv weights, cols ordered (ky,kx,ci)
    # g*/be*   : (Cout, 1)       f32   BatchNorm gamma / beta
    # mask_ref : (Cout, L)       f32   1.0 at valid interior flat lanes, 0.0 at pad lanes
    # o_ref    : (Cout, L)       f32   output in the flat padded layout (pad lanes are 0)
    # pad_ref  : (Cout, L+2*guard) cdt padded + guarded activation staging buffer
    # patch_ref: (9*Cout, L)     cdt   im2col patch^T
    Cout, L = o_ref.shape
    cdt = pad_ref.dtype
    w2_full = 2 * w_in
    inv_count = 1.0 / float(n_batch * (hp - 2) * (wp - 2))

    # One zero-fill of the staging buffer.  It initialises the guard lanes and the 1-pixel
    # pad ring, which nothing below ever writes (the upconv stores only the valid 16-lane
    # row spans, and every later [guard:guard+L] write keeps the pad lanes at exactly zero),
    # so this is NOT followed by a redundant full-interior overwrite.
    pad_ref[...] = jnp.zeros_like(pad_ref)

    # ---- ConvTranspose2d(k=2, s=2): one low-res matmul + direct interior row stores ----
    uw = jax.lax.dot_general(wup_ref[...], xw_ref[...],
                             dimension_numbers=(((1,), (0,)), ((), ())),
                             preferred_element_type=jnp.float32)      # (2*Cout, N*H*2W)
    uw = (uw + bup_ref[...]).astype(cdt)                              # single cast to cdt
    for di in range(2):                                               # row-parity interleave
        for n in range(n_batch):
            for i in range(h_in):
                src = uw[di * Cout:(di + 1) * Cout,
                         (n * h_in + i) * w2_full:(n * h_in + i + 1) * w2_full]
                dst = guard + (n * hp + 1 + 2 * i + di) * wp + 1
                pad_ref[:, dst:dst + w2_full] = src                   # contiguous 16-lane row

    mask = mask_ref[...]                                              # (Cout, L)

    # ---- Conv3x3(pad=1) + BatchNorm(train stats) + ReLU, transposed formulation ----
    def conv_bn_relu(w_ref, g_ref, be_ref):
        # im2col patch^T: 9 static lane-offset slices of pad_ref; each tap is an aligned
        # 16-sublane block spanning all L lanes.
        for ky in range(3):
            for kx in range(3):
                t = ky * 3 + kx
                off = guard + (ky - 1) * wp + (kx - 1)
                patch_ref[t * Cout:(t + 1) * Cout, :] = pad_ref[:, off:off + L]
        # ONE transposed MXU matmul: (Cout, 9*Cout) x (9*Cout, L) -> lane-dense (Cout, L).
        acc = jax.lax.dot_general(w_ref[...], patch_ref[...],
                                  dimension_numbers=(((1,), (0,)), ((), ())),
                                  preferred_element_type=jnp.float32)
        accm = acc * mask                                             # zero pad/garbage lanes
        # One-pass training-mode BN statistics (f32 accumulator; var = E[x^2] - mean^2).
        s1 = jnp.sum(accm, axis=1, keepdims=True)                     # (Cout, 1)
        s2 = jnp.sum(accm * accm, axis=1, keepdims=True)
        mean = s1 * inv_count
        var = s2 * inv_count - mean * mean
        scale = g_ref[...] * jax.lax.rsqrt(var + eps)                 # (Cout, 1)
        shift = be_ref[...] - mean * scale
        # Conv bias folded out (exact under batch-stats mean subtraction).
        return jnp.maximum(accm * scale + shift, 0.0) * mask          # ReLU; pad lanes -> 0

    y1 = conv_bn_relu(w1_ref, g1_ref, be1_ref)
    pad_ref[:, guard:guard + L] = y1.astype(cdt)   # single cast; pad ring stays exactly zero
    y2 = conv_bn_relu(w2_ref, g2_ref, be2_ref)
    o_ref[...] = y2                                                   # lane-dense f32 store


# ---------------------------------------------------------------------------
# Wrapper
# ---------------------------------------------------------------------------
def decoder_block(x, p, *, mxu_dtype=jnp.bfloat16, eps=1e-5):
    """x: (N,H,W,Cin) f32 -> (N,2H,2W,Cout) f32, one fused Pallas kernel."""
    N, H, W, Cin = x.shape
    Cout = p["w_up"].shape[1]
    H2, W2 = 2 * H, 2 * W
    Hp, Wp = H2 + 2, W2 + 2
    L = N * Hp * Wp          # flat padded spatial length (lanes)
    G = Wp + 1               # guard lanes on each side (>= max |3x3 tap offset|)

    # ---- one-time parameter / layout prep (tiny; all real compute is in the kernel) ----
    wupw = jnp.transpose(p["w_up"], (2, 1, 3, 0)).reshape(2 * Cout, 2 * Cin).astype(jnp.float32)
    bup2 = jnp.concatenate([p["b_up"], p["b_up"]]).reshape(2 * Cout, 1).astype(jnp.float32)
    w1t = p["w1"].reshape(9 * Cout, Cout).T.astype(mxu_dtype)   # (Cout, 9*Cout), cols (ky,kx,ci)
    w2t = p["w2"].reshape(9 * Cout, Cout).T.astype(mxu_dtype)
    g1 = p["g1"].reshape(Cout, 1).astype(jnp.float32)
    be1 = p["be1"].reshape(Cout, 1).astype(jnp.float32)
    g2 = p["g2"].reshape(Cout, 1).astype(jnp.float32)
    be2 = p["be2"].reshape(Cout, 1).astype(jnp.float32)
    # NOTE: conv biases b1/b2 are intentionally not passed — they cancel exactly under
    # training-mode BatchNorm (batch-mean subtraction).  Do not reuse with eval-mode stats.

    # Column-parity-interleaved low-res input (2*Cin, N*H*W2): block dj holds x at output
    # columns of parity dj and zeros elsewhere, so ONE matmul produces the W-interleaved rows.
    xw4 = jnp.zeros((N, H, W2, 2 * Cin), jnp.float32)
    for dj in range(2):
        xw4 = xw4.at[:, :, dj::2, dj * Cin:(dj + 1) * Cin].set(x.astype(jnp.float32))
    xw = xw4.reshape(N * H * W2, 2 * Cin).T

    # Valid-lane mask over the flat padded layout (1.0 at interior pixels, 0.0 at pad lanes).
    q = jnp.arange(L, dtype=jnp.int32)
    jj = q % Wp
    ii = (q // Wp) % Hp
    valid = ((ii >= 1) & (ii <= H2) & (jj >= 1) & (jj <= W2)).astype(jnp.float32)
    mask = jnp.broadcast_to(valid[None, :], (Cout, L))

    vmem = pl.BlockSpec(memory_space=pltpu.MemorySpace.VMEM)
    out2d = pl.pallas_call(
        functools.partial(_decoder_block_kernel, n_batch=N, h_in=H, w_in=W,
                          hp=Hp, wp=Wp, guard=G, eps=eps),
        out_shape=jax.ShapeDtypeStruct((Cout, L), jnp.float32),
        in_specs=[vmem] * 10,
        out_specs=vmem,
        scratch_shapes=[
            pltpu.VMEM((Cout, L + 2 * G), mxu_dtype),    # padded+guarded activation (cdt)
            pltpu.VMEM((9 * Cout, L), mxu_dtype),        # im2col patch^T (cdt)
        ],
    )(xw, wupw, bup2, w1t, g1, be1, w2t, g2, be2, mask)

    # Pure layout post-processing (~40 KB): crop the pad lanes and return NHWC.
    out = out2d.reshape(Cout, N, Hp, Wp)[:, :, 1:1 + H2, 1:1 + W2]
    return jnp.transpose(out, (1, 2, 3, 0))


# ---------------------------------------------------------------------------
# Pure-JAX reference (faithful to the PyTorch module, NHWC) for validation.
# ---------------------------------------------------------------------------
def decoder_block_ref(x, p, eps=1e-5):
    N, H, W, _ = x.shape
    Cout = p["w_up"].shape[1]
    r = jnp.einsum("nhwc,cokl->nhwokl", x, p["w_up"])
    r = r.transpose(0, 1, 4, 2, 5, 3).reshape(N, 2 * H, 2 * W, Cout) + p["b_up"]

    def cbr(z, w, b, g, be):
        Hh, Ww = z.shape[1], z.shape[2]
        zp = jnp.pad(z, ((0, 0), (1, 1), (1, 1), (0, 0)))
        acc = sum(
            jnp.einsum("nhwc,cd->nhwd", zp[:, dy:dy + Hh, dx:dx + Ww, :], w[dy, dx])
            for dy in range(3) for dx in range(3)
        ) + b
        m = acc.mean(axis=(0, 1, 2), keepdims=True)
        v = ((acc - m) ** 2).mean(axis=(0, 1, 2), keepdims=True)
        return jnp.maximum((acc - m) * jax.lax.rsqrt(v + eps) * g + be, 0.0)

    r = cbr(r, p["w1"], p["b1"], p["g1"], p["be1"])
    r = cbr(r, p["w2"], p["b2"], p["g2"], p["be2"])
    return r


if __name__ == "__main__":
    # DecoderBlock(in_channels=8, out_channels=16); input N=2, H=W=8 (NHWC).
    Cin, Cout = 8, 16
    N, H, W = 2, 8, 8

    key = jax.random.PRNGKey(0)
    ks = jax.random.split(key, 8)
    params = {
        "w_up": jax.random.normal(ks[0], (Cin, Cout, 2, 2), jnp.float32) * 0.1,
        "b_up": jax.random.normal(ks[1], (Cout,), jnp.float32) * 0.1,
        "w1":   jax.random.normal(ks[2], (3, 3, Cout, Cout), jnp.float32) * 0.1,
        "b1":   jax.random.normal(ks[3], (Cout,), jnp.float32) * 0.1,
        "g1":   jnp.ones((Cout,), jnp.float32),   # BN weight init (ones)
        "be1":  jnp.zeros((Cout,), jnp.float32),  # BN bias init (zeros)
        "w2":   jax.random.normal(ks[4], (3, 3, Cout, Cout), jnp.float32) * 0.1,
        "b2":   jax.random.normal(ks[5], (Cout,), jnp.float32) * 0.1,
        "g2":   jnp.ones((Cout,), jnp.float32),
        "be2":  jnp.zeros((Cout,), jnp.float32),
    }
    x = jax.random.normal(ks[6], (N, H, W, Cin), jnp.float32)

    ref = jax.block_until_ready(decoder_block_ref(x, params))
    # f32 operand path: checks the fused structure.  Tolerance allows for the TPU MXU's
    # default operand rounding inside the matmuls (in both the kernel and the XLA reference).
    out_f32 = jax.block_until_ready(decoder_block(x, params, mxu_dtype=jnp.float32))
    # bf16 operand/scratch path (v6e/v7x-native perf path): looser tolerance for bf16
    # activations propagated through two chained conv+BN stages (accumulation stays f32).
    out_bf16 = jax.block_until_ready(decoder_block(x, params, mxu_dtype=jnp.bfloat16))

    assert out_bf16.shape == (N, 2 * H, 2 * W, Cout), out_bf16.shape
    assert jnp.allclose(out_f32, ref, rtol=3e-2, atol=3e-2), "f32 path mismatch vs reference"
    assert jnp.allclose(out_bf16, ref, rtol=2e-1, atol=1e-1), "bf16 path mismatch vs reference"
    print("KERNEL_OK")
</pallas_src>

<mosaic_0001>
module attributes {stable_mosaic.version = 11 : i64} {
  func.func @_decoder_block_kernel(%arg0: memref<16x256xf32, #tpu.memory_space<vmem>>, %arg1: memref<32x16xf32, #tpu.memory_space<vmem>>, %arg2: memref<32x1xf32, #tpu.memory_space<vmem>>, %arg3: memref<16x144xf32, #tpu.memory_space<vmem>>, %arg4: memref<16x1xf32, #tpu.memory_space<vmem>>, %arg5: memref<16x1xf32, #tpu.memory_space<vmem>>, %arg6: memref<16x144xf32, #tpu.memory_space<vmem>>, %arg7: memref<16x1xf32, #tpu.memory_space<vmem>>, %arg8: memref<16x1xf32, #tpu.memory_space<vmem>>, %arg9: memref<16x648xf32, #tpu.memory_space<vmem>>, %arg10: memref<16x648xf32, #tpu.memory_space<vmem>>, %arg11: memref<16x686xf32, #tpu.memory_space<vmem>>, %arg12: memref<144x648xf32, #tpu.memory_space<vmem>>) attributes {dimension_semantics = [], scalar_prefetch = 0 : i64, scratch_operands = 2 : i64, tpu.core_type = #tpu.core_type<tc>} {
    %cst = arith.constant 0.000000e+00 : f32
    %0 = vector.broadcast %cst : f32 to vector<16x686xf32>
    %c0 = arith.constant 0 : index
    %c0_0 = arith.constant 0 : index
    %1 = vector.load %arg11[%c0, %c0_0] : memref<16x686xf32, #tpu.memory_space<vmem>>, vector<16x686xf32>
    tpu.vector_store %arg11[%c0, %c0_0], %0 {strides = array<i32>} : memref<16x686xf32, #tpu.memory_space<vmem>>, vector<16x686xf32>,
    %c0_1 = arith.constant 0 : index
    %c0_2 = arith.constant 0 : index
    %2 = vector.load %arg1[%c0_1, %c0_2] : memref<32x16xf32, #tpu.memory_space<vmem>>, vector<32x16xf32>
    %c0_3 = arith.constant 0 : index
    %c0_4 = arith.constant 0 : index
    %3 = vector.load %arg0[%c0_3, %c0_4] : memref<16x256xf32, #tpu.memory_space<vmem>>, vector<16x256xf32>
    %cst_5 = arith.constant dense<0.000000e+00> : vector<32x256xf32>
    %4 = tpu.matmul %2, %3, %cst_5 {dimension_numbers = #tpu.dot_dimension_numbers<[1], [0], [0], [1], [0, 0, 1, 1], [], []>} : vector<32x16xf32>, vector<16x256xf32>, vector<32x256xf32> -> vector<32x256xf32>
    %c0_6 = arith.constant 0 : index
    %c0_7 = arith.constant 0 : index
    %5 = vector.load %arg2[%c0_6, %c0_7] : memref<32x1xf32, #tpu.memory_space<vmem>>, vector<32x1xf32>
    %6 = vector.broadcast %5 : vector<32x1xf32> to vector<32x256xf32>
    %7 = arith.addf %4, %6 : vector<32x256xf32>
    %8 = vector.extract_strided_slice %7 {offsets = [0, 0], sizes = [16, 16], strides = [1, 1]} : vector<32x256xf32> to vector<16x16xf32>
    %c0_8 = arith.constant 0 : index
    %c38 = arith.constant 38 : index
    %9 = vector.load %arg11[%c0_8, %c38] : memref<16x686xf32, #tpu.memory_space<vmem>>, vector<16x16xf32>
    tpu.vector_store %arg11[%c0_8, %c38], %8 {strides = array<i32>} : memref<16x686xf32, #tpu.memory_space<vmem>>, vector<16x16xf32>,
    %10 = vector.extract_strided_slice %7 {offsets = [0, 16], sizes = [16, 16], strides = [1, 1]} : vector<32x256xf32> to vector<16x16xf32>
    %c0_9 = arith.constant 0 : index
    %c74 = arith.constant 74 : index
    %11 = vector.load %arg11[%c0_9, %c74] : memref<16x686xf32, #tpu.memory_space<vmem>>, vector<16x16xf32>
    tpu.vector_store %arg11[%c0_9, %c74], %10 {strides = array<i32>} : memref<16x686xf32, #tpu.memory_space<vmem>>, vector<16x16xf32>,
    %12 = vector.extract_strided_slice %7 {offsets = [0, 32], sizes = [16, 16], strides = [1, 1]} : vector<32x256xf32> to vector<16x16xf32>
    %c0_10 = arith.constant 0 : index
    %c110 = arith.constant 110 : index
    %13 = vector.load %arg11[%c0_10, %c110] : memref<16x686xf32, #tpu.memory_space<vmem>>, vector<16x16xf32>
    tpu.vector_store %arg11[%c0_10, %c110], %12 {strides = array<i32>} : memref<16x686xf32, #tpu.memory_space<vmem>>, vector<16x16xf32>,
    %14 = vector.extract_strided_slice %7 {offsets = [0, 48], sizes = [16, 16], strides = [1, 1]} : vector<32x256xf32> to vector<16x16xf32>
    %c0_11 = arith.constant 0 : index
    %c146 = arith.constant 146 : index
    %15 = vector.load %arg11[%c0_11, %c146] : memref<16x686xf32, #tpu.memory_space<vmem>>, vector<16x16xf32>
    tpu.vector_store %arg11[%c0_11, %c146], %14 {strides = array<i32>} : memref<16x686xf32, #tpu.memory_space<vmem>>, vector<16x16xf32>,
    %16 = vector.extract_strided_slice %7 {offsets = [0, 64], sizes = [16, 16], strides = [1, 1]} : vector<32x256xf32> to vector<16x16xf32>
    %c0_12 = arith.constant 0 : index
    %c182 = arith.constant 182 : index
    %17 = vector.load %arg11[%c0_12, %c182] : memref<16x686xf32, #tpu.memory_space<vmem>>, vector<16x16xf32>
    tpu.vector_store %arg11[%c0_12, %c182], %16 {strides = array<i32>} : memref<16x686xf32, #tpu.memory_space<vmem>>, vector<16x16xf32>,
    %18 = vector.extract_strided_slice %7 {offsets = [0, 80], sizes = [16, 16], strides = [1, 1]} : vector<32x256xf32> to vector<16x16xf32>
    %c0_13 = arith.constant 0 : index
    %c218 = arith.constant 218 : index
    %19 = vector.load %arg11[%c0_13, %c218] : memref<16x686xf32, #tpu.memory_space<vmem>>, vector<16x16xf32>
    tpu.vector_store %arg11[%c0_13, %c218], %18 {strides = array<i32>} : memref<16x686xf32, #tpu.memory_space<vmem>>, vector<16x16xf32>,
    %20 = vector.extract_strided_slice %7 {offsets = [0, 96], sizes = [16, 16], strides = [1, 1]} : vector<32x256xf32> to vector<16x16xf32>
    %c0_14 = arith.constant 0 : index
    %c254 = arith.constant 254 : index
    %21 = vector.load %arg11[%c0_14, %c254] : memref<16x686xf32, #tpu.memory_space<vmem>>, vector<16x16xf32>
    tpu.vector_store %arg11[%c0_14, %c254], %20 {strides = array<i32>} : memref<16x686xf32, #tpu.memory_space<vmem>>, vector<16x16xf32>,
    %22 = vector.extract_strided_slice %7 {offsets = [0, 112], sizes = [16, 16], strides = [1, 1]} : vector<32x256xf32> to vector<16x16xf32>
    %c0_15 = arith.constant 0 : index
    %c290 = arith.constant 290 : index
    %23 = vector.load %arg11[%c0_15, %c290] : memref<16x686xf32, #tpu.memory_space<vmem>>, vector<16x16xf32>
    tpu.vector_store %arg11[%c0_15, %c290], %22 {strides = array<i32>} : memref<16x686xf32, #tpu.memory_space<vmem>>, vector<16x16xf32>,
    %24 = vector.extract_strided_slice %7 {offsets = [0, 128], sizes = [16, 16], strides = [1, 1]} : vector<32x256xf32> to vector<16x16xf32>
    %c0_16 = arith.constant 0 : index
    %c362 = arith.constant 362 : index
    %25 = vector.load %arg11[%c0_16, %c362] : memref<16x686xf32, #tpu.memory_space<vmem>>, vector<16x16xf32>
    tpu.vector_store %arg11[%c0_16, %c362], %24 {strides = array<i32>} : memref<16x686xf32, #tpu.memory_space<vmem>>, vector<16x16xf32>,
    %26 = vector.extract_strided_slice %7 {offsets = [0, 144], sizes = [16, 16], strides = [1, 1]} : vector<32x256xf32> to vector<16x16xf32>
    %c0_17 = arith.constant 0 : index
    %c398 = arith.constant 398 : index
    %27 = vector.load %arg11[%c0_17, %c398] : memref<16x686xf32, #tpu.memory_space<vmem>>, vector<16x16xf32>
    tpu.vector_store %arg11[%c0_17, %c398], %26 {strides = array<i32>} : memref<16x686xf32, #tpu.memory_space<vmem>>, vector<16x16xf32>,
    %28 = vector.extract_strided_slice %7 {offsets = [0, 160], sizes = [16, 16], strides = [1, 1]} : vector<32x256xf32> to vector<16x16xf32>
    %c0_18 = arith.constant 0 : index
    %c434 = arith.constant 434 : index
    %29 = vector.load %arg11[%c0_18, %c434] : memref<16x686xf32, #tpu.memory_space<vmem>>, vector<16x16xf32>
    tpu.vector_store %arg11[%c0_18, %c434], %28 {strides = array<i32>} : memref<16x686xf32, #tpu.memory_space<vmem>>, vector<16x16xf32>,
    %30 = vector.extract_strided_slice %7 {offsets = [0, 176], sizes = [16, 16], strides = [1, 1]} : vector<32x256xf32> to vector<16x16xf32>
    %c0_19 = arith.constant 0 : index
    %c470 = arith.constant 470 : index
    %31 = vector.load %arg11[%c0_19, %c470] : memref<16x686xf32, #tpu.memory_space<vmem>>, vector<16x16xf32>
    tpu.vector_store %arg11[%c0_19, %c470], %30 {strides = array<i32>} : memref<16x686xf32, #tpu.memory_space<vmem>>, vector<16x16xf32>,
    %32 = vector.extract_strided_slice %7 {offsets = [0, 192], sizes = [16, 16], strides = [1, 1]} : vector<32x256xf32> to vector<16x16xf32>
    %c0_20 = arith.constant 0 : index
    %c506 = arith.constant 506 : index
    %33 = vector.load %arg11[%c0_20, %c506] : memref<16x686xf32, #tpu.memory_space<vmem>>, vector<16x16xf32>
    tpu.vector_store %arg11[%c0_20, %c506], %32 {strides = array<i32>} : memref<16x686xf32, #tpu.memory_space<vmem>>, vector<16x16xf32>,
    %34 = vector.extract_strided_slice %7 {offsets = [0, 208], sizes = [16, 16], strides = [1, 1]} : vector<32x256xf32> to vector<16x16xf32>
    %c0_21 = arith.constant 0 : index
    %c542 = arith.constant 542 : index
    %35 = vector.load %arg11[%c0_21, %c542] : memref<16x686xf32, #tpu.memory_space<vmem>>, vector<16x16xf32>
    tpu.vector_store %arg11[%c0_21, %c542], %34 {strides = array<i32>} : memref<16x686xf32, #tpu.memory_space<vmem>>, vector<16x16xf32>,
    %36 = vector.extract_strided_slice %7 {offsets = [0, 224], sizes = [16, 16], strides = [1, 1]} : vector<32x256xf32> to vector<16x16xf32>
    %c0_22 = arith.constant 0 : index
    %c578 = arith.constant 578 : index
    %37 = vector.load %arg11[%c0_22, %c578] : memref<16x686xf32, #tpu.memory_space<vmem>>, vector<16x16xf32>
    tpu.vector_store %arg11[%c0_22, %c578], %36 {strides = array<i32>} : memref<16x686xf32, #tpu.memory_space<vmem>>, vector<16x16xf32>,
    %38 = vector.extract_strided_slice %7 {offsets = [0, 240], sizes = [16, 16], strides = [1, 1]} : vector<32x256xf32> to vector<16x16xf32>
    %c0_23 = arith.constant 0 : index
    %c614 = arith.constant 614 : index
    %39 = vector.load %arg11[%c0_23, %c614] : memref<16x686xf32, #tpu.memory_space<vmem>>, vector<16x16xf32>
    tpu.vector_store %arg11[%c0_23, %c614], %38 {strides = array<i32>} : memref<16x686xf32, #tpu.memory_space<vmem>>, vector<16x16xf32>,
    %40 = vector.extract_strided_slice %7 {offsets = [16, 0], sizes = [16, 16], strides = [1, 1]} : vector<32x256xf32> to vector<16x16xf32>
    %c0_24 = arith.constant 0 : index
    %c56 = arith.constant 56 : index
    %41 = vector.load %arg11[%c0_24, %c56] : memref<16x686xf32, #tpu.memory_space<vmem>>, vector<16x16xf32>
    tpu.vector_store %arg11[%c0_24, %c56], %40 {strides = array<i32>} : memref<16x686xf32, #tpu.memory_space<vmem>>, vector<16x16xf32>,
    %42 = vector.extract_strided_slice %7 {offsets = [16, 16], sizes = [16, 16], strides = [1, 1]} : vector<32x256xf32> to vector<16x16xf32>
    %c0_25 = arith.constant 0 : index
    %c92 = arith.constant 92 : index
    %43 = vector.load %arg11[%c0_25, %c92] : memref<16x686xf32, #tpu.memory_space<vmem>>, vector<16x16xf32>
    tpu.vector_store %arg11[%c0_25, %c92], %42 {strides = array<i32>} : memref<16x686xf32, #tpu.memory_space<vmem>>, vector<16x16xf32>,
    %44 = vector.extract_strided_slice %7 {offsets = [16, 32], sizes = [16, 16], strides = [1, 1]} : vector<32x256xf32> to vector<16x16xf32>
    %c0_26 = arith.constant 0 : index
    %c128 = arith.constant 128 : index
    %45 = vector.load %arg11[%c0_26, %c128] : memref<16x686xf32, #tpu.memory_space<vmem>>, vector<16x16xf32>
    tpu.vector_store %arg11[%c0_26, %c128], %44 {strides = array<i32>} : memref<16x686xf32, #tpu.memory_space<vmem>>, vector<16x16xf32>,
    %46 = vector.extract_strided_slice %7 {offsets = [16, 48], sizes = [16, 16], strides = [1, 1]} : vector<32x256xf32> to vector<16x16xf32>
    %c0_27 = arith.constant 0 : index
    %c164 = arith.constant 164 : index
    %47 = vector.load %arg11[%c0_27, %c164] : memref<16x686xf32, #tpu.memory_space<vmem>>, vector<16x16xf32>
    tpu.vector_store %arg11[%c0_27, %c164], %46 {strides = array<i32>} : memref<16x686xf32, #tpu.memory_space<vmem>>, vector<16x16xf32>,
    %48 = vector.extract_strided_slice %7 {offsets = [16, 64], sizes = [16, 16], strides = [1, 1]} : vector<32x256xf32> to vector<16x16xf32>
    %c0_28 = arith.constant 0 : index
    %c200 = arith.constant 200 : index
    %49 = vector.load %arg11[%c0_28, %c200] : memref<16x686xf32, #tpu.memory_space<vmem>>, vector<16x16xf32>
    tpu.vector_store %arg11[%c0_28, %c200], %48 {strides = array<i32>} : memref<16x686xf32, #tpu.memory_space<vmem>>, vector<16x16xf32>,
    %50 = vector.extract_strided_slice %7 {offsets = [16, 80], sizes = [16, 16], strides = [1, 1]} : vector<32x256xf32> to vector<16x16xf32>
    %c0_29 = arith.constant 0 : index
    %c236 = arith.constant 236 : index
    %51 = vector.load %arg11[%c0_29, %c236] : memref<16x686xf32, #tpu.memory_space<vmem>>, vector<16x16xf32>
    tpu.vector_store %arg11[%c0_29, %c236], %50 {strides = array<i32>} : memref<16x686xf32, #tpu.memory_space<vmem>>, vector<16x16xf32>,
    %52 = vector.extract_strided_slice %7 {offsets = [16, 96], sizes = [16, 16], strides = [1, 1]} : vector<32x256xf32> to vector<16x16xf32>
    %c0_30 = arith.constant 0 : index
    %c272 = arith.constant 272 : index
    %53 = vector.load %arg11[%c0_30, %c272] : memref<16x686xf32, #tpu.memory_space<vmem>>, vector<16x16xf32>
    tpu.vector_store %arg11[%c0_30, %c272], %52 {strides = array<i32>} : memref<16x686xf32, #tpu.memory_space<vmem>>, vector<16x16xf32>,
    %54 = vector.extract_strided_slice %7 {offsets = [16, 112], sizes = [16, 16], strides = [1, 1]} : vector<32x256xf32> to vector<16x16xf32>
    %c0_31 = arith.constant 0 : index
    %c308 = arith.constant 308 : index
    %55 = vector.load %arg11[%c0_31, %c308] : memref<16x686xf32, #tpu.memory_space<vmem>>, vector<16x16xf32>
    tpu.vector_store %arg11[%c0_31, %c308], %54 {strides = array<i32>} : memref<16x686xf32, #tpu.memory_space<vmem>>, vector<16x16xf32>,
    %56 = vector.extract_strided_slice %7 {offsets = [16, 128], sizes = [16, 16], strides = [1, 1]} : vector<32x256xf32> to vector<16x16xf32>
    %c0_32 = arith.constant 0 : index
    %c380 = arith.constant 380 : index
    %57 = vector.load %arg11[%c0_32, %c380] : memref<16x686xf32, #tpu.memory_space<vmem>>, vector<16x16xf32>
    tpu.vector_store %arg11[%c0_32, %c380], %56 {strides = array<i32>} : memref<16x686xf32, #tpu.memory_space<vmem>>, vector<16x16xf32>,
    %58 = vector.extract_strided_slice %7 {offsets = [16, 144], sizes = [16, 16], strides = [1, 1]} : vector<32x256xf32> to vector<16x16xf32>
    %c0_33 = arith.constant 0 : index
    %c416 = arith.constant 416 : index
    %59 = vector.load %arg11[%c0_33, %c416] : memref<16x686xf32, #tpu.memory_space<vmem>>, vector<16x16xf32>
    tpu.vector_store %arg11[%c0_33, %c416], %58 {strides = array<i32>} : memref<16x686xf32, #tpu.memory_space<vmem>>, vector<16x16xf32>,
    %60 = vector.extract_strided_slice %7 {offsets = [16, 160], sizes = [16, 16], strides = [1, 1]} : vector<32x256xf32> to vector<16x16xf32>
    %c0_34 = arith.constant 0 : index
    %c452 = arith.constant 452 : index
    %61 = vector.load %arg11[%c0_34, %c452] : memref<16x686xf32, #tpu.memory_space<vmem>>, vector<16x16xf32>
    tpu.vector_store %arg11[%c0_34, %c452], %60 {strides = array<i32>} : memref<16x686xf32, #tpu.memory_space<vmem>>, vector<16x16xf32>,
    %62 = vector.extract_strided_slice %7 {offsets = [16, 176], sizes = [16, 16], strides = [1, 1]} : vector<32x256xf32> to vector<16x16xf32>
    %c0_35 = arith.constant 0 : index
    %c488 = arith.constant 488 : index
    %63 = vector.load %arg11[%c0_35, %c488] : memref<16x686xf32, #tpu.memory_space<vmem>>, vector<16x16xf32>
    tpu.vector_store %arg11[%c0_35, %c488], %62 {strides = array<i32>} : memref<16x686xf32, #tpu.memory_space<vmem>>, vector<16x16xf32>,
    %64 = vector.extract_strided_slice %7 {offsets = [16, 192], sizes = [16, 16], strides = [1, 1]} : vector<32x256xf32> to vector<16x16xf32>
    %c0_36 = arith.constant 0 : index
    %c524 = arith.constant 524 : index
    %65 = vector.load %arg11[%c0_36, %c524] : memref<16x686xf32, #tpu.memory_space<vmem>>, vector<16x16xf32>
    tpu.vector_store %arg11[%c0_36, %c524], %64 {strides = array<i32>} : memref<16x686xf32, #tpu.memory_space<vmem>>, vector<16x16xf32>,
    %66 = vector.extract_strided_slice %7 {offsets = [16, 208], sizes = [16, 16], strides = [1, 1]} : vector<32x256xf32> to vector<16x16xf32>
    %c0_37 = arith.constant 0 : index
    %c560 = arith.constant 560 : index
    %67 = vector.load %arg11[%c0_37, %c560] : memref<16x686xf32, #tpu.memory_space<vmem>>, vector<16x16xf32>
    tpu.vector_store %arg11[%c0_37, %c560], %66 {strides = array<i32>} : memref<16x686xf32, #tpu.memory_space<vmem>>, vector<16x16xf32>,
    %68 = vector.extract_strided_slice %7 {offsets = [16, 224], sizes = [16, 16], strides = [1, 1]} : vector<32x256xf32> to vector<16x16xf32>
    %c0_38 = arith.constant 0 : index
    %c596 = arith.constant 596 : index
    %69 = vector.load %arg11[%c0_38, %c596] : memref<16x686xf32, #tpu.memory_space<vmem>>, vector<16x16xf32>
    tpu.vector_store %arg11[%c0_38, %c596], %68 {strides = array<i32>} : memref<16x686xf32, #tpu.memory_space<vmem>>, vector<16x16xf32>,
    %70 = vector.extract_strided_slice %7 {offsets = [16, 240], sizes = [16, 16], strides = [1, 1]} : vector<32x256xf32> to vector<16x16xf32>
    %c0_39 = arith.constant 0 : index
    %c632 = arith.constant 632 : index
    %71 = vector.load %arg11[%c0_39, %c632] : memref<16x686xf32, #tpu.memory_space<vmem>>, vector<16x16xf32>
    tpu.vector_store %arg11[%c0_39, %c632], %70 {strides = array<i32>} : memref<16x686xf32, #tpu.memory_space<vmem>>, vector<16x16xf32>,
    %c0_40 = arith.constant 0 : index
    %c0_41 = arith.constant 0 : index
    %72 = vector.load %arg9[%c0_40, %c0_41] : memref<16x648xf32, #tpu.memory_space<vmem>>, vector<16x648xf32>
    %c0_42 = arith.constant 0 : index
    %c0_43 = arith.constant 0 : index
    %73 = vector.load %arg11[%c0_42, %c0_43] : memref<16x686xf32, #tpu.memory_space<vmem>>, vector<16x648xf32>
    %c0_44 = arith.constant 0 : index
    %c0_45 = arith.constant 0 : index
    %74 = vector.load %arg12[%c0_44, %c0_45] : memref<144x648xf32, #tpu.memory_space<vmem>>, vector<16x648xf32>
    tpu.vector_store %arg12[%c0_44, %c0_45], %73 {strides = array<i32>} : memref<144x648xf32, #tpu.memory_space<vmem>>, vector<16x648xf32>,
    %c0_46 = arith.constant 0 : index
    %c1 = arith.constant 1 : index
    %75 = vector.load %arg11[%c0_46, %c1] : memref<16x686xf32, #tpu.memory_space<vmem>>, vector<16x648xf32>
    %c16 = arith.constant 16 : index
    %c0_47 = arith.constant 0 : index
    %76 = vector.load %arg12[%c16, %c0_47] : memref<144x648xf32, #tpu.memory_space<vmem>>, vector<16x648xf32>
    tpu.vector_store %arg12[%c16, %c0_47], %75 {strides = array<i32>} : memref<144x648xf32, #tpu.memory_space<vmem>>, vector<16x648xf32>,
    %c0_48 = arith.constant 0 : index
    %c2 = arith.constant 2 : index
    %77 = vector.load %arg11[%c0_48, %c2] : memref<16x686xf32, #tpu.memory_space<vmem>>, vector<16x648xf32>
    %c32 = arith.constant 32 : index
    %c0_49 = arith.constant 0 : index
    %78 = vector.load %arg12[%c32, %c0_49] : memref<144x648xf32, #tpu.memory_space<vmem>>, vector<16x648xf32>
    tpu.vector_store %arg12[%c32, %c0_49], %77 {strides = array<i32>} : memref<144x648xf32, #tpu.memory_space<vmem>>, vector<16x648xf32>,
    %c0_50 = arith.constant 0 : index
    %c18 = arith.constant 18 : index
    %79 = vector.load %arg11[%c0_50, %c18] : memref<16x686xf32, #tpu.memory_space<vmem>>, vector<16x648xf32>
    %c48 = arith.constant 48 : index
    %c0_51 = arith.constant 0 : index
    %80 = vector.load %arg12[%c48, %c0_51] : memref<144x648xf32, #tpu.memory_space<vmem>>, vector<16x648xf32>
    tpu.vector_store %arg12[%c48, %c0_51], %79 {strides = array<i32>} : memref<144x648xf32, #tpu.memory_space<vmem>>, vector<16x648xf32>,
    %c0_52 = arith.constant 0 : index
    %c19 = arith.constant 19 : index
    %81 = vector.load %arg11[%c0_52, %c19] : memref<16x686xf32, #tpu.memory_space<vmem>>, vector<16x648xf32>
    %c64 = arith.constant 64 : index
    %c0_53 = arith.constant 0 : index
    %82 = vector.load %arg12[%c64, %c0_53] : memref<144x648xf32, #tpu.memory_space<vmem>>, vector<16x648xf32>
    tpu.vector_store %arg12[%c64, %c0_53], %81 {strides = array<i32>} : memref<144x648xf32, #tpu.memory_space<vmem>>, vector<16x648xf32>,
    %c0_54 = arith.constant 0 : index
    %c20 = arith.constant 20 : index
    %83 = vector.load %arg11[%c0_54, %c20] : memref<16x686xf32, #tpu.memory_space<vmem>>, vector<16x648xf32>
    %c80 = arith.constant 80 : index
    %c0_55 = arith.constant 0 : index
    %84 = vector.load %arg12[%c80, %c0_55] : memref<144x648xf32, #tpu.memory_space<vmem>>, vector<16x648xf32>
    tpu.vector_store %arg12[%c80, %c0_55], %83 {strides = array<i32>} : memref<144x648xf32, #tpu.memory_space<vmem>>, vector<16x648xf32>,
    %c0_56 = arith.constant 0 : index
    %c36 = arith.constant 36 : index
    %85 = vector.load %arg11[%c0_56, %c36] : memref<16x686xf32, #tpu.memory_space<vmem>>, vector<16x648xf32>
    %c96 = arith.constant 96 : index
    %c0_57 = arith.constant 0 : index
    %86 = vector.load %arg12[%c96, %c0_57] : memref<144x648xf32, #tpu.memory_space<vmem>>, vector<16x648xf32>
    tpu.vector_store %arg12[%c96, %c0_57], %85 {strides = array<i32>} : memref<144x648xf32, #tpu.memory_space<vmem>>, vector<16x648xf32>,
    %c0_58 = arith.constant 0 : index
    %c37 = arith.constant 37 : index
    %87 = vector.load %arg11[%c0_58, %c37] : memref<16x686xf32, #tpu.memory_space<vmem>>, vector<16x648xf32>
    %c112 = arith.constant 112 : index
    %c0_59 = arith.constant 0 : index
    %88 = vector.load %arg12[%c112, %c0_59] : memref<144x648xf32, #tpu.memory_space<vmem>>, vector<16x648xf32>
    tpu.vector_store %arg12[%c112, %c0_59], %87 {strides = array<i32>} : memref<144x648xf32, #tpu.memory_space<vmem>>, vector<16x648xf32>,
    %c0_60 = arith.constant 0 : index
    %c38_61 = arith.constant 38 : index
    %89 = vector.load %arg11[%c0_60, %c38_61] : memref<16x686xf32, #tpu.memory_space<vmem>>, vector<16x648xf32>
    %c128_62 = arith.constant 128 : index
    %c0_63 = arith.constant 0 : index
    %90 = vector.load %arg12[%c128_62, %c0_63] : memref<144x648xf32, #tpu.memory_space<vmem>>, vector<16x648xf32>
    tpu.vector_store %arg12[%c128_62, %c0_63], %89 {strides = array<i32>} : memref<144x648xf32, #tpu.memory_space<vmem>>, vector<16x648xf32>,
    %c0_64 = arith.constant 0 : index
    %c0_65 = arith.constant 0 : index
    %91 = vector.load %arg3[%c0_64, %c0_65] : memref<16x144xf32, #tpu.memory_space<vmem>>, vector<16x144xf32>
    %c0_66 = arith.constant 0 : index
    %c0_67 = arith.constant 0 : index
    %92 = vector.load %arg12[%c0_66, %c0_67] : memref<144x648xf32, #tpu.memory_space<vmem>>, vector<144x648xf32>
    %cst_68 = arith.constant dense<0.000000e+00> : vector<16x648xf32>
    %93 = tpu.matmul %91, %92, %cst_68 {dimension_numbers = #tpu.dot_dimension_numbers<[1], [0], [0], [1], [0, 0, 1, 1], [], []>} : vector<16x144xf32>, vector<144x648xf32>, vector<16x648xf32> -> vector<16x648xf32>
    %94 = arith.mulf %93, %72 : vector<16x648xf32>
    %cst_69 = arith.constant dense<0.000000e+00> : vector<16xf32>
    %95 = vector.multi_reduction <add>, %94, %cst_69 [1] : vector<16x648xf32> to vector<16xf32>
    %96 = vector.shape_cast %95 : vector<16xf32> to vector<16x1xf32>
    %97 = arith.mulf %94, %94 : vector<16x648xf32>
    %cst_70 = arith.constant dense<0.000000e+00> : vector<16xf32>
    %98 = vector.multi_reduction <add>, %97, %cst_70 [1] : vector<16x648xf32> to vector<16xf32>
    %99 = vector.shape_cast %98 : vector<16xf32> to vector<16x1xf32>
    %cst_71 = arith.constant 0.001953125 : f32
    %100 = vector.broadcast %cst_71 : f32 to vector<16x1xf32>
    %101 = arith.mulf %96, %100 : vector<16x1xf32>
    %cst_72 = arith.constant 0.001953125 : f32
    %102 = vector.broadcast %cst_72 : f32 to vector<16x1xf32>
    %103 = arith.mulf %99, %102 : vector<16x1xf32>
    %104 = arith.mulf %101, %101 : vector<16x1xf32>
    %105 = arith.subf %103, %104 : vector<16x1xf32>
    %c0_73 = arith.constant 0 : index
    %c0_74 = arith.constant 0 : index
    %106 = vector.load %arg4[%c0_73, %c0_74] : memref<16x1xf32, #tpu.memory_space<vmem>>, vector<16x1xf32>
    %cst_75 = arith.constant 9.99999974E-6 : f32
    %107 = vector.broadcast %cst_75 : f32 to vector<16x1xf32>
    %108 = arith.addf %105, %107 : vector<16x1xf32>
    %109 = math.rsqrt %108 : vector<16x1xf32>
    %110 = arith.mulf %106, %109 : vector<16x1xf32>
    %c0_76 = arith.constant 0 : index
    %c0_77 = arith.constant 0 : index
    %111 = vector.load %arg5[%c0_76, %c0_77] : memref<16x1xf32, #tpu.memory_space<vmem>>, vector<16x1xf32>
    %112 = arith.mulf %101, %110 : vector<16x1xf32>
    %113 = arith.subf %111, %112 : vector<16x1xf32>
    %114 = vector.broadcast %110 : vector<16x1xf32> to vector<16x648xf32>
    %115 = arith.mulf %94, %114 : vector<16x648xf32>
    %116 = vector.broadcast %113 : vector<16x1xf32> to vector<16x648xf32>
    %117 = arith.addf %115, %116 : vector<16x648xf32>
    %cst_78 = arith.constant 0.000000e+00 : f32
    %118 = vector.broadcast %cst_78 : f32 to vector<16x648xf32>
    %119 = arith.maximumf %117, %118 : vector<16x648xf32>
    %120 = arith.mulf %119, %72 : vector<16x648xf32>
    %c0_79 = arith.constant 0 : index
    %c19_80 = arith.constant 19 : index
    %121 = vector.load %arg11[%c0_79, %c19_80] : memref<16x686xf32, #tpu.memory_space<vmem>>, vector<16x648xf32>
    tpu.vector_store %arg11[%c0_79, %c19_80], %120 {strides = array<i32>} : memref<16x686xf32, #tpu.memory_space<vmem>>, vector<16x648xf32>,
    %c0_81 = arith.constant 0 : index
    %c0_82 = arith.constant 0 : index
    %122 = vector.load %arg11[%c0_81, %c0_82] : memref<16x686xf32, #tpu.memory_space<vmem>>, vector<16x648xf32>
    %c0_83 = arith.constant 0 : index
    %c0_84 = arith.constant 0 : index
    %123 = vector.load %arg12[%c0_83, %c0_84] : memref<144x648xf32, #tpu.memory_space<vmem>>, vector<16x648xf32>
    tpu.vector_store %arg12[%c0_83, %c0_84], %122 {strides = array<i32>} : memref<144x648xf32, #tpu.memory_space<vmem>>, vector<16x648xf32>,
    %c0_85 = arith.constant 0 : index
    %c1_86 = arith.constant 1 : index
    %124 = vector.load %arg11[%c0_85, %c1_86] : memref<16x686xf32, #tpu.memory_space<vmem>>, vector<16x648xf32>
    %c16_87 = arith.constant 16 : index
    %c0_88 = arith.constant 0 : index
    %125 = vector.load %arg12[%c16_87, %c0_88] : memref<144x648xf32, #tpu.memory_space<vmem>>, vector<16x648xf32>
    tpu.vector_store %arg12[%c16_87, %c0_88], %124 {strides = array<i32>} : memref<144x648xf32, #tpu.memory_space<vmem>>, vector<16x648xf32>,
    %c0_89 = arith.constant 0 : index
    %c2_90 = arith.constant 2 : index
    %126 = vector.load %arg11[%c0_89, %c2_90] : memref<16x686xf32, #tpu.memory_space<vmem>>, vector<16x648xf32>
    %c32_91 = arith.constant 32 : index
    %c0_92 = arith.constant 0 : index
    %127 = vector.load %arg12[%c32_91, %c0_92] : memref<144x648xf32, #tpu.memory_space<vmem>>, vector<16x648xf32>
    tpu.vector_store %arg12[%c32_91, %c0_92], %126 {strides = array<i32>} : memref<144x648xf32, #tpu.memory_space<vmem>>, vector<16x648xf32>,
    %c0_93 = arith.constant 0 : index
    %c18_94 = arith.constant 18 : index
    %128 = vector.load %arg11[%c0_93, %c18_94] : memref<16x686xf32, #tpu.memory_space<vmem>>, vector<16x648xf32>
    %c48_95 = arith.constant 48 : index
    %c0_96 = arith.constant 0 : index
    %129 = vector.load %arg12[%c48_95, %c0_96] : memref<144x648xf32, #tpu.memory_space<vmem>>, vector<16x648xf32>
    tpu.vector_store %arg12[%c48_95, %c0_96], %128 {strides = array<i32>} : memref<144x648xf32, #tpu.memory_space<vmem>>, vector<16x648xf32>,
    %c0_97 = arith.constant 0 : index
    %c19_98 = arith.constant 19 : index
    %130 = vector.load %arg11[%c0_97, %c19_98] : memref<16x686xf32, #tpu.memory_space<vmem>>, vector<16x648xf32>
    %c64_99 = arith.constant 64 : index
    %c0_100 = arith.constant 0 : index
    %131 = vector.load %arg12[%c64_99, %c0_100] : memref<144x648xf32, #tpu.memory_space<vmem>>, vector<16x648xf32>
    tpu.vector_store %arg12[%c64_99, %c0_100], %130 {strides = array<i32>} : memref<144x648xf32, #tpu.memory_space<vmem>>, vector<16x648xf32>,
    %c0_101 = arith.constant 0 : index
    %c20_102 = arith.constant 20 : index
    %132 = vector.load %arg11[%c0_101, %c20_102] : memref<16x686xf32, #tpu.memory_space<vmem>>, vector<16x648xf32>
    %c80_103 = arith.constant 80 : index
    %c0_104 = arith.constant 0 : index
    %133 = vector.load %arg12[%c80_103, %c0_104] : memref<144x648xf32, #tpu.memory_space<vmem>>, vector<16x648xf32>
    tpu.vector_store %arg12[%c80_103, %c0_104], %132 {strides = array<i32>} : memref<144x648xf32, #tpu.memory_space<vmem>>, vector<16x648xf32>,
    %c0_105 = arith.constant 0 : index
    %c36_106 = arith.constant 36 : index
    %134 = vector.load %arg11[%c0_105, %c36_106] : memref<16x686xf32, #tpu.memory_space<vmem>>, vector<16x648xf32>
    %c96_107 = arith.constant 96 : index
    %c0_108 = arith.constant 0 : index
    %135 = vector.load %arg12[%c96_107, %c0_108] : memref<144x648xf32, #tpu.memory_space<vmem>>, vector<16x648xf32>
    tpu.vector_store %arg12[%c96_107, %c0_108], %134 {strides = array<i32>} : memref<144x648xf32, #tpu.memory_space<vmem>>, vector<16x648xf32>,
    %c0_109 = arith.constant 0 : index
    %c37_110 = arith.constant 37 : index
    %136 = vector.load %arg11[%c0_109, %c37_110] : memref<16x686xf32, #tpu.memory_space<vmem>>, vector<16x648xf32>
    %c112_111 = arith.constant 112 : index
    %c0_112 = arith.constant 0 : index
    %137 = vector.load %arg12[%c112_111, %c0_112] : memref<144x648xf32, #tpu.memory_space<vmem>>, vector<16x648xf32>
    tpu.vector_store %arg12[%c112_111, %c0_112], %136 {strides = array<i32>} : memref<144x648xf32, #tpu.memory_space<vmem>>, vector<16x648xf32>,
    %c0_113 = arith.constant 0 : index
    %c38_114 = arith.constant 38 : index
    %138 = vector.load %arg11[%c0_113, %c38_114] : memref<16x686xf32, #tpu.memory_space<vmem>>, vector<16x648xf32>
    %c128_115 = arith.constant 128 : index
    %c0_116 = arith.constant 0 : index
    %139 = vector.load %arg12[%c128_115, %c0_116] : memref<144x648xf32, #tpu.memory_space<vmem>>, vector<16x648xf32>
    tpu.vector_store %arg12[%c128_115, %c0_116], %138 {strides = array<i32>} : memref<144x648xf32, #tpu.memory_space<vmem>>, vector<16x648xf32>,
    %c0_117 = arith.constant 0 : index
    %c0_118 = arith.constant 0 : index
    %140 = vector.load %arg6[%c0_117, %c0_118] : memref<16x144xf32, #tpu.memory_space<vmem>>, vector<16x144xf32>
    %c0_119 = arith.constant 0 : index
    %c0_120 = arith.constant 0 : index
    %141 = vector.load %arg12[%c0_119, %c0_120] : memref<144x648xf32, #tpu.memory_space<vmem>>, vector<144x648xf32>
    %cst_121 = arith.constant dense<0.000000e+00> : vector<16x648xf32>
    %142 = tpu.matmul %140, %141, %cst_121 {dimension_numbers = #tpu.dot_dimension_numbers<[1], [0], [0], [1], [0, 0, 1, 1], [], []>} : vector<16x144xf32>, vector<144x648xf32>, vector<16x648xf32> -> vector<16x648xf32>
    %143 = arith.mulf %142, %72 : vector<16x648xf32>
    %cst_122 = arith.constant dense<0.000000e+00> : vector<16xf32>
    %144 = vector.multi_reduction <add>, %143, %cst_122 [1] : vector<16x648xf32> to vector<16xf32>
    %145 = vector.shape_cast %144 : vector<16xf32> to vector<16x1xf32>
    %146 = arith.mulf %143, %143 : vector<16x648xf32>
    %cst_123 = arith.constant dense<0.000000e+00> : vector<16xf32>
    %147 = vector.multi_reduction <add>, %146, %cst_123 [1] : vector<16x648xf32> to vector<16xf32>
    %148 = vector.shape_cast %147 : vector<16xf32> to vector<16x1xf32>
    %cst_124 = arith.constant 0.001953125 : f32
    %149 = vector.broadcast %cst_124 : f32 to vector<16x1xf32>
    %150 = arith.mulf %145, %149 : vector<16x1xf32>
    %cst_125 = arith.constant 0.001953125 : f32
    %151 = vector.broadcast %cst_125 : f32 to vector<16x1xf32>
    %152 = arith.mulf %148, %151 : vector<16x1xf32>
    %153 = arith.mulf %150, %150 : vector<16x1xf32>
    %154 = arith.subf %152, %153 : vector<16x1xf32>
    %c0_126 = arith.constant 0 : index
    %c0_127 = arith.constant 0 : index
    %155 = vector.load %arg7[%c0_126, %c0_127] : memref<16x1xf32, #tpu.memory_space<vmem>>, vector<16x1xf32>
    %cst_128 = arith.constant 9.99999974E-6 : f32
    %156 = vector.broadcast %cst_128 : f32 to vector<16x1xf32>
    %157 = arith.addf %154, %156 : vector<16x1xf32>
    %158 = math.rsqrt %157 : vector<16x1xf32>
    %159 = arith.mulf %155, %158 : vector<16x1xf32>
    %c0_129 = arith.constant 0 : index
    %c0_130 = arith.constant 0 : index
    %160 = vector.load %arg8[%c0_129, %c0_130] : memref<16x1xf32, #tpu.memory_space<vmem>>, vector<16x1xf32>
    %161 = arith.mulf %150, %159 : vector<16x1xf32>
    %162 = arith.subf %160, %161 : vector<16x1xf32>
    %163 = vector.broadcast %159 : vector<16x1xf32> to vector<16x648xf32>
    %164 = arith.mulf %143, %163 : vector<16x648xf32>
    %165 = vector.broadcast %162 : vector<16x1xf32> to vector<16x648xf32>
    %166 = arith.addf %164, %165 : vector<16x648xf32>
    %cst_131 = arith.constant 0.000000e+00 : f32
    %167 = vector.broadcast %cst_131 : f32 to vector<16x648xf32>
    %168 = arith.maximumf %166, %167 : vector<16x648xf32>
    %169 = arith.mulf %168, %72 : vector<16x648xf32>
    %c0_132 = arith.constant 0 : index
    %c0_133 = arith.constant 0 : index
    %170 = vector.load %arg10[%c0_132, %c0_133] : memref<16x648xf32, #tpu.memory_space<vmem>>, vector<16x648xf32>
    tpu.vector_store %arg10[%c0_132, %c0_133], %169 {strides = array<i32>} : memref<16x648xf32, #tpu.memory_space<vmem>>, vector<16x648xf32>,
    return
  }
}

</mosaic_0001>

<bundles_post_ra>
// kernel: tpu_custom_call.1
= control target key start
LH: loop header
LB: loop body
LE: loop exit
PB: predicated region body
PF: predicated region fallthrough
CT: control target
= control target key end

     0   :  { %15 = vsyncpa [#allocation5], 0  ;;  %s4875_s0 = inlined_call_operand.vmem [shape: f32[16,256], index: 0, kind: input, shape index: {}]   ;;  %s4876_s1 = inlined_call_operand.vmem [shape: f32[32,16], index: 1, kind: input, shape index: {}]   ;;  %s4877_s2 = inlined_call_operand.vmem [shape: f32[32,1], index: 2, kind: input, shape index: {}]   ;;  %s4878_s3 = inlined_call_operand.vmem [shape: f32[16,144], index: 3, kind: input, shape index: {}]   ;;  %s4879_s4 = inlined_call_operand.vmem [shape: f32[16,1], index: 4, kind: input, shape index: {}]   ;;  %s4880_s5 = inlined_call_operand.vmem [shape: f32[16,1], index: 5, kind: input, shape index: {}]   ;;  %s4881_s6 = inlined_call_operand.hbm [shape: f32[16,144], index: 6, kind: input, shape index: {}]   ;;  %s4882_s7 = inlined_call_operand.vmem [shape: f32[16,1], index: 7, kind: input, shape index: {}]   ;;  %s4883_s8 = inlined_call_operand.vmem [shape: f32[16,1], index: 8, kind: input, shape index: {}]   ;;  %s4884_s9 = inlined_call_operand.vmem [shape: f32[16,648], index: 9, kind: input, shape index: {}]   ;;  %s4885_s10 = inlined_call_operand.hbm [shape: f32[16,648], index: 10, kind: output, shape index: {}]  }
   0x1   :  { %16 = vsyncpa [#allocation6], 0  ;;  %s3095_s13 = smov [#allocation4]  }
   0x2   :  { %s34_s14 = sshll.u32 %s3095_s13, 4  ;;  %s35_s14 = int_to_ptr.vmem [resolvable:$true] %s34_s14 }
   0x3   :  { %s3059_s15 = scalar_lea.vmem %s35_s14, 512  ;;  %p3064_p1 = scmp.lt.s32.totalorder %s35_s14, %s35_s14 }
   0x4   :  { %p3060_p0 = scmp.ne.s32.totalorder %s35_s14, %s3059_s15  ;;  %p3065_p2 = scmp.lt.s32.totalorder %s3059_s15, %s3059_s15 }
   0x6   :  { %p3066_p3 = por %p3065_p2, %p3064_p1 }
   0x8   :  { %p3067_p4 = pnand %p3066_p3, %p3060_p0 }
   0xa   :  { %3070 = shalt.err (!%p3067_p4)
}
   0xb   :  { %s3096_s16 = smov 256   ;;  %s3097_s17 = smov 16  }
   0xc   :  { %40 = dma.hbm_to_vmem [thread:$0]  %s4881_s6, 512, %s35_s14, [#allocation5], %s3096_s16, %s3096_s16, %s3097_s17  }
   0xd   :  { %3091 = dma.done.wait [#allocation5], 512  }
   0xe   :  { %3092 = vsyncadd [#allocation5], 4294966784  ;;  %v3098_v0 = vmov 0.0   ;;  %v3099_v1 = vmov 0   ;;  %v70_v2 = vld [vmem:[%s4875_s0 + $0x18] sm:$0xff]  ;;  %v69_v3 = vld [vmem:[%s4875_s0 + $0x10] sm:$0xff] }
   0xf   :  { %172 = vmatprep.mubr.f32.mxu0 %v3098_v0  ;;  %50 = vst [vmem:[#allocation2] sm:$0xff] %v3098_v0  ;;  %51 = vst [vmem:[#allocation2 + $0x8] sm:$0xff] %v3098_v0  ;;  %3028 = vset.pattern.permute.xlu0 %v3099_v1  ;;  %v68_v4 = vld [vmem:[%s4875_s0 + $0x8] sm:$0xff]  ;;  %v67_v5 = vld [vmem:[%s4875_s0] sm:$0xff]  ;;  %vm95_vm0 = vcmask 130048   ;;  %s3100_s21 = smov 118  }
  0x10   :  { %52 = vst [vmem:[#allocation2 + $0x10] sm:$0xff] %v3098_v0  ;;  %53 = vst [vmem:[#allocation2 + $0x18] sm:$0xff] %v3098_v0  ;;  %3029 = vset.pattern.permute.xlu1 %v3099_v1  ;;  %136 = vmatprep.subr.mxu0 %v70_v2  ;;  %v63_v6 = vld [vmem:[%s4876_s1] sm:$0xff]  ;;  %v72_v7 = vld [vmem:[%s4877_s2 + $0x8] sm:$0xff]  ;;  %s3101_s22 = smov 98   ;;  %s3102_s23 = smov 30  }
  0x11   :  { %54 = vst [vmem:[#allocation2 + $0x20] sm:$0xff] %v3098_v0  ;;  %57 = vst [vmem:[#allocation2 + $0x30] sm:$0xff] %v3098_v0  ;;  %137 = vmatpush1.msra.mxu0 %v69_v3  ;;  %82 = vperm.xlu0 %3028, %v72_v7   ;;  %v74_v8 = vld [vmem:[%s4877_s2 + $0x18] sm:$0xff]  ;;  %v71_v9 = vld [vmem:[%s4877_s2] sm:$0xff]  ;;  %s3103_s24 = smov 10   ;;  %s3104_s25 = smov 50  }
  0x12   :  { %58 = vst [vmem:[#allocation2 + $0x38] sm:$0xff] %v3098_v0  ;;  %59 = vst [vmem:[#allocation2 + $0x40] sm:$0xff] %v3098_v0  ;;  %138 = vmatprep.subr.mxu0 %v68_v4  ;;  %92 = vperm.xlu1 %3029, %v74_v8   ;;  %v73_v10 = vld [vmem:[%s4877_s2 + $0x10] sm:$0xff]  ;;  %v64_v11 = vld [vmem:[%s4876_s1 + $0x8] sm:$0xff]  ;;  %s3106_s26 = smov 78   ;;  %s3107_s27 = smov 58  }
  0x13   :  { %60 = vst [vmem:[#allocation2 + $0x48] sm:$0xff] %v3098_v0  ;;  %61 = vst [vmem:[#allocation2 + $0x50] sm:$0xff] %v3098_v0  ;;  %139 = vmatpush1.msra.mxu0 %v67_v5  ;;  %v65_v12 = vld [vmem:[%s4876_s1 + $0x10] sm:$0xff]  ;;  %v66_v13 = vld [vmem:[%s4876_s1 + $0x18] sm:$0xff]  ;;  %s3105_s1 = smov 38   ;;  %s3108_s28 = smov 106  }
  0x14   :  { %2976 = vmatmul.mubr.msk.f32.vlgmr.msra.gmra.mxu0 %vm95_vm0, %v63_v6  ;;  %s3109_s29 = smov 126   ;;  %s3110_s30 = smov 18   ;;  %vm55_vm1 = vcmask 375808   ;;  %vm232_vm2 = vcmask 277648   ;;  %vm241_vm3 = vcmask 572848   ;;  %vm261_vm4 = vcmask 113664  }
  0x15   :  { %178 = vmatprep.mubr.f32.mxu0 %v3098_v0  ;;  %77 = vperm.xlu0 %3028, %v71_v9   ;;  %s3111_s11 = smov 96   ;;  %s3112_s12 = smov 68   ;;  %56 = vst.msk [vmem:[#allocation2 + $0x28] sm:$0xff] %vm55_vm1, %v3098_v0  ;;  %62 = vst.msk [vmem:[#allocation2 + $0x58] sm:$0xff] %vm55_vm1, %v3098_v0  ;;  %vm250_vm5 = vcmask 868048   ;;  %vm259_vm6 = vcmask 1048560  }
  0x16   :  { %87 = vperm.xlu1 %3029, %v73_v10   ;;  %s3113_s13 = smov 28   ;;  %s3114_s14 = smov 76   ;;  %vm271_vm7 = vcmask 408848   ;;  %vm205_vm8 = vcmask 441648   ;;  %vm214_vm9 = vcmask 736848   ;;  %vm223_vm10 = vcmask 1032048  }
  0x17   :  { %s3115_s0 = smov 116   ;;  %s3116_s15 = smov 8   ;;  %vm4886_vm11 = vcmask 999248   ;;  %vm4887_vm12 = vcmask 244848   ;;  %vm320_vm13 = vcmask 80896   ;;  %vm330_vm14 = vcmask 376048  }
  0x18   :  { %2977 = vmatmul.mubr.msk.f32.gmra.mxu0 %vm95_vm0, %v64_v11  ;;  %s3117_s16 = smov 48   ;;  %s3118_s18 = smov 56   ;;  %vm300_vm15 = vcmask 540048   ;;  %vm309_vm1 = vcmask 835248  }
  0x19   :  { %184 = vmatprep.mubr.f32.mxu0 %v3098_v0  ;;  %s3119_s19 = smov 124   ;;  %s3120_s6 = smov 36  }
  0x1a   :  { %s3122_s2 = smov 92   ;;  %s3123_s20 = smov 108  }
  0x1c   :  { %2978 = vmatmul.mubr.msk.f32.gmra.mxu0 %vm95_vm0, %v65_v12 }
  0x1d   :  { %190 = vmatprep.mubr.f32.mxu0 %v3098_v0 }
  0x20   :  { %2979 = vmatmul.mubr.msk.f32.gmra.mxu0 %vm95_vm0, %v66_v13 }
  0x8c   :  { %v83_v14 = vpop.permute.xlu0 %82 }
  0x8d   :  { %v93_v24 = vpop.permute.xlu1 %92 }
  0x90   :  { %v78_v15 = vpop.permute.xlu0 %77 }
  0x91   :  { %v88_v25 = vpop.permute.xlu1 %87 }
  0xd4   :  { %v174_v16 = vpop.f32.mrf.mxu0 }
  0xd5   :  { %v175_v17 = vadd.f32 %v174_v16, %v78_v15 }
  0xd6   :  { %v176_v18 = vpop.f32.mrf.mxu0 }
  0xd7   :  { %235 = vrot.lane.b32.xlu1 %v175_v17, %s3100_s21  ;;  %226 = vrot.lane.b32.xlu0 %v175_v17, %s3101_s22  ;;  %v177_v19 = vadd.f32 %v176_v18, %v78_v15 }
  0xd8   :  { %v180_v20 = vpop.f32.mrf.mxu0 }
  0xd9   :  { %v181_v21 = vadd.f32 %v180_v20, %v83_v14 }
  0xda   :  { %v182_v22 = vpop.f32.mrf.mxu0 }
  0xdb   :  { %253 = vrot.lane.b32.xlu1 %v175_v17, %s3102_s23  ;;  %244 = vrot.lane.b32.xlu0 %v175_v17, %s3103_s24  ;;  %v183_v23 = vadd.f32 %v182_v22, %v83_v14 }
  0xdc   :  { %v186_v26 = vpop.f32.mrf.mxu0 }
  0xdd   :  { %v187_v27 = vadd.f32 %v186_v26, %v88_v25 }
  0xde   :  { %v188_v28 = vpop.f32.mrf.mxu0 }
  0xdf   :  { %265 = vrot.lane.b32.xlu1 %v175_v17, %s3104_s25  ;;  %199 = vrot.lane.b32.xlu0 %v175_v17, %s3105_s1  ;;  %v189_v29 = vadd.f32 %v188_v28, %v88_v25 }
  0xe0   :  { %v192_v30 = vpop.f32.mrf.mxu0 }
  0xe1   :  { %v193_v31 = vadd.f32 %v192_v30, %v93_v24 }
  0xe2   :  { %v194_v32 = vpop.f32.mrf.mxu0 }
  0xe3   :  { %324 = vrot.lane.b32.xlu1 %v177_v19, %s3106_s26  ;;  %208 = vrot.lane.b32.xlu0 %v175_v17, %s3107_s27  ;;  %v195_v33 = vadd.f32 %v194_v32, %v93_v24 }
  0xe7   :  { %303 = vrot.lane.b32.xlu1 %v177_v19, %s3105_s1  ;;  %217 = vrot.lane.b32.xlu0 %v175_v17, %s3106_s26 }
  0xeb   :  { %237 = vrot.lane.b32.xlu1 %v181_v21, %s3100_s21  ;;  %276 = vrot.lane.b32.xlu0 %v177_v19, %s3108_s28 }
  0xef   :  { %246 = vrot.lane.b32.xlu1 %v181_v21, %s3103_s24  ;;  %285 = vrot.lane.b32.xlu0 %v177_v19, %s3109_s29  ;;  %s3127_s24 = smov 90  }
  0xf3   :  { %201 = vrot.lane.b32.xlu1 %v181_v21, %s3105_s1  ;;  %312 = vrot.lane.b32.xlu0 %v177_v19, %s3107_s27 }
  0xf7   :  { %219 = vrot.lane.b32.xlu1 %v181_v21, %s3106_s26  ;;  %294 = vrot.lane.b32.xlu0 %v177_v19, %s3110_s30 }
  0xfb   :  { %314 = vrot.lane.b32.xlu1 %v183_v23, %s3107_s27  ;;  %333 = vrot.lane.b32.xlu0 %v177_v19, %s3101_s22 }
  0xff   :  { %326 = vrot.lane.b32.xlu1 %v183_v23, %s3106_s26  ;;  %342 = vrot.lane.b32.xlu0 %v177_v19, %s3100_s21 }
 0x103   :  { %305 = vrot.lane.b32.xlu1 %v183_v23, %s3105_s1  ;;  %228 = vrot.lane.b32.xlu0 %v181_v21, %s3101_s22 }
 0x107   :  { %335 = vrot.lane.b32.xlu1 %v183_v23, %s3101_s22  ;;  %255 = vrot.lane.b32.xlu0 %v181_v21, %s3102_s23  ;;  %s3125_s22 = smov 110   ;;  %s3126_s23 = smov 127  }
 0x10b   :  { %371 = vrot.lane.b32.xlu1 %v187_v27, %s3111_s11  ;;  %267 = vrot.lane.b32.xlu0 %v181_v21, %s3104_s25 }
 0x10f   :  { %415 = vrot.lane.b32.xlu1 %v187_v27, %s3112_s12  ;;  %210 = vrot.lane.b32.xlu0 %v181_v21, %s3107_s27 }
 0x113   :  { %397 = vrot.lane.b32.xlu1 %v187_v27, %s3113_s13  ;;  %278 = vrot.lane.b32.xlu0 %v183_v23, %s3108_s28 }
 0x117   :  { %362 = vrot.lane.b32.xlu1 %v187_v27, %s3114_s14  ;;  %287 = vrot.lane.b32.xlu0 %v183_v23, %s3109_s29 }
 0x11b   :  { %483 = vrot.lane.b32.xlu1 %v189_v29, %s3115_s0  ;;  %296 = vrot.lane.b32.xlu0 %v183_v23, %s3110_s30 }
 0x11f   :  { %492 = vrot.lane.b32.xlu1 %v189_v29, %s3116_s15  ;;  %344 = vrot.lane.b32.xlu0 %v183_v23, %s3100_s21  ;;  %s3124_s21 = smov 109  }
 0x123   :  { %373 = vrot.lane.b32.xlu1 %v193_v31, %s3111_s11  ;;  %379 = vrot.lane.b32.xlu0 %v187_v27, %s3115_s0 }
 0x127   :  { %408 = vrot.lane.b32.xlu1 %v193_v31, %s3117_s16  ;;  %406 = vrot.lane.b32.xlu0 %v187_v27, %s3117_s16 }
 0x12b   :  { %417 = vrot.lane.b32.xlu1 %v193_v31, %s3112_s12  ;;  %388 = vrot.lane.b32.xlu0 %v187_v27, %s3116_s15 }
 0x12f   :  { %355 = vrot.lane.b32.xlu1 %v193_v31, %s3118_s18  ;;  %353 = vrot.lane.b32.xlu0 %v187_v27, %s3118_s18 }
 0x133   :  { %399 = vrot.lane.b32.xlu1 %v193_v31, %s3113_s13  ;;  %426 = vrot.lane.b32.xlu0 %v189_v29, %s3119_s19 }
 0x137   :  { %364 = vrot.lane.b32.xlu1 %v193_v31, %s3114_s14  ;;  %465 = vrot.lane.b32.xlu0 %v189_v29, %s3114_s14 }
 0x13b   :  { %428 = vrot.lane.b32.xlu1 %v195_v33, %s3119_s19  ;;  %438 = vrot.lane.b32.xlu0 %v189_v29, %s3097_s17 }
 0x13f   :  { %467 = vrot.lane.b32.xlu1 %v195_v33, %s3114_s14  ;;  %474 = vrot.lane.b32.xlu0 %v189_v29, %s3111_s11 }
 0x143   :  { %440 = vrot.lane.b32.xlu1 %v195_v33, %s3097_s17  ;;  %447 = vrot.lane.b32.xlu0 %v189_v29, %s3120_s6  ;;  %s3121_s17 = smov 91  }
 0x147   :  { %449 = vrot.lane.b32.xlu1 %v195_v33, %s3120_s6  ;;  %456 = vrot.lane.b32.xlu0 %v189_v29, %s3118_s18 }
 0x149   :  { %v236_v34 = vpop.permute.xlu1 %235  ;;  %v227_v35 = vpop.permute.xlu0 %226 }
 0x14a   :  { %233 = vst.msk [vmem:[#allocation2 + $0x8] sm:$0xff] %vm232_vm2, %v227_v35 }
 0x14b   :  { %485 = vrot.lane.b32.xlu1 %v195_v33, %s3115_s0  ;;  %381 = vrot.lane.b32.xlu0 %v193_v31, %s3115_s0  ;;  %242 = vst.msk [vmem:[#allocation2 + $0x8] sm:$0xff] %vm241_vm3, %v236_v34 }
 0x14d   :  { %v254_v36 = vpop.permute.xlu1 %253  ;;  %v245_v37 = vpop.permute.xlu0 %244 }
 0x14e   :  { %262 = vst.msk [vmem:[#allocation2 + $0x10] sm:$0xff] %vm261_vm4, %v254_v36 }
 0x14f   :  { %251 = vst.msk [vmem:[#allocation2 + $0x8] sm:$0xff] %vm250_vm5, %v245_v37  ;;  %458 = vrot.lane.b32.xlu1 %v195_v33, %s3118_s18  ;;  %390 = vrot.lane.b32.xlu0 %v193_v31, %s3116_s15 }
 0x150   :  { %260 = vst.msk [vmem:[#allocation2 + $0x8] sm:$0xff] %vm259_vm6, %v254_v36 }
 0x151   :  { %v266_v38 = vpop.permute.xlu1 %265  ;;  %v200_v39 = vpop.permute.xlu0 %199 }
 0x152   :  { %272 = vst.msk [vmem:[#allocation2 + $0x10] sm:$0xff] %vm271_vm7, %v266_v38 }
 0x153   :  { %206 = vst.msk [vmem:[#allocation2] sm:$0xff] %vm205_vm8, %v200_v39  ;;  %494 = vrot.lane.b32.xlu1 %v195_v33, %s3116_s15  ;;  %476 = vrot.lane.b32.xlu0 %v195_v33, %s3111_s11 }
 0x155   :  { %v325_v40 = vpop.permute.xlu1 %324  ;;  %v209_v41 = vpop.permute.xlu0 %208 }
 0x156   :  { %215 = vst.msk [vmem:[#allocation2] sm:$0xff] %vm214_vm9, %v209_v41 }
 0x159   :  { %v304_v42 = vpop.permute.xlu1 %303  ;;  %v218_v43 = vpop.permute.xlu0 %217 }
 0x15a   :  { %224 = vst.msk [vmem:[#allocation2] sm:$0xff] %vm223_vm10, %v218_v43 }
 0x15d   :  { %v238_v44 = vpop.permute.xlu1 %237  ;;  %v277_v45 = vpop.permute.xlu0 %276 }
 0x15e   :  { %283 = vst.msk [vmem:[#allocation2 + $0x10] sm:$0xff] %vm4886_vm11, %v277_v45  ;;  %vm318_vm11 = vcmask 1048528  }
 0x161   :  { %v247_v46 = vpop.permute.xlu1 %246  ;;  %v286_v47 = vpop.permute.xlu0 %285 }
 0x162   :  { %292 = vst.msk [vmem:[#allocation2 + $0x18] sm:$0xff] %vm4887_vm12, %v286_v47  ;;  %vm339_vm12 = vcmask 671248  }
 0x165   :  { %v202_v48 = vpop.permute.xlu1 %201  ;;  %v313_v49 = vpop.permute.xlu0 %312 }
 0x166   :  { %207 = vst.msk [vmem:[#allocation2 + $0x30] sm:$0xff] %vm205_vm8, %v202_v48  ;;  %vm348_vm8 = vcmask 966448  }
 0x167   :  { %321 = vst.msk [vmem:[#allocation2 + $0x20] sm:$0xff] %vm320_vm13, %v313_v49 }
 0x168   :  { %331 = vst.msk [vmem:[#allocation2 + $0x20] sm:$0xff] %vm330_vm14, %v325_v40 }
 0x169   :  { %v220_v50 = vpop.permute.xlu1 %219  ;;  %v295_v51 = vpop.permute.xlu0 %294 }
 0x16a   :  { %301 = vst.msk [vmem:[#allocation2 + $0x18] sm:$0xff] %vm300_vm15, %v295_v51 }
 0x16b   :  { %310 = vst.msk [vmem:[#allocation2 + $0x18] sm:$0xff] %vm309_vm1, %v304_v42 }
 0x16c   :  { %319 = vst.msk [vmem:[#allocation2 + $0x18] sm:$0xff] %vm318_vm11, %v313_v49 }
 0x16d   :  { %v315_v52 = vpop.permute.xlu1 %314  ;;  %v334_v53 = vpop.permute.xlu0 %333 }
 0x16e   :  { %323 = vst.msk [vmem:[#allocation2 + $0x50] sm:$0xff] %vm320_vm13, %v315_v52  ;;  %vm432_vm13 = vcmask 1048544  }
 0x16f   :  { %340 = vst.msk [vmem:[#allocation2 + $0x20] sm:$0xff] %vm339_vm12, %v334_v53 }
 0x171   :  { %v327_v54 = vpop.permute.xlu1 %326  ;;  %v343_v55 = vpop.permute.xlu0 %342 }
 0x172   :  { %332 = vst.msk [vmem:[#allocation2 + $0x50] sm:$0xff] %vm330_vm14, %v327_v54  ;;  %vm434_vm14 = vcmask 97280  }
 0x173   :  { %349 = vst.msk [vmem:[#allocation2 + $0x20] sm:$0xff] %vm348_vm8, %v343_v55 }
 0x175   :  { %v306_v56 = vpop.permute.xlu1 %305  ;;  %v229_v57 = vpop.permute.xlu0 %228 }
 0x176   :  { %234 = vst.msk [vmem:[#allocation2 + $0x38] sm:$0xff] %vm232_vm2, %v229_v57  ;;  %vm4900_vm2 = vcmask 999248  }
 0x177   :  { %243 = vst.msk [vmem:[#allocation2 + $0x38] sm:$0xff] %vm241_vm3, %v238_v44  ;;  %vm4901_vm3 = vcmask 244848  }
 0x178   :  { %252 = vst.msk [vmem:[#allocation2 + $0x38] sm:$0xff] %vm250_vm5, %v247_v46  ;;  %vm385_vm5 = vcmask 425248  }
 0x179   :  { %v336_v58 = vpop.permute.xlu1 %335  ;;  %v256_v59 = vpop.permute.xlu0 %255 }
 0x17a   :  { %341 = vst.msk [vmem:[#allocation2 + $0x50] sm:$0xff] %vm339_vm12, %v336_v58  ;;  %vm368_vm12 = vcmask 884448  }
 0x17b   :  { %263 = vst.msk [vmem:[#allocation2 + $0x38] sm:$0xff] %vm259_vm6, %v256_v59  ;;  %vm412_vm6 = vcmask 261248  }
 0x17c   :  { %264 = vst.msk [vmem:[#allocation2 + $0x40] sm:$0xff] %vm261_vm4, %v256_v59  ;;  %vm500_vm4 = vcmask 64512   ;;  %v3552_v59 = vld [vmem:[%s4878_s3 + $0x8] sm:$0xff] }
 0x17d   :  { %v372_v60 = vpop.permute.xlu1 %371  ;;  %v268_v61 = vpop.permute.xlu0 %267  ;;  %4902 = vst [vmem:[#allocation10_spill] sm:$0xff] %v3552_v59  ;;  %2980 = vmatprep.mubr.msk.f32.mxu1 %vm95_vm0, %v3552_v59  ;;  %2982 = vmatprep.mubr.msk.f32.mxu0 %vm95_vm0, %v3552_v59 }
 0x17e   :  { %377 = vst.msk [vmem:[#allocation2 + $0x8] sm:$0xff] %vm95_vm0, %v372_v60 }
 0x17f   :  { %273 = vst.msk [vmem:[#allocation2 + $0x40] sm:$0xff] %vm271_vm7, %v268_v61  ;;  %vm421_vm7 = vcmask 556448  }
 0x181   :  { %v416_v62 = vpop.permute.xlu1 %415  ;;  %v211_v63 = vpop.permute.xlu0 %210 }
 0x182   :  { %216 = vst.msk [vmem:[#allocation2 + $0x30] sm:$0xff] %vm214_vm9, %v211_v63  ;;  %vm394_vm9 = vcmask 720448  }
 0x183   :  { %225 = vst.msk [vmem:[#allocation2 + $0x30] sm:$0xff] %vm223_vm10, %v220_v50  ;;  %vm403_vm10 = vcmask 1015648  }
 0x185   :  { %v398_v0 = vpop.permute.xlu1 %397  ;;  %v279_v1 = vpop.permute.xlu0 %278 }
 0x186   :  { %284 = vst.msk [vmem:[#allocation2 + $0x40] sm:$0xff] %vm4900_vm2, %v279_v1  ;;  %vm489_vm2 = vcmask 818848  }
 0x189   :  { %v363_v2 = vpop.permute.xlu1 %362  ;;  %v288_v3 = vpop.permute.xlu0 %287 }
 0x18a   :  { %293 = vst.msk [vmem:[#allocation2 + $0x48] sm:$0xff] %vm4901_vm3, %v288_v3  ;;  %vm498_vm3 = vcmask 1048512  }
 0x18d   :  { %v3325_v4 = vpop.permute.xlu1 %483  ;;  %v297_v5 = vpop.permute.xlu0 %296 }
 0x18e   :  { %302 = vst.msk [vmem:[#allocation2 + $0x48] sm:$0xff] %vm300_vm15, %v297_v5  ;;  %vm471_vm15 = vcmask 228448  }
 0x18f   :  { %311 = vst.msk [vmem:[#allocation2 + $0x48] sm:$0xff] %vm309_vm1, %v306_v56  ;;  %vm444_vm1 = vcmask 392448  }
 0x190   :  { %322 = vst.msk [vmem:[#allocation2 + $0x48] sm:$0xff] %vm318_vm11, %v315_v52  ;;  %vm359_vm11 = vcmask 589248  }
 0x191   :  { %v3330_v6 = vpop.permute.xlu1 %492  ;;  %v345_v7 = vpop.permute.xlu0 %344 }
 0x192   :  { %501 = vst.msk [vmem:[#allocation2 + $0x28] sm:$0xff] %vm500_vm4, %v3330_v6 }
 0x193   :  { %350 = vst.msk [vmem:[#allocation2 + $0x50] sm:$0xff] %vm348_vm8, %v345_v7  ;;  %vm480_vm8 = vcmask 523648  }
 0x195   :  { %v374_v8 = vpop.permute.xlu1 %373  ;;  %v380_v9 = vpop.permute.xlu0 %379 }
 0x196   :  { %378 = vst.msk [vmem:[#allocation2 + $0x38] sm:$0xff] %vm95_vm0, %v374_v8 }
 0x197   :  { %386 = vst.msk [vmem:[#allocation2 + $0x8] sm:$0xff] %vm385_vm5, %v380_v9 }
 0x199   :  { %v3337_v10 = vld [vmem:[#allocation2 + $0x28] sm:$0xff]  ;;  %v409_v11 = vpop.permute.xlu1 %408  ;;  %v407_v12 = vpop.permute.xlu0 %406 }
 0x19a   :  { %533 = vst.msk [vmem:[#allocation3 + $0x28] sm:$0xff] %vm500_vm4, %v3337_v10 }
 0x19b   :  { %414 = vst.msk [vmem:[#allocation2 + $0x40] sm:$0xff] %vm412_vm6, %v409_v11  ;;  %413 = vst.msk [vmem:[#allocation2 + $0x10] sm:$0xff] %vm412_vm6, %v407_v12  ;;  %vm453_vm6 = vcmask 687648  }
 0x19c   :  { %422 = vst.msk [vmem:[#allocation2 + $0x10] sm:$0xff] %vm421_vm7, %v416_v62 }
 0x19d   :  { %v418_v13 = vpop.permute.xlu1 %417  ;;  %v389_v14 = vpop.permute.xlu0 %388 }
 0x19e   :  { %423 = vst.msk [vmem:[#allocation2 + $0x40] sm:$0xff] %vm421_vm7, %v418_v13  ;;  %vm462_vm7 = vcmask 982848  }
 0x19f   :  { %395 = vst.msk [vmem:[#allocation2 + $0x8] sm:$0xff] %vm394_vm9, %v389_v14 }
 0x1a0   :  { %404 = vst.msk [vmem:[#allocation2 + $0x8] sm:$0xff] %vm403_vm10, %v398_v0 }
 0x1a1   :  { %v356_v15 = vpop.permute.xlu1 %355  ;;  %v354_v16 = vpop.permute.xlu0 %353 }
 0x1a2   :  { %361 = vst.msk [vmem:[#allocation2 + $0x30] sm:$0xff] %vm359_vm11, %v356_v15  ;;  %360 = vst.msk [vmem:[#allocation2] sm:$0xff] %vm359_vm11, %v354_v16  ;;  %vm837_vm11 = vcmask 891904  }
 0x1a3   :  { %369 = vst.msk [vmem:[#allocation2] sm:$0xff] %vm368_vm12, %v363_v2 }
 0x1a5   :  { %v3343_v17 = vpop.permute.xlu1 %399  ;;  %v427_v18 = vpop.permute.xlu0 %426 }
 0x1a6   :  { %433 = vst.msk [vmem:[#allocation2 + $0x10] sm:$0xff] %vm432_vm13, %v427_v18 }
 0x1a7   :  { %435 = vst.msk [vmem:[#allocation2 + $0x18] sm:$0xff] %vm434_vm14, %v427_v18  ;;  %v3425_v40 = vld [vmem:[#allocation2 + $0x8] sm:$0xff] }
 0x1a9   :  { %v365_v19 = vpop.permute.xlu1 %364  ;;  %v466_v20 = vpop.permute.xlu0 %465 }
 0x1aa   :  { %370 = vst.msk [vmem:[#allocation2 + $0x30] sm:$0xff] %vm368_vm12, %v365_v19  ;;  %v3348_v21 = vld [vmem:[#allocation2] sm:$0xff]  ;;  %vm754_vm12 = vcmask 900096  }
 0x1ab   :  { %472 = vst.msk [vmem:[#allocation2 + $0x20] sm:$0xff] %vm471_vm15, %v466_v20  ;;  %1062 = vrot.lane.b32.xlu1 %v3348_v21, %s3121_s17 }
 0x1ad   :  { %v518_v22 = vld [vmem:[#allocation2 + $0x10] sm:$0xff]  ;;  %v429_v23 = vpop.permute.xlu1 %428  ;;  %v439_v24 = vpop.permute.xlu0 %438 }
 0x1ae   :  { %530 = vst [vmem:[#allocation3 + $0x10] sm:$0xff] %v518_v22  ;;  %436 = vst.msk [vmem:[#allocation2 + $0x40] sm:$0xff] %vm432_vm13, %v429_v23  ;;  %1066 = vrot.lane.b32.xlu0 %v518_v22, %s3121_s17  ;;  %vm671_vm13 = vcmask 1031168  }
 0x1af   :  { %437 = vst.msk [vmem:[#allocation2 + $0x48] sm:$0xff] %vm434_vm14, %v429_v23  ;;  %979 = vrot.lane.b32.xlu1 %v3348_v21, %s3122_s2  ;;  %vm588_vm14 = vcmask 1039360  }
 0x1b0   :  { %445 = vst.msk [vmem:[#allocation2 + $0x18] sm:$0xff] %vm444_vm1, %v439_v24 }
 0x1b1   :  { %v468_v25 = vpop.permute.xlu1 %467  ;;  %v475_v26 = vpop.permute.xlu0 %474  ;;  %v3399_v39 = vld [vmem:[#allocation2 + $0x30] sm:$0xff] }
 0x1b2   :  { %473 = vst.msk [vmem:[#allocation2 + $0x50] sm:$0xff] %vm471_vm15, %v468_v25  ;;  %983 = vrot.lane.b32.xlu0 %v518_v22, %s3122_s2  ;;  %vm1169_vm15 = vcmask 736256  }
 0x1b3   :  { %481 = vst.msk [vmem:[#allocation2 + $0x20] sm:$0xff] %vm480_vm8, %v475_v26  ;;  %896 = vrot.lane.b32.xlu1 %v3348_v21, %s3123_s20 }
 0x1b4   :  { %490 = vst.msk [vmem:[#allocation2 + $0x20] sm:$0xff] %vm489_vm2, %v3325_v4 }
 0x1b5   :  { %499 = vst.msk [vmem:[#allocation2 + $0x20] sm:$0xff] %vm498_vm3, %v3330_v6  ;;  %v3367_v27 = vld [vmem:[#allocation2 + $0x40] sm:$0xff]  ;;  %v441_v28 = vpop.permute.xlu1 %440  ;;  %v448_v29 = vpop.permute.xlu0 %447 }
 0x1b6   :  { %536 = vst [vmem:[#allocation3 + $0x40] sm:$0xff] %v3367_v27  ;;  %446 = vst.msk [vmem:[#allocation2 + $0x48] sm:$0xff] %vm444_vm1, %v441_v28  ;;  %900 = vrot.lane.b32.xlu0 %v518_v22, %s3123_s20  ;;  %vm1735_vm1 = vcmask 154624  }
 0x1b7   :  { %454 = vst.msk [vmem:[#allocation2 + $0x18] sm:$0xff] %vm453_vm6, %v448_v29  ;;  %813 = vrot.lane.b32.xlu1 %v3348_v21, %s3124_s21 }
 0x1b9   :  { %v450_v30 = vpop.permute.xlu1 %449  ;;  %v457_v31 = vpop.permute.xlu0 %456 }
 0x1ba   :  { %455 = vst.msk [vmem:[#allocation2 + $0x48] sm:$0xff] %vm453_vm6, %v450_v30  ;;  %817 = vrot.lane.b32.xlu0 %v518_v22, %s3124_s21 }
 0x1bb   :  { %463 = vst.msk [vmem:[#allocation2 + $0x18] sm:$0xff] %vm462_vm7, %v457_v31  ;;  %730 = vrot.lane.b32.xlu1 %v3348_v21, %s3125_s22 }
 0x1bc   :  { %v3437_v41 = vld [vmem:[#allocation2 + $0x20] sm:$0xff] }
 0x1bd   :  { %v486_v32 = vpop.permute.xlu1 %485  ;;  %v382_v33 = vpop.permute.xlu0 %381 }
 0x1be   :  { %387 = vst.msk [vmem:[#allocation2 + $0x38] sm:$0xff] %vm385_vm5, %v382_v33  ;;  %734 = vrot.lane.b32.xlu0 %v518_v22, %s3125_s22  ;;  %vm1086_vm5 = vcmask 744448  }
 0x1bf   :  { %647 = vrot.lane.b32.xlu1 %v3348_v21, %s3109_s29 }
 0x1c1   :  { %v459_v34 = vpop.permute.xlu1 %458  ;;  %v391_v35 = vpop.permute.xlu0 %390 }
 0x1c2   :  { %464 = vst.msk [vmem:[#allocation2 + $0x48] sm:$0xff] %vm462_vm7, %v459_v34  ;;  %651 = vrot.lane.b32.xlu0 %v518_v22, %s3109_s29  ;;  %v3461_v42 = vld [vmem:[#allocation2 + $0x18] sm:$0xff] }
 0x1c3   :  { %396 = vst.msk [vmem:[#allocation2 + $0x38] sm:$0xff] %vm394_vm9, %v391_v35  ;;  %564 = vrot.lane.b32.xlu1 %v3348_v21, %s3126_s23  ;;  %vm1003_vm9 = vcmask 752640  }
 0x1c4   :  { %405 = vst.msk [vmem:[#allocation2 + $0x38] sm:$0xff] %vm403_vm10, %v3343_v17  ;;  %vm920_vm10 = vcmask 883712  }
 0x1c5   :  { %v495_v36 = vpop.permute.xlu1 %494  ;;  %v477_v37 = vpop.permute.xlu0 %476 }
 0x1c6   :  { %503 = vst.msk [vmem:[#allocation2 + $0x58] sm:$0xff] %vm500_vm4, %v495_v36  ;;  %568 = vrot.lane.b32.xlu0 %v518_v22, %s3126_s23 }
 0x1c7   :  { %482 = vst.msk [vmem:[#allocation2 + $0x50] sm:$0xff] %vm480_vm8, %v477_v37  ;;  %1145 = vrot.lane.b32.xlu1 %v3348_v21, %s3127_s24  ;;  %vm1758_vm8 = vcmask 1047704  }
 0x1c8   :  { %491 = vst.msk [vmem:[#allocation2 + $0x50] sm:$0xff] %vm489_vm2, %v486_v32  ;;  %vm1764_vm2 = vcmask 220160  }
 0x1c9   :  { %502 = vst.msk [vmem:[#allocation2 + $0x50] sm:$0xff] %vm498_vm3, %v495_v36  ;;  %v3588_v3 = vld [vmem:[#allocation2 + $0x48] sm:$0xff] }
 0x1ca   :  { %1149 = vrot.lane.b32.xlu0 %v518_v22, %s3127_s24  ;;  %4904 = vst [vmem:[#allocation12_spill] sm:$0xff] %v3588_v3 }
 0x1cb   :  { %1072 = vrot.lane.b32.xlu1 %v3337_v10, %s3121_s17  ;;  %v3499_v46 = vld [vmem:[#allocation2 + $0x38] sm:$0xff] }
 0x1cd   :  { %v3397_v38 = vld [vmem:[#allocation2 + $0x58] sm:$0xff] }
 0x1ce   :  { %539 = vst.msk [vmem:[#allocation3 + $0x58] sm:$0xff] %vm500_vm4, %v3397_v38  ;;  %1074 = vrot.lane.b32.xlu0 %v3399_v39, %s3121_s17 }
 0x1cf   :  { %989 = vrot.lane.b32.xlu1 %v3337_v10, %s3122_s2 }
 0x1d0   :  { %v3570_v62 = vld [vmem:[#allocation2 + $0x50] sm:$0xff] }
 0x1d1   :  { %4903 = vst [vmem:[#allocation11_spill] sm:$0xff] %v3570_v62 }
 0x1d2   :  { %991 = vrot.lane.b32.xlu0 %v3399_v39, %s3122_s2 }
 0x1d3   :  { %906 = vrot.lane.b32.xlu1 %v3337_v10, %s3123_s20 }
 0x1d6   :  { %908 = vrot.lane.b32.xlu0 %v3399_v39, %s3123_s20 }
 0x1d7   :  { %823 = vrot.lane.b32.xlu1 %v3337_v10, %s3124_s21 }
 0x1da   :  { %825 = vrot.lane.b32.xlu0 %v3399_v39, %s3124_s21 }
 0x1db   :  { %740 = vrot.lane.b32.xlu1 %v3337_v10, %s3125_s22 }
 0x1de   :  { %742 = vrot.lane.b32.xlu0 %v3399_v39, %s3125_s22 }
 0x1df   :  { %657 = vrot.lane.b32.xlu1 %v3337_v10, %s3109_s29 }
 0x1e2   :  { %659 = vrot.lane.b32.xlu0 %v3399_v39, %s3109_s29 }
 0x1e3   :  { %1064 = vrot.lane.b32.xlu1 %v3425_v40, %s3121_s17 }
 0x1e6   :  { %576 = vrot.lane.b32.xlu0 %v3399_v39, %s3126_s23 }
 0x1e7   :  { %981 = vrot.lane.b32.xlu1 %v3425_v40, %s3122_s2 }
 0x1ea   :  { %1157 = vrot.lane.b32.xlu0 %v3399_v39, %s3127_s24 }
 0x1eb   :  { %898 = vrot.lane.b32.xlu1 %v3425_v40, %s3123_s20 }
 0x1ee   :  { %1070 = vrot.lane.b32.xlu0 %v3437_v41, %s3121_s17 }
 0x1ef   :  { %815 = vrot.lane.b32.xlu1 %v3425_v40, %s3124_s21 }
 0x1f2   :  { %987 = vrot.lane.b32.xlu0 %v3437_v41, %s3122_s2 }
 0x1f3   :  { %732 = vrot.lane.b32.xlu1 %v3425_v40, %s3125_s22 }
 0x1f6   :  { %904 = vrot.lane.b32.xlu0 %v3437_v41, %s3123_s20 }
 0x1f7   :  { %649 = vrot.lane.b32.xlu1 %v3425_v40, %s3109_s29 }
 0x1fa   :  { %821 = vrot.lane.b32.xlu0 %v3437_v41, %s3124_s21 }
 0x1fb   :  { %566 = vrot.lane.b32.xlu1 %v3425_v40, %s3126_s23 }
 0x1fe   :  { %738 = vrot.lane.b32.xlu0 %v3437_v41, %s3125_s22 }
 0x1ff   :  { %1147 = vrot.lane.b32.xlu1 %v3425_v40, %s3127_s24 }
 0x202   :  { %655 = vrot.lane.b32.xlu0 %v3437_v41, %s3109_s29 }
 0x203   :  { %1068 = vrot.lane.b32.xlu1 %v3461_v42, %s3121_s17 }
 0x206   :  { %572 = vrot.lane.b32.xlu0 %v3437_v41, %s3126_s23 }
 0x207   :  { %985 = vrot.lane.b32.xlu1 %v3461_v42, %s3122_s2 }
 0x20a   :  { %1084 = vrot.lane.b32.xlu0 %v3397_v38, %s3121_s17 }
 0x20b   :  { %902 = vrot.lane.b32.xlu1 %v3461_v42, %s3123_s20 }
 0x20e   :  { %1001 = vrot.lane.b32.xlu0 %v3397_v38, %s3122_s2 }
 0x20f   :  { %819 = vrot.lane.b32.xlu1 %v3461_v42, %s3124_s21 }
 0x212   :  { %918 = vrot.lane.b32.xlu0 %v3397_v38, %s3123_s20 }
 0x213   :  { %736 = vrot.lane.b32.xlu1 %v3461_v42, %s3125_s22 }
 0x216   :  { %835 = vrot.lane.b32.xlu0 %v3397_v38, %s3124_s21 }
 0x217   :  { %653 = vrot.lane.b32.xlu1 %v3461_v42, %s3109_s29 }
 0x21a   :  { %752 = vrot.lane.b32.xlu0 %v3397_v38, %s3125_s22 }
 0x21b   :  { %570 = vrot.lane.b32.xlu1 %v3461_v42, %s3126_s23 }
 0x21d   :  { %v3489_v43 = vpop.permute.xlu1 %1062 }
 0x21e   :  { %669 = vrot.lane.b32.xlu0 %v3397_v38, %s3109_s29 }
 0x21f   :  { %1078 = vrot.lane.b32.xlu1 %v3367_v27, %s3121_s17 }
 0x220   :  { %v3495_v44 = vpop.permute.xlu0 %1066 }
 0x221   :  { %v3497_v45 = vpop.permute.xlu1 %979 }
 0x222   :  { %1076 = vrot.lane.b32.xlu0 %v3499_v46, %s3121_s17 }
 0x223   :  { %995 = vrot.lane.b32.xlu1 %v3367_v27, %s3122_s2 }
 0x224   :  { %v3505_v47 = vpop.permute.xlu0 %983 }
 0x225   :  { %v3507_v48 = vpop.permute.xlu1 %896 }
 0x226   :  { %993 = vrot.lane.b32.xlu0 %v3499_v46, %s3122_s2 }
 0x227   :  { %912 = vrot.lane.b32.xlu1 %v3367_v27, %s3123_s20 }
 0x228   :  { %v3513_v49 = vpop.permute.xlu0 %900 }
 0x229   :  { %v3515_v50 = vpop.permute.xlu1 %813 }
 0x22a   :  { %910 = vrot.lane.b32.xlu0 %v3499_v46, %s3123_s20 }
 0x22b   :  { %829 = vrot.lane.b32.xlu1 %v3367_v27, %s3124_s21 }
 0x22c   :  { %v3521_v51 = vpop.permute.xlu0 %817 }
 0x22d   :  { %v3523_v52 = vpop.permute.xlu1 %730 }
 0x22e   :  { %827 = vrot.lane.b32.xlu0 %v3499_v46, %s3124_s21 }
 0x22f   :  { %746 = vrot.lane.b32.xlu1 %v3367_v27, %s3125_s22 }
 0x230   :  { %v3529_v53 = vpop.permute.xlu0 %734 }
 0x231   :  { %v3531_v54 = vpop.permute.xlu1 %647 }
 0x232   :  { %744 = vrot.lane.b32.xlu0 %v3499_v46, %s3125_s22 }
 0x233   :  { %663 = vrot.lane.b32.xlu1 %v3367_v27, %s3109_s29 }
 0x234   :  { %v3537_v55 = vpop.permute.xlu0 %651 }
 0x235   :  { %v3539_v56 = vpop.permute.xlu1 %564 }
 0x236   :  { %661 = vrot.lane.b32.xlu0 %v3499_v46, %s3109_s29 }
 0x237   :  { %580 = vrot.lane.b32.xlu1 %v3367_v27, %s3126_s23 }
 0x238   :  { %v3545_v57 = vpop.permute.xlu0 %568 }
 0x239   :  { %v3547_v58 = vpop.permute.xlu1 %1145 }
 0x23a   :  { %578 = vrot.lane.b32.xlu0 %v3499_v46, %s3126_s23 }
 0x23b   :  { %1161 = vrot.lane.b32.xlu1 %v3367_v27, %s3127_s24 }
 0x23c   :  { %v3562_v60 = vpop.permute.xlu0 %1149 }
 0x23d   :  { %v3564_v61 = vpop.permute.xlu1 %1072 }
 0x23e   :  { %1114 = vst.msk [vmem:[#allocation3 + $0x2c8] sm:$0xff] %vm500_vm4, %v3564_v61  ;;  %586 = vrot.lane.b32.xlu0 %v3397_v38, %s3126_s23 }
 0x23f   :  { %1082 = vrot.lane.b32.xlu1 %v3570_v62, %s3121_s17 }
 0x240   :  { %v3574_v63 = vpop.permute.xlu0 %1074 }
 0x241   :  { %v3576_v0 = vpop.permute.xlu1 %989 }
 0x242   :  { %1031 = vst.msk [vmem:[#allocation3 + $0x268] sm:$0xff] %vm500_vm4, %v3576_v0  ;;  %1159 = vrot.lane.b32.xlu0 %v3499_v46, %s3127_s24 }
 0x243   :  { %999 = vrot.lane.b32.xlu1 %v3570_v62, %s3122_s2 }
 0x244   :  { %v3584_v1 = vpop.permute.xlu0 %991 }
 0x245   :  { %v3586_v2 = vpop.permute.xlu1 %906 }
 0x246   :  { %948 = vst.msk [vmem:[#allocation3 + $0x208] sm:$0xff] %vm500_vm4, %v3586_v2  ;;  %1080 = vrot.lane.b32.xlu0 %v3588_v3, %s3121_s17 }
 0x247   :  { %916 = vrot.lane.b32.xlu1 %v3570_v62, %s3123_s20 }
 0x248   :  { %v3596_v4 = vpop.permute.xlu0 %908 }
 0x249   :  { %v3598_v5 = vpop.permute.xlu1 %823 }
 0x24a   :  { %865 = vst.msk [vmem:[#allocation3 + $0x1a8] sm:$0xff] %vm500_vm4, %v3598_v5  ;;  %997 = vrot.lane.b32.xlu0 %v3588_v3, %s3122_s2 }
 0x24b   :  { %833 = vrot.lane.b32.xlu1 %v3570_v62, %s3124_s21 }
 0x24c   :  { %v3606_v6 = vpop.permute.xlu0 %825 }
 0x24d   :  { %v3608_v7 = vpop.permute.xlu1 %740 }
 0x24e   :  { %782 = vst.msk [vmem:[#allocation3 + $0x148] sm:$0xff] %vm500_vm4, %v3608_v7  ;;  %914 = vrot.lane.b32.xlu0 %v3588_v3, %s3123_s20 }
 0x24f   :  { %750 = vrot.lane.b32.xlu1 %v3570_v62, %s3125_s22 }
 0x250   :  { %v3616_v8 = vpop.permute.xlu0 %742 }
 0x251   :  { %v3618_v9 = vpop.permute.xlu1 %657 }
 0x252   :  { %4905 = vst [vmem:[#allocation13_spill] sm:$0xff] %v3618_v9  ;;  %699 = vst.msk [vmem:[#allocation3 + $0xe8] sm:$0xff] %vm500_vm4, %v3618_v9  ;;  %831 = vrot.lane.b32.xlu0 %v3588_v3, %s3124_s21 }
 0x253   :  { %667 = vrot.lane.b32.xlu1 %v3570_v62, %s3109_s29 }
 0x254   :  { %v3626_v11 = vpop.permute.xlu0 %659 }
 0x255   :  { %v1065_v12 = vpop.permute.xlu1 %1064 }
 0x256   :  { %748 = vrot.lane.b32.xlu0 %v3588_v3, %s3125_s22 }
 0x257   :  { %584 = vrot.lane.b32.xlu1 %v3570_v62, %s3126_s23 }
 0x258   :  { %v3632_v13 = vpop.permute.xlu0 %576 }
 0x259   :  { %v3634_v14 = vpop.permute.xlu1 %981 }
 0x25a   :  { %665 = vrot.lane.b32.xlu0 %v3588_v3, %s3109_s29 }
 0x25b   :  { %574 = vrot.lane.b32.xlu1 %v3337_v10, %s3126_s23 }
 0x25c   :  { %v3640_v15 = vpop.permute.xlu0 %1157 }
 0x25d   :  { %v3642_v16 = vpop.permute.xlu1 %898 }
 0x25e   :  { %582 = vrot.lane.b32.xlu0 %v3588_v3, %s3126_s23 }
 0x25f   :  { %1165 = vrot.lane.b32.xlu1 %v3570_v62, %s3127_s24 }
 0x260   :  { %v3648_v17 = vpop.permute.xlu0 %1070 }
 0x261   :  { %v3650_v18 = vpop.permute.xlu1 %815 }
 0x262   :  { %1151 = vrot.lane.b32.xlu0 %v3461_v42, %s3127_s24 }
 0x263   :  { %1153 = vrot.lane.b32.xlu1 %v3437_v41, %s3127_s24 }
 0x264   :  { %v3656_v19 = vpop.permute.xlu0 %987 }
 0x265   :  { %v3658_v20 = vpop.permute.xlu1 %732 }
 0x266   :  { %1163 = vrot.lane.b32.xlu0 %v3588_v3, %s3127_s24 }
 0x267   :  { %1155 = vrot.lane.b32.xlu1 %v3337_v10, %s3127_s24 }
 0x268   :  { %v3664_v21 = vpop.permute.xlu0 %904 }
 0x269   :  { %v3666_v22 = vpop.permute.xlu1 %649 }
 0x26a   :  { %1167 = vrot.lane.b32.xlu0 %v3397_v38, %s3127_s24 }
 0x26c   :  { %v3670_v23 = vpop.permute.xlu0 %821 }
 0x26d   :  { %v3672_v24 = vpop.permute.xlu1 %566 }
 0x270   :  { %v3674_v25 = vpop.permute.xlu0 %738 }
 0x271   :  { %v3676_v26 = vpop.permute.xlu1 %1147 }
 0x274   :  { %v3678_v27 = vpop.permute.xlu0 %655 }
 0x275   :  { %4906 = vst [vmem:[#allocation14_spill] sm:$0xff] %v3678_v27  ;;  %v3680_v28 = vpop.permute.xlu1 %1068 }
 0x278   :  { %v3682_v10 = vpop.permute.xlu0 %572 }
 0x279   :  { %4907 = vst [vmem:[#allocation15_spill] sm:$0xff] %v3682_v10  ;;  %v3684_v29 = vpop.permute.xlu1 %985 }
 0x27c   :  { %v3686_v30 = vpop.permute.xlu0 %1084 }
 0x27d   :  { %1120 = vst.msk [vmem:[#allocation3 + $0x2f8] sm:$0xff] %vm500_vm4, %v3686_v30  ;;  %v3690_v31 = vpop.permute.xlu1 %902 }
 0x280   :  { %v3692_v32 = vpop.permute.xlu0 %1001 }
 0x281   :  { %1037 = vst.msk [vmem:[#allocation3 + $0x298] sm:$0xff] %vm500_vm4, %v3692_v32  ;;  %v3696_v33 = vpop.permute.xlu1 %819 }
 0x284   :  { %v3698_v34 = vpop.permute.xlu0 %918 }
 0x285   :  { %954 = vst.msk [vmem:[#allocation3 + $0x238] sm:$0xff] %vm500_vm4, %v3698_v34  ;;  %v3702_v35 = vpop.permute.xlu1 %736 }
 0x288   :  { %v3704_v36 = vpop.permute.xlu0 %835 }
 0x289   :  { %871 = vst.msk [vmem:[#allocation3 + $0x1d8] sm:$0xff] %vm500_vm4, %v3704_v36  ;;  %v3708_v37 = vpop.permute.xlu1 %653 }
 0x28a   :  { %4908 = vst [vmem:[#allocation16_spill] sm:$0xff] %v3708_v37 }
 0x28c   :  { %v3710_v38 = vpop.permute.xlu0 %752 }
 0x28d   :  { %788 = vst.msk [vmem:[#allocation3 + $0x178] sm:$0xff] %vm500_vm4, %v3710_v38  ;;  %v3714_v41 = vpop.permute.xlu1 %570 }
 0x28e   :  { %4909 = vst [vmem:[#allocation17_spill] sm:$0xff] %v3714_v41  ;;  %v1088_v41 = vsel %vm1086_vm5, %v1065_v12, %v3495_v44 }
 0x290   :  { %v3716_v42 = vpop.permute.xlu0 %669 }
 0x291   :  { %4910 = vst [vmem:[#allocation18_spill] sm:$0xff] %v3716_v42  ;;  %705 = vst.msk [vmem:[#allocation3 + $0x118] sm:$0xff] %vm500_vm4, %v3716_v42  ;;  %v3720_v59 = vpop.permute.xlu1 %1078  ;;  %v1087_v42 = vsel %vm1086_vm5, %v3489_v43, %v1065_v12  ;;  %v1004_v43 = vsel %vm1003_vm9, %v3497_v45, %v3634_v14  ;;  %v921_v45 = vsel %vm920_vm10, %v3507_v48, %v3642_v16 }
 0x292   :  { %v838_v48 = vsel %vm837_vm11, %v3515_v50, %v3650_v18  ;;  %v755_v50 = vsel %vm754_vm12, %v3523_v52, %v3658_v20  ;;  %v672_v52 = vsel %vm671_vm13, %v3531_v54, %v3666_v22  ;;  %v589_v54 = vsel %vm588_vm14, %v3539_v56, %v3672_v24 }
 0x294   :  { %v1077_v62 = vpop.permute.xlu0 %1076 }
 0x295   :  { %v1092_v3 = vsel %vm1086_vm5, %v3574_v63, %v1077_v62  ;;  %v1093_v10 = vsel %vm1086_vm5, %v1077_v62, %v3720_v59  ;;  %v3726_v9 = vpop.permute.xlu1 %995 }
 0x296   :  { %1322 = vmatprep.subr.mxu1 %v1093_v10 }
 0x297   :  { %1323 = vmatpush1.msra.mxu1 %v1092_v3  ;;  %v1005_v3 = vsel %vm1003_vm9, %v3634_v14, %v3505_v47 }
 0x298   :  { %v994_v37 = vpop.permute.xlu0 %993  ;;  %1324 = vmatprep.subr.mxu1 %v1088_v41 }
 0x299   :  { %v1009_v27 = vsel %vm1003_vm9, %v3584_v1, %v994_v37  ;;  %v1010_v63 = vsel %vm1003_vm9, %v994_v37, %v3726_v9  ;;  %v3736_v62 = vpop.permute.xlu1 %912  ;;  %1325 = vmatpush1.msra.mxu1 %v1087_v42 }
 0x29a   :  { %1326 = vmatprep.subr.mxu1 %v1010_v63  ;;  %v839_v63 = vsel %vm837_vm11, %v3650_v18, %v3521_v51 }
 0x29b   :  { %1327 = vmatpush1.msra.mxu1 %v1009_v27  ;;  %v922_v27 = vsel %vm920_vm10, %v3642_v16, %v3513_v49 }
 0x29c   :  { %v911_v12 = vpop.permute.xlu0 %910  ;;  %1328 = vmatprep.subr.mxu1 %v1005_v3 }
 0x29d   :  { %v926_v1 = vsel %vm920_vm10, %v3596_v4, %v911_v12  ;;  %v927_v10 = vsel %vm920_vm10, %v911_v12, %v3736_v62  ;;  %v3748_v37 = vpop.permute.xlu1 %829  ;;  %1329 = vmatpush1.msra.mxu1 %v1004_v43  ;;  %v756_v12 = vsel %vm754_vm12, %v3658_v20, %v3529_v53 }
 0x29e   :  { %1330 = vmatprep.subr.mxu1 %v927_v10 }
 0x29f   :  { %1331 = vmatpush1.msra.mxu1 %v926_v1 }
 0x2a0   :  { %v828_v14 = vpop.permute.xlu0 %827  ;;  %1332 = vmatprep.subr.mxu1 %v922_v27  ;;  %v673_v27 = vsel %vm671_vm13, %v3666_v22, %v3537_v55 }
 0x2a1   :  { %v843_v4 = vsel %vm837_vm11, %v3606_v6, %v828_v14  ;;  %v844_v41 = vsel %vm837_vm11, %v828_v14, %v3748_v37  ;;  %v3760_v42 = vpop.permute.xlu1 %746  ;;  %1333 = vmatpush1.msra.mxu1 %v921_v45 }
 0x2a2   :  { %1334 = vmatprep.subr.mxu1 %v844_v41 }
 0x2a3   :  { %1335 = vmatpush1.msra.mxu1 %v843_v4  ;;  %v590_v4 = vsel %vm588_vm14, %v3672_v24, %v3545_v57 }
 0x2a4   :  { %v745_v16 = vpop.permute.xlu0 %744  ;;  %1336 = vmatprep.subr.mxu1 %v839_v63  ;;  %v516_v63 = vld [vmem:[#allocation2] sm:$0xff] }
 0x2a5   :  { %v760_v6 = vsel %vm754_vm12, %v3616_v8, %v745_v16  ;;  %v761_v3 = vsel %vm754_vm12, %v745_v16, %v3760_v42  ;;  %v3772_v43 = vpop.permute.xlu1 %663  ;;  %1337 = vmatpush1.msra.mxu1 %v838_v48 }
 0x2a6   :  { %1338 = vmatprep.subr.mxu1 %v761_v3 }
 0x2a7   :  { %1339 = vmatpush1.msra.mxu1 %v760_v6 }
 0x2a8   :  { %v662_v18 = vpop.permute.xlu0 %661  ;;  %1340 = vmatprep.subr.mxu1 %v756_v12  ;;  %v1303_v12 = vld [vmem:[#allocation3 + $0x2f8] sm:$0xff] }
 0x2a9   :  { %v677_v8 = vsel %vm671_vm13, %v3626_v11, %v662_v18  ;;  %v678_v1 = vsel %vm671_vm13, %v662_v18, %v3772_v43  ;;  %v3784_v10 = vpop.permute.xlu1 %580  ;;  %1341 = vmatpush1.msra.mxu1 %v755_v50  ;;  %v1297_v18 = vld [vmem:[#allocation3 + $0x2c8] sm:$0xff] }
 0x2aa   :  { %1342 = vmatprep.subr.mxu1 %v678_v1 }
 0x2ab   :  { %1343 = vmatpush1.msra.mxu1 %v677_v8  ;;  %v1091_v8 = vsel %vm1086_vm5, %v3648_v17, %v3564_v61  ;;  %v1006_v61 = vsel %vm1003_vm9, %v3505_v47, %v3684_v29  ;;  %v924_v47 = vsel %vm920_vm10, %v3690_v31, %v3664_v21 }
 0x2ac   :  { %v579_v20 = vpop.permute.xlu0 %578  ;;  %1344 = vmatprep.subr.mxu1 %v673_v27 }
 0x2ad   :  { %v594_v11 = vsel %vm588_vm14, %v3632_v13, %v579_v20  ;;  %v595_v45 = vsel %vm588_vm14, %v579_v20, %v3784_v10  ;;  %v3796_v14 = vpop.permute.xlu1 %1161  ;;  %1345 = vmatpush1.msra.mxu1 %v672_v52  ;;  %v1291_v52 = vld [vmem:[#allocation3 + $0x298] sm:$0xff]  ;;  %v1008_v20 = vsel %vm1003_vm9, %v3656_v19, %v3576_v0  ;;  %v923_v0 = vsel %vm920_vm10, %v3513_v49, %v3690_v31 }
 0x2ae   :  { %1346 = vmatprep.subr.mxu1 %v595_v45  ;;  %v841_v49 = vsel %vm837_vm11, %v3696_v33, %v3670_v23 }
 0x2af   :  { %1347 = vmatpush1.msra.mxu1 %v594_v11 }
 0x2b0   :  { %v3804_v22 = vpop.permute.xlu0 %586  ;;  %1348 = vmatprep.subr.mxu1 %v590_v4  ;;  %v1279_v4 = vld [vmem:[#allocation3 + $0x238] sm:$0xff] }
 0x2b1   :  { %622 = vst.msk [vmem:[#allocation3 + $0xb8] sm:$0xff] %vm500_vm4, %v3804_v22  ;;  %v1083_v13 = vpop.permute.xlu1 %1082  ;;  %1349 = vmatpush1.msra.mxu1 %v589_v54  ;;  %v925_v54 = vsel %vm920_vm10, %v3664_v21, %v3586_v2  ;;  %v840_v2 = vsel %vm837_vm11, %v3521_v51, %v3696_v33  ;;  %v758_v51 = vsel %vm754_vm12, %v3702_v35, %v3674_v25 }
 0x2b2   :  { %1350 = vmatprep.subr.mxu1 %v3499_v46  ;;  %v1171_v46 = vsel %vm1169_vm15, %v3676_v26, %v3562_v60 }
 0x2b3   :  { %1351 = vmatpush1.msra.mxu1 %v3399_v39  ;;  %v1170_v39 = vsel %vm1169_vm15, %v3547_v58, %v3676_v26  ;;  %v1090_v58 = vsel %vm1086_vm5, %v3680_v28, %v3648_v17  ;;  %v1096_v26 = vsel %vm1086_vm5, %v1083_v13, %v3686_v30  ;;  %v1285_v17 = vld [vmem:[#allocation3 + $0x268] sm:$0xff] }
 0x2b4   :  { %v1160_v41 = vpop.permute.xlu0 %1159  ;;  %1352 = vmatprep.subr.mxu1 %v3425_v40 }
 0x2b5   :  { %v1175_v56 = vsel %vm1169_vm15, %v3640_v15, %v1160_v41  ;;  %v1176_v24 = vsel %vm1169_vm15, %v1160_v41, %v3796_v14  ;;  %v1000_v48 = vpop.permute.xlu1 %999  ;;  %1353 = vmatpush1.msra.mxu1 %v516_v63  ;;  %v3824_v15 = vld [vmem:[%s4878_s3] sm:$0xff]  ;;  %v1267_v63 = vld [vmem:[#allocation3 + $0x1d8] sm:$0xff] }
 0x2b6   :  { %1382 = vmatprep.subr.mxu1 %v1176_v24 }
 0x2b7   :  { %1383 = vmatpush2.msra.mxu1 %v1175_v56  ;;  %v842_v56 = vsel %vm837_vm11, %v3670_v23, %v3598_v5  ;;  %v757_v5 = vsel %vm754_vm12, %v3529_v53, %v3702_v35  ;;  %v1243_v53 = vld [vmem:[#allocation3 + $0x118] sm:$0xff]  ;;  %v4911_v35 = vld [vmem:[#allocation14_spill] sm:$0xff] }
 0x2b8   :  { %v1081_v40 = vpop.permute.xlu0 %1080  ;;  %1384 = vmatprep.subr.mxu1 %v1171_v46  ;;  %v1255_v46 = vld [vmem:[#allocation3 + $0x178] sm:$0xff] }
 0x2b9   :  { %v1094_v16 = vsel %vm1086_vm5, %v3720_v59, %v1081_v40  ;;  %v1095_v6 = vsel %vm1086_vm5, %v1081_v40, %v1083_v13  ;;  %v917_v3 = vpop.permute.xlu1 %916  ;;  %1385 = vmatpush2.msra.mxu1 %v1170_v39  ;;  %v1089_v59 = vsel %vm1086_vm5, %v3495_v44, %v3680_v28  ;;  %v1007_v44 = vsel %vm1003_vm9, %v3684_v29, %v3656_v19 }
 0x2ba   :  { %1399 = vmatprep.subr.mxu0 %v1095_v6  ;;  %1476 = vmatprep.subr.mxu1 %v1303_v12  ;;  %v1013_v28 = vsel %vm1003_vm9, %v1000_v48, %v3692_v32  ;;  %v930_v29 = vsel %vm920_vm10, %v917_v3, %v3698_v34  ;;  %v759_v39 = vsel %vm754_vm12, %v3674_v25, %v3608_v7  ;;  %v4912_v6 = vld [vmem:[#allocation16_spill] sm:$0xff]  ;;  %v4913_v12 = vld [vmem:[#allocation18_spill] sm:$0xff] }
 0x2bb   :  { %1387 = vmatmul.mubr.f32.vlgmr.msra.gmra.mxu1 %v3824_v15  ;;  %1400 = vmatpush1.msra.mxu0 %v1094_v16  ;;  %v674_v25 = vsel %vm671_vm13, %v3537_v55, %v4912_v6  ;;  %v1207_v55 = vld [vmem:[%s4878_s3 + $0x18] sm:$0xff] }
 0x2bc   :  { %v998_v50 = vpop.permute.xlu0 %997  ;;  %1477 = vmatpush1.msra.mxu1 %v1096_v26  ;;  %1401 = vmatprep.subr.mxu0 %v1090_v58  ;;  %v1237_v58 = vld [vmem:[#allocation3 + $0xe8] sm:$0xff]  ;;  %v4914_v26 = vld [vmem:[#allocation13_spill] sm:$0xff] }
 0x2bd   :  { %v1011_v1 = vsel %vm1003_vm9, %v3726_v9, %v998_v50  ;;  %v1012_v30 = vsel %vm1003_vm9, %v998_v50, %v1000_v48  ;;  %v834_v27 = vpop.permute.xlu1 %833  ;;  %1478 = vmatprep.subr.mxu1 %v1297_v18  ;;  %1402 = vmatpush1.msra.mxu0 %v1089_v59  ;;  %v676_v59 = vsel %vm671_vm13, %v4911_v35, %v4914_v26 }
 0x2be   :  { %1479 = vmatpush1.msra.mxu1 %v1091_v8  ;;  %1403 = vmatprep.subr.mxu0 %v1012_v30  ;;  %v847_v31 = vsel %vm837_vm11, %v834_v27, %v3704_v36  ;;  %v4915_v30 = vld [vmem:[#allocation15_spill] sm:$0xff] }
 0x2bf   :  { %1480 = vmatprep.subr.mxu1 %v1291_v52  ;;  %1404 = vmatpush1.msra.mxu0 %v1011_v1  ;;  %v1231_v1 = vld [vmem:[#allocation3 + $0xb8] sm:$0xff] }
 0x2c0   :  { %v915_v9 = vpop.permute.xlu0 %914  ;;  %1481 = vmatpush1.msra.mxu1 %v1013_v28  ;;  %1405 = vmatprep.subr.mxu0 %v1007_v44 }
 0x2c1   :  { %v928_v11 = vsel %vm920_vm10, %v3736_v62, %v915_v9  ;;  %v929_v45 = vsel %vm920_vm10, %v915_v9, %v917_v3  ;;  %v751_v32 = vpop.permute.xlu1 %750  ;;  %1482 = vmatprep.subr.mxu1 %v1285_v17  ;;  %1406 = vmatpush1.msra.mxu0 %v1006_v61  ;;  %v1273_v62 = vld [vmem:[#allocation3 + $0x208] sm:$0xff]  ;;  %v675_v3 = vsel %vm671_vm13, %v4912_v6, %v4911_v35 }
 0x2c2   :  { %1483 = vmatpush1.msra.mxu1 %v1008_v20  ;;  %1407 = vmatprep.subr.mxu0 %v929_v45  ;;  %v764_v33 = vsel %vm754_vm12, %v751_v32, %v3710_v38  ;;  %v4917_v20 = vld [vmem:[#allocation12_spill] sm:$0xff]  ;;  %v519_v45 = vld [vmem:[#allocation2 + $0x18] sm:$0xff] }
 0x2c3   :  { %1484 = vmatprep.subr.mxu1 %v1279_v4  ;;  %1408 = vmatpush1.msra.mxu0 %v928_v11  ;;  %v1219_v11 = vld [vmem:[#allocation3 + $0x58] sm:$0xff] }
 0x2c4   :  { %v832_v19 = vpop.permute.xlu0 %831  ;;  %1485 = vmatpush1.msra.mxu1 %v930_v29  ;;  %1409 = vmatprep.subr.mxu0 %v924_v47 }
 0x2c5   :  { %v845_v13 = vsel %vm837_vm11, %v3748_v37, %v832_v19  ;;  %v846_v41 = vsel %vm837_vm11, %v832_v19, %v834_v27  ;;  %v668_v34 = vpop.permute.xlu1 %667  ;;  %1486 = vmatprep.subr.mxu1 %v1273_v62  ;;  %1410 = vmatpush1.msra.mxu0 %v923_v0  ;;  %v1261_v37 = vld [vmem:[#allocation3 + $0x1a8] sm:$0xff]  ;;  %v4916_v27 = vld [vmem:[#allocation17_spill] sm:$0xff]  ;;  %v1206_v62 = vld [vmem:[%s4878_s3 + $0x10] sm:$0xff] }
 0x2c6   :  { %1487 = vmatpush1.msra.mxu1 %v925_v54  ;;  %1411 = vmatprep.subr.mxu0 %v846_v41  ;;  %v681_v7 = vsel %vm671_vm13, %v668_v34, %v4913_v12  ;;  %v592_v52 = vsel %vm588_vm14, %v4916_v27, %v4915_v30  ;;  %v4918_v0 = vld [vmem:[#allocation11_spill] sm:$0xff]  ;;  %v520_v54 = vld [vmem:[#allocation2 + $0x20] sm:$0xff] }
 0x2c7   :  { %1488 = vmatprep.subr.mxu1 %v1267_v63  ;;  %1412 = vmatpush1.msra.mxu0 %v845_v13  ;;  %v1213_v19 = vld [vmem:[#allocation3 + $0x28] sm:$0xff] }
 0x2c8   :  { %v749_v21 = vpop.permute.xlu0 %748  ;;  %1489 = vmatpush1.msra.mxu1 %v847_v31  ;;  %1413 = vmatprep.subr.mxu0 %v841_v49 }
 0x2c9   :  { %v762_v24 = vsel %vm754_vm12, %v3760_v42, %v749_v21  ;;  %v763_v48 = vsel %vm754_vm12, %v749_v21, %v751_v32  ;;  %v585_v36 = vpop.permute.xlu1 %584  ;;  %1490 = vmatprep.subr.mxu1 %v1261_v37  ;;  %1414 = vmatpush1.msra.mxu0 %v840_v2  ;;  %v1249_v42 = vld [vmem:[#allocation3 + $0x148] sm:$0xff]  ;;  %v1210_v32 = vld [vmem:[#allocation3 + $0x10] sm:$0xff] }
 0x2ca   :  { %1491 = vmatpush1.msra.mxu1 %v842_v56  ;;  %1415 = vmatprep.subr.mxu0 %v763_v48  ;;  %v598_v44 = vsel %vm588_vm14, %v585_v36, %v3804_v22  ;;  %v1216_v22 = vld [vmem:[#allocation3 + $0x40] sm:$0xff]  ;;  %v3968_v48 = vld [vmem:[%s4884_s9 + $0x38] sm:$0xff] }
 0x2cb   :  { %1492 = vmatprep.subr.mxu1 %v1255_v46  ;;  %1416 = vmatpush1.msra.mxu0 %v762_v24  ;;  %v3953_v56 = vld [vmem:[%s4884_s9] sm:$0xff]  ;;  %v3958_v24 = vld [vmem:[%s4884_s9 + $0x8] sm:$0xff] }
 0x2cc   :  { %v666_v23 = vpop.permute.xlu0 %665  ;;  %1493 = vmatpush1.msra.mxu1 %v764_v33  ;;  %1417 = vmatprep.subr.mxu0 %v758_v51  ;;  %v3973_v51 = vld [vmem:[%s4884_s9 + $0x10] sm:$0xff] }
 0x2cd   :  { %v679_v40 = vsel %vm671_vm13, %v3772_v43, %v666_v23  ;;  %v680_v16 = vsel %vm671_vm13, %v666_v23, %v668_v34  ;;  %v575_v38 = vpop.permute.xlu1 %574  ;;  %1494 = vmatprep.subr.mxu1 %v1249_v42  ;;  %1418 = vmatpush1.msra.mxu0 %v757_v5  ;;  %v4919_v34 = vld [vmem:[#allocation10_spill] sm:$0xff] }
 0x2ce   :  { %616 = vst.msk [vmem:[#allocation3 + $0x88] sm:$0xff] %vm500_vm4, %v575_v38  ;;  %1495 = vmatpush1.msra.mxu1 %v759_v39  ;;  %1419 = vmatprep.subr.mxu0 %v680_v16  ;;  %v593_v17 = vsel %vm588_vm14, %v4915_v30, %v575_v38  ;;  %v3993_v16 = vld [vmem:[%s4884_s9 + $0x40] sm:$0xff] }
 0x2cf   :  { %1496 = vmatprep.subr.mxu1 %v1243_v53  ;;  %1420 = vmatpush1.msra.mxu0 %v679_v40  ;;  %v3998_v53 = vld [vmem:[%s4884_s9 + $0x18] sm:$0xff] }
 0x2d0   :  { %v583_v43 = vpop.permute.xlu0 %582  ;;  %1497 = vmatpush1.msra.mxu1 %v681_v7  ;;  %1421 = vmatprep.subr.mxu0 %v675_v3 }
 0x2d1   :  { %v596_v50 = vsel %vm588_vm14, %v3784_v10, %v583_v43  ;;  %v597_v18 = vsel %vm588_vm14, %v583_v43, %v585_v36  ;;  %v1166_v8 = vpop.permute.xlu1 %1165  ;;  %1498 = vmatprep.subr.mxu1 %v1237_v58  ;;  %1422 = vmatpush1.msra.mxu0 %v674_v25  ;;  %v591_v10 = vsel %vm588_vm14, %v3545_v57, %v4916_v27  ;;  %v4018_v58 = vld [vmem:[%s4884_s9 + $0x48] sm:$0xff] }
 0x2d2   :  { %1499 = vmatpush1.msra.mxu1 %v676_v59  ;;  %1423 = vmatprep.subr.mxu0 %v597_v18  ;;  %v4023_v59 = vld [vmem:[%s4884_s9 + $0x20] sm:$0xff] }
 0x2d3   :  { %1500 = vmatprep.subr.mxu1 %v1231_v1  ;;  %1424 = vmatpush1.msra.mxu0 %v596_v50  ;;  %v4030_v1 = vld [vmem:[%s4884_s9 + $0x28] sm:$0xff] }
 0x2d4   :  { %v1152_v28 = vpop.permute.xlu0 %1151  ;;  %1501 = vmatpush1.msra.mxu1 %v598_v44  ;;  %1425 = vmatprep.subr.mxu0 %v592_v52 }
 0x2d5   :  { %v1154_v61 = vpop.permute.xlu1 %1153  ;;  %v1225_v9 = vld [vmem:[#allocation3 + $0x88] sm:$0xff]  ;;  %1426 = vmatpush1.msra.mxu0 %v591_v10  ;;  %2981 = vmatprep.mubr.msk.f32.mxu1 %vm95_vm0, %v1207_v55 }
 0x2d6   :  { %1502 = vmatprep.subr.mxu1 %v1225_v9  ;;  %1427 = vmatprep.subr.mxu0 %v4917_v20  ;;  %v1173_v13 = vsel %vm1169_vm15, %v1152_v28, %v1154_v61 }
 0x2d7   :  { %1503 = vmatpush1.msra.mxu1 %v593_v17  ;;  %1428 = vmatpush1.msra.mxu0 %v1216_v22 }
 0x2d8   :  { %v1164_v57 = vpop.permute.xlu0 %1163  ;;  %1504 = vmatprep.subr.mxu1 %v1219_v11  ;;  %1429 = vmatprep.subr.mxu0 %v519_v45 }
 0x2d9   :  { %v1177_v4 = vsel %vm1169_vm15, %v3796_v14, %v1164_v57  ;;  %v1178_v47 = vsel %vm1169_vm15, %v1164_v57, %v1166_v8  ;;  %v1156_v29 = vpop.permute.xlu1 %1155  ;;  %1505 = vmatpush1.msra.mxu1 %v4918_v0  ;;  %1430 = vmatpush1.msra.mxu0 %v1210_v32  ;;  %v1172_v14 = vsel %vm1169_vm15, %v3562_v60, %v1152_v28  ;;  %v4060_v57 = vld [vmem:[%s4884_s9 + $0x58] sm:$0xff] }
 0x2da   :  { %1197 = vst.msk [vmem:[#allocation3 + $0x328] sm:$0xff] %vm500_vm4, %v1156_v29  ;;  %1506 = vmatprep.subr.mxu1 %v1213_v19  ;;  %1459 = vmatprep.subr.mxu0 %v1178_v47  ;;  %v1174_v31 = vsel %vm1169_vm15, %v1154_v61, %v1156_v29  ;;  %v4047_v61 = vld [vmem:[%s4884_s9 + $0x50] sm:$0xff] }
 0x2db   :  { %1507 = vmatpush1.msra.mxu1 %v520_v54  ;;  %1460 = vmatpush2.msra.mxu0 %v1177_v4 }
 0x2dc   :  { %v1168_v41 = vpop.permute.xlu0 %1167  ;;  %1393 = vmatmul.mubr.f32.gmra.mxu1 %v1206_v62  ;;  %1461 = vmatprep.subr.mxu0 %v1173_v13 }
 0x2dd   :  { %1203 = vst.msk [vmem:[#allocation3 + $0x358] sm:$0xff] %vm500_vm4, %v1168_v41  ;;  %1462 = vmatpush2.msra.mxu0 %v1172_v14  ;;  %2984 = vmatprep.mubr.msk.f32.mxu1 %vm95_vm0, %v4919_v34  ;;  %v1179_v49 = vsel %vm1169_vm15, %v1166_v8, %v1168_v41 }
 0x2de   :  { %1464 = vmatmul.mubr.f32.vlgmr.msra.gmra.mxu0 %v3824_v15 }
 0x2df   :  { %2983 = vmatprep.mubr.msk.f32.mxu0 %vm95_vm0, %v1207_v55 }
 0x2e1   :  { %v1309_v60 = vld [vmem:[#allocation3 + $0x328] sm:$0xff] }
 0x2e2   :  { %1470 = vmatmul.mubr.f32.gmra.mxu0 %v1206_v62 }
 0x2e4   :  { %v1315_v63 = vld [vmem:[#allocation3 + $0x358] sm:$0xff] }
 0x2e5   :  { %1536 = vmatprep.subr.mxu1 %v1315_v63 }
 0x2e6   :  { %1537 = vmatpush2.msra.mxu1 %v1179_v49 }
 0x2e7   :  { %1538 = vmatprep.subr.mxu1 %v1309_v60 }
 0x2e8   :  { %1539 = vmatpush2.msra.mxu1 %v1174_v31 }
 0x2e9   :  { %1541 = vmatmul.mubr.f32.vlgmr.msra.gmra.mxu1 %v3824_v15  ;;  %v3963_v15 = vld [vmem:[%s4884_s9 + $0x30] sm:$0xff] }
 0x2ea   :  { %2985 = vmatprep.mubr.msk.f32.mxu1 %vm95_vm0, %v1207_v55 }
 0x2ed   :  { %1547 = vmatmul.mubr.f32.gmra.mxu1 %v1206_v62 }
 0x37b   :  { %v1388_v2 = vpop.f32.mrf.mxu1 }
 0x37c   :  { %v3976_v33 = vmul.f32 %v1388_v2, %v3953_v56 }
 0x37d   :  { %v1390_v21 = vpop.f32.mrf.mxu1 }
 0x37e   :  { %v3979_v5 = vmul.f32 %v1390_v21, %v3958_v24  ;;  %v1581_v44 = vmul.f32 %v3976_v33, %v3976_v33 }
 0x380   :  { %v1565_v35 = vadd.f32 %v3979_v5, %v3976_v33  ;;  %v1582_v10 = vmul.f32 %v3979_v5, %v3979_v5 }
 0x382   :  { %v1593_v29 = vadd.f32 %v1582_v10, %v1581_v44 }
 0x39c   :  { %v1394_v37 = vpop.f32.mrf.mxu1 }
 0x39d   :  { %v3982_v42 = vmul.f32 %v1394_v37, %v3963_v15 }
 0x39e   :  { %v1396_v36 = vpop.f32.mrf.mxu1  ;;  %v1465_v46 = vpop.f32.mrf.mxu0 }
 0x39f   :  { %v3985_v39 = vmul.f32 %v1396_v36, %v3968_v48  ;;  %v3988_v40 = vmul.f32 %v1465_v46, %v3973_v51  ;;  %v1587_v6 = vmul.f32 %v3982_v42, %v3982_v42 }
 0x3a0   :  { %v1467_v23 = vpop.f32.mrf.mxu0 }
 0x3a1   :  { %v1588_v3 = vmul.f32 %v3985_v39, %v3985_v39  ;;  %v1573_v7 = vadd.f32 %v3985_v39, %v3982_v42  ;;  %v1566_v25 = vadd.f32 %v1565_v35, %v3988_v40  ;;  %v4013_v43 = vmul.f32 %v1467_v23, %v3998_v53 }
 0x3a2   :  { %v1471_v38 = vpop.f32.mrf.mxu0  ;;  %v1583_v20 = vmul.f32 %v3988_v40, %v3988_v40 }
 0x3a3   :  { %v4007_v12 = vmul.f32 %v1471_v38, %v3993_v16  ;;  %v1601_v50 = vadd.f32 %v1588_v3, %v1587_v6  ;;  %v1567_v30 = vadd.f32 %v1566_v25, %v4013_v43  ;;  %v1584_v41 = vmul.f32 %v4013_v43, %v4013_v43 }
 0x3a4   :  { %v1473_v26 = vpop.f32.mrf.mxu0  ;;  %v1594_v14 = vadd.f32 %v1593_v29, %v1583_v20  ;;  %v1618_v20 = vld [vmem:[%s4879_s4 + $0x8] sm:$0xff]  ;;  %v1625_v29 = vld [vmem:[%s4880_s5] sm:$0xff] }
 0x3a5   :  { %v1589_v8 = vmul.f32 %v4007_v12, %v4007_v12  ;;  %v4033_v55 = vmul.f32 %v1473_v26, %v4018_v58  ;;  %v1574_v52 = vadd.f32 %v1573_v7, %v4007_v12 }
 0x3a6   :  { %v1595_v36 = vadd.f32 %v1594_v14, %v1584_v41 }
 0x3a7   :  { %v1602_v22 = vadd.f32 %v1601_v50, %v1589_v8  ;;  %v1590_v11 = vmul.f32 %v4033_v55, %v4033_v55  ;;  %v1575_v32 = vadd.f32 %v1574_v52, %v4033_v55 }
 0x3a9   :  { %v1542_v18 = vpop.f32.mrf.mxu1  ;;  %v1603_v34 = vadd.f32 %v1602_v22, %v1590_v11 }
 0x3aa   :  { %v4037_v27 = vmul.f32 %v1542_v18, %v4023_v59 }
 0x3ab   :  { %v1544_v28 = vpop.f32.mrf.mxu1 }
 0x3ac   :  { %v1568_v9 = vadd.f32 %v1567_v30, %v4037_v27  ;;  %v4051_v17 = vmul.f32 %v1544_v28, %v4030_v1  ;;  %v1585_v60 = vmul.f32 %v4037_v27, %v4037_v27 }
 0x3ad   :  { %v1548_v45 = vpop.f32.mrf.mxu1 }
 0x3ae   :  { %v4064_v4 = vmul.f32 %v1548_v45, %v4047_v61  ;;  %v1569_v47 = vsel %vm500_vm4, %v4051_v17, 0.0  ;;  %v1586_v21 = vmul.f32 %v4051_v17, %v4051_v17  ;;  %v1596_v23 = vadd.f32 %v1595_v36, %v1585_v60  ;;  %v1617_v45 = vld [vmem:[%s4879_s4] sm:$0xff]  ;;  %s3128_s4 = smov 19  }
 0x3af   :  { %v1550_v0 = vpop.f32.mrf.mxu1  ;;  %v1570_v19 = vadd.f32 %v1569_v47, %v1568_v9 }
 0x3b0   :  { %v1576_v62 = vadd.f32 %v1575_v32, %v4064_v4  ;;  %v1591_v54 = vmul.f32 %v4064_v4, %v4064_v4  ;;  %v4072_v13 = vmul.f32 %v1550_v0, %v4060_v57  ;;  %v1597_v38 = vsel %vm500_vm4, %v1586_v21, 0.0 }
 0x3b1   :  { %1571 = vadd.xlane.f32.xlu1 %v1570_v19  ;;  %v1598_v35 = vadd.f32 %v1597_v38, %v1596_v23 }
 0x3b2   :  { %v1592_v63 = vmul.f32 %v4072_v13, %v4072_v13  ;;  %v1577_v49 = vsel %vm500_vm4, %v4072_v13, 0.0  ;;  %v1604_v2 = vadd.f32 %v1603_v34, %v1591_v54  ;;  %v1626_v54 = vld [vmem:[%s4880_s5 + $0x8] sm:$0xff] }
 0x3b3   :  { %v1578_v31 = vadd.f32 %v1577_v49, %v1576_v62 }
 0x3b4   :  { %v1605_v37 = vsel %vm500_vm4, %v1592_v63, 0.0 }
 0x3b5   :  { %1579 = vadd.xlane.f32.xlu0 %v1578_v31  ;;  %v1606_v46 = vadd.f32 %v1605_v37, %v1604_v2 }
 0x3b9   :  { %1607 = vadd.xlane.f32.xlu0 %v1606_v46 }
 0x3bd   :  { %1599 = vadd.xlane.f32.xlu0 %v1598_v35 }
 0x43a   :  { %v1572_v7 = vpop.xlane.xlu1 %1571 }
 0x43b   :  { %v1609_v26 = vmul.f32 0.001953125, %v1572_v7 }
 0x43d   :  { %v1613_v52 = vmul.f32 %v1609_v26, %v1609_v26 }
 0x43e   :  { %v1580_v6 = vpop.xlane.xlu0 %1579 }
 0x43f   :  { %v1610_v3 = vmul.f32 0.001953125, %v1580_v6 }
 0x441   :  { %v1614_v50 = vmul.f32 %v1610_v3, %v1610_v3 }
 0x442   :  { %v1608_v25 = vpop.xlane.xlu0 %1607 }
 0x443   :  { %v1612_v18 = vmul.f32 0.001953125, %v1608_v25 }
 0x445   :  { %v1616_v8 = vsub.f32 %v1612_v18, %v1614_v50 }
 0x446   :  { %v1600_v30 = vpop.xlane.xlu0 %1599 }
 0x447   :  { %v1620_v44 = vadd.f32 1e-05, %v1616_v8  ;;  %v1611_v10 = vmul.f32 0.001953125, %v1600_v30 }
 0x449   :  { %3030 = vrsqrt.f32 %v1620_v44  ;;  %v1615_v28 = vsub.f32 %v1611_v10, %v1613_v52 }
 0x44b   :  { %v1619_v9 = vadd.f32 1e-05, %v1615_v28 }
 0x44d   :  { %3032 = vrsqrt.f32 %v1619_v9 }
 0x456   :  { %v3031_v22 = vpop.eup %3030 }
 0x457   :  { %v1624_v11 = vmul.f32 %v3031_v22, %v1618_v20 }
 0x459   :  { %1638 = vperm.xlu1 %3029, %v1624_v11   ;;  %v1628_v62 = vmul.f32 %v1624_v11, %v1610_v3 }
 0x45a   :  { %v3033_v32 = vpop.eup %3032 }
 0x45b   :  { %v1623_v47 = vmul.f32 %v3033_v32, %v1617_v45  ;;  %v1630_v14 = vsub.f32 %v1626_v54, %v1628_v62 }
 0x45d   :  { %1633 = vperm.xlu0 %3028, %v1623_v47   ;;  %v1627_v0 = vmul.f32 %v1623_v47, %v1609_v26 }
 0x45f   :  { %v1629_v19 = vsub.f32 %v1625_v29, %v1627_v0 }
 0x461   :  { %1655 = vperm.xlu1 %3029, %v1629_v19  }
 0x465   :  { %1660 = vperm.xlu1 %3029, %v1630_v14  }
 0x4d4   :  { %v1639_v41 = vpop.permute.xlu1 %1638 }
 0x4d5   :  { %v1647_v7 = vmul.f32 %v1639_v41, %v3982_v42  ;;  %v1650_v30 = vmul.f32 %v1639_v41, %v4033_v55  ;;  %v1652_v9 = vmul.f32 %v1639_v41, %v4072_v13 }
 0x4d8   :  { %v1634_v34 = vpop.permute.xlu0 %1633 }
 0x4d9   :  { %v1642_v63 = vmul.f32 %v1634_v34, %v3979_v5  ;;  %v1641_v49 = vmul.f32 %v1634_v34, %v3976_v33  ;;  %v1644_v60 = vmul.f32 %v1634_v34, %v4013_v43  ;;  %v1643_v31 = vmul.f32 %v1634_v34, %v3988_v40 }
 0x4da   :  { %v1645_v23 = vmul.f32 %v1634_v34, %v4037_v27  ;;  %v1646_v26 = vmul.f32 %v1634_v34, %v4051_v17  ;;  %v1649_v27 = vmul.f32 %v1639_v41, %v4007_v12  ;;  %v1648_v17 = vmul.f32 %v1639_v41, %v3985_v39 }
 0x4dc   :  { %v1656_v2 = vpop.permute.xlu1 %1655 }
 0x4dd   :  { %v1664_v21 = vadd.f32 %v1656_v2, %v1642_v63  ;;  %v1663_v37 = vadd.f32 %v1656_v2, %v1641_v49  ;;  %v1666_v36 = vadd.f32 %v1656_v2, %v1644_v60  ;;  %v1665_v46 = vadd.f32 %v1656_v2, %v1643_v31 }
 0x4de   :  { %v1667_v3 = vadd.f32 %v1656_v2, %v1645_v23  ;;  %v1668_v18 = vadd.f32 %v1656_v2, %v1646_v26 }
 0x4df   :  { %v1676_v38 = vmax.f32 %v1664_v21, 0.0  ;;  %v1675_v35 = vmax.f32 %v1663_v37, 0.0  ;;  %v1678_v43 = vmax.f32 %v1666_v36, 0.0  ;;  %v1677_v25 = vmax.f32 %v1665_v46, 0.0 }
 0x4e0   :  { %v1661_v6 = vpop.permute.xlu1 %1660  ;;  %v1679_v50 = vmax.f32 %v1667_v3, 0.0  ;;  %v1680_v44 = vmax.f32 %v1668_v18, 0.0 }
 0x4e1   :  { %v1688_v5 = vmul.f32 %v1676_v38, %v3958_v24  ;;  %v1687_v33 = vmul.f32 %v1675_v35, %v3953_v56  ;;  %v1669_v40 = vadd.f32 %v1661_v6, %v1647_v7  ;;  %v1690_v42 = vmul.f32 %v1678_v43, %v3998_v53 }
 0x4e2   :  { %v1689_v24 = vmul.f32 %v1677_v25, %v3973_v51  ;;  %v1671_v56 = vadd.f32 %v1661_v6, %v1649_v27  ;;  %v1691_v52 = vmul.f32 %v1679_v50, %v4023_v59  ;;  %v1670_v28 = vadd.f32 %v1661_v6, %v1648_v17 }
 0x4e3   :  { %1713 = vrot.lane.b32.xlu0 %v1688_v5, %s3128_s4  ;;  %1711 = vrot.lane.b32.xlu1 %v1687_v33, %s3128_s4  ;;  %v1681_v8 = vmax.f32 %v1669_v40, 0.0  ;;  %v1672_v53 = vadd.f32 %v1661_v6, %v1650_v30  ;;  %v1651_v51 = vmul.f32 %v1639_v41, %v4064_v4  ;;  %v1692_v39 = vmul.f32 %v1680_v44, %v4030_v1 }
 0x4e4   :  { %v1683_v10 = vmax.f32 %v1671_v56, 0.0  ;;  %v1682_v59 = vmax.f32 %v1670_v28, 0.0  ;;  %v1674_v11 = vadd.f32 %v1661_v6, %v1652_v9 }
 0x4e5   :  { %v1693_v12 = vmul.f32 %v1681_v8, %v3963_v15  ;;  %v1673_v20 = vadd.f32 %v1661_v6, %v1651_v51  ;;  %v1684_v22 = vmax.f32 %v1672_v53, 0.0  ;;  %v4345_v51 = vld [vmem:[#allocation4 + $0x8] sm:$0xff] }
 0x4e6   :  { %v1695_v55 = vmul.f32 %v1683_v10, %v3993_v16  ;;  %v1694_v15 = vmul.f32 %v1682_v59, %v3968_v48  ;;  %v1686_v32 = vmax.f32 %v1674_v11, 0.0  ;;  %4925 = vst [vmem:[#allocation17_spill] sm:$0xff] %v4345_v51  ;;  %2986 = vmatprep.mubr.msk.f32.mxu0 %vm95_vm0, %v4345_v51  ;;  %2988 = vmatprep.mubr.msk.f32.mxu1 %vm95_vm0, %v4345_v51 }
 0x4e7   :  { %1717 = vrot.lane.b32.xlu0 %v1690_v42, %s3128_s4  ;;  %1715 = vrot.lane.b32.xlu1 %v1689_v24, %s3128_s4  ;;  %v1696_v4 = vmul.f32 %v1684_v22, %v4018_v58  ;;  %v1685_v45 = vmax.f32 %v1673_v20, 0.0 }
 0x4e8   :  { %v1698_v16 = vmul.f32 %v1686_v32, %v4060_v57 }
 0x4e9   :  { %v1697_v1 = vmul.f32 %v1685_v45, %v4047_v61 }
 0x4eb   :  { %1719 = vrot.lane.b32.xlu1 %v1691_v52, %s3128_s4  ;;  %1723 = vrot.lane.b32.xlu0 %v1693_v12, %s3128_s4 }
 0x4ef   :  { %1721 = vrot.lane.b32.xlu1 %v1692_v39, %s3128_s4  ;;  %1727 = vrot.lane.b32.xlu0 %v1695_v55, %s3128_s4 }
 0x4f3   :  { %1725 = vrot.lane.b32.xlu1 %v1694_v15, %s3128_s4  ;;  %1729 = vrot.lane.b32.xlu0 %v1696_v4, %s3128_s4 }
 0x4f7   :  { %1731 = vrot.lane.b32.xlu1 %v1697_v1, %s3128_s4  ;;  %1733 = vrot.lane.b32.xlu0 %v1698_v16, %s3128_s4 }
 0x555   :  { %v1714_v13 = vpop.permute.xlu0 %1713  ;;  %v1712_v48 = vpop.permute.xlu1 %1711 }
 0x556   :  { %v4135_v58 = vsel %vm1735_vm1, %v1712_v48, %v1714_v13  ;;  %1759 = vst.msk [vmem:[#allocation2] sm:$0xff] %vm1758_vm8, %v1712_v48 }
 0x557   :  { %1760 = vst [vmem:[#allocation2 + $0x8] sm:$0xff] %v4135_v58 }
 0x559   :  { %v1718_v47 = vpop.permute.xlu0 %1717  ;;  %v1716_v29 = vpop.permute.xlu1 %1715 }
 0x55a   :  { %v1737_v61 = vsel %vm1735_vm1, %v1714_v13, %v1716_v29  ;;  %v4141_v57 = vsel %vm1735_vm1, %v1716_v29, %v1718_v47 }
 0x55b   :  { %1761 = vst [vmem:[#allocation2 + $0x10] sm:$0xff] %v1737_v61  ;;  %1762 = vst [vmem:[#allocation2 + $0x18] sm:$0xff] %v4141_v57  ;;  %2316 = vrot.lane.b32.xlu0 %v1737_v61, %s3121_s17 }
 0x55d   :  { %v1724_v0 = vpop.permute.xlu0 %1723  ;;  %v1720_v19 = vpop.permute.xlu1 %1719  ;;  %v4145_v62 = vld [vmem:[#allocation2] sm:$0xff] }
 0x55e   :  { %v4148_v54 = vsel %vm1735_vm1, %v1718_v47, %v1720_v19  ;;  %2312 = vrot.lane.b32.xlu1 %v4145_v62, %s3121_s17  ;;  %1766 = vst.msk [vmem:[#allocation2 + $0x30] sm:$0xff] %vm1758_vm8, %v1724_v0 }
 0x55f   :  { %1763 = vst [vmem:[#allocation2 + $0x20] sm:$0xff] %v4148_v54  ;;  %2234 = vrot.lane.b32.xlu0 %v1737_v61, %s3122_s2 }
 0x561   :  { %v1728_v14 = vpop.permute.xlu0 %1727  ;;  %v1722_v41 = vpop.permute.xlu1 %1721 }
 0x562   :  { %v1740_v34 = vsel %vm1735_vm1, %v1720_v19, %v1722_v41  ;;  %2230 = vrot.lane.b32.xlu1 %v4145_v62, %s3122_s2  ;;  %v4158_v63 = vld [vmem:[#allocation2 + $0x18] sm:$0xff]  ;;  %v4160_v49 = vld [vmem:[#allocation2 + $0x10] sm:$0xff] }
 0x563   :  { %4920 = vst [vmem:[#allocation14_spill] sm:$0xff] %v4158_v63  ;;  %4921 = vst [vmem:[#allocation16_spill] sm:$0xff] %v4160_v49  ;;  %2152 = vrot.lane.b32.xlu0 %v1737_v61, %s3123_s20 }
 0x564   :  { %1765 = vst.msk [vmem:[#allocation2 + $0x28] sm:$0xff] %vm1764_vm2, %v1740_v34  ;;  %1786 = vst [vmem:[#allocation3 + $0x10] sm:$0xff] %v4160_v49 }
 0x565   :  { %v1730_v60 = vpop.permute.xlu0 %1729  ;;  %v1726_v31 = vpop.permute.xlu1 %1725  ;;  %v4165_v2 = vld [vmem:[#allocation2 + $0x30] sm:$0xff] }
 0x566   :  { %v4168_v21 = vsel %vm1735_vm1, %v1728_v14, %v1730_v60  ;;  %v4171_v37 = vsel %vm1735_vm1, %v1724_v0, %v1726_v31  ;;  %v4174_v36 = vsel %vm1735_vm1, %v1726_v31, %v1728_v14  ;;  %2148 = vrot.lane.b32.xlu1 %v4145_v62, %s3123_s20  ;;  %v1776_v46 = vld [vmem:[#allocation2 + $0x20] sm:$0xff] }
 0x567   :  { %1769 = vst [vmem:[#allocation2 + $0x48] sm:$0xff] %v4168_v21  ;;  %1767 = vst [vmem:[#allocation2 + $0x38] sm:$0xff] %v4171_v37  ;;  %2070 = vrot.lane.b32.xlu0 %v1737_v61, %s3124_s21 }
 0x568   :  { %1768 = vst [vmem:[#allocation2 + $0x40] sm:$0xff] %v4174_v36  ;;  %1788 = vst [vmem:[#allocation3 + $0x20] sm:$0xff] %v1776_v46 }
 0x569   :  { %v1734_v23 = vpop.permute.xlu0 %1733  ;;  %v1732_v38 = vpop.permute.xlu1 %1731 }
 0x56a   :  { %v4183_v35 = vsel %vm1735_vm1, %v1730_v60, %v1732_v38  ;;  %v1745_v6 = vsel %vm1735_vm1, %v1732_v38, %v1734_v23  ;;  %2066 = vrot.lane.b32.xlu1 %v4145_v62, %s3124_s21 }
 0x56b   :  { %v1777_v3 = vld [vmem:[#allocation2 + $0x28] sm:$0xff]  ;;  %1770 = vst [vmem:[#allocation2 + $0x50] sm:$0xff] %v4183_v35  ;;  %1988 = vrot.lane.b32.xlu0 %v1737_v61, %s3125_s22  ;;  %1771 = vst.msk [vmem:[#allocation2 + $0x58] sm:$0xff] %vm1764_vm2, %v1745_v6 }
 0x56c   :  { %1789 = vst.msk [vmem:[#allocation3 + $0x28] sm:$0xff] %vm500_vm4, %v1777_v3  ;;  %v4253_v25 = vld [vmem:[#allocation2 + $0x28] sm:$0xff] }
 0x56e   :  { %1984 = vrot.lane.b32.xlu1 %v4145_v62, %s3125_s22  ;;  %v4194_v7 = vld [vmem:[#allocation2 + $0x48] sm:$0xff] }
 0x56f   :  { %4922 = vst [vmem:[#allocation18_spill] sm:$0xff] %v4194_v7  ;;  %v4196_v5 = vld [vmem:[#allocation2 + $0x40] sm:$0xff]  ;;  %1906 = vrot.lane.b32.xlu0 %v1737_v61, %s3109_s29 }
 0x570   :  { %4923 = vst [vmem:[#allocation13_spill] sm:$0xff] %v4196_v5  ;;  %1792 = vst [vmem:[#allocation3 + $0x40] sm:$0xff] %v4196_v5 }
 0x572   :  { %1902 = vrot.lane.b32.xlu1 %v4145_v62, %s3109_s29  ;;  %v1783_v33 = vld [vmem:[#allocation2 + $0x58] sm:$0xff]  ;;  %v4202_v43 = vld [vmem:[#allocation2 + $0x50] sm:$0xff] }
 0x573   :  { %4924 = vst [vmem:[#allocation15_spill] sm:$0xff] %v4202_v43  ;;  %1824 = vrot.lane.b32.xlu0 %v1737_v61, %s3126_s23  ;;  %1795 = vst.msk [vmem:[#allocation3 + $0x58] sm:$0xff] %vm500_vm4, %v1783_v33  ;;  %v4323_v17 = vld [vmem:[#allocation2 + $0x58] sm:$0xff] }
 0x576   :  { %1820 = vrot.lane.b32.xlu1 %v4145_v62, %s3126_s23 }
 0x577   :  { %2398 = vrot.lane.b32.xlu0 %v1737_v61, %s3127_s24 }
 0x57a   :  { %2394 = vrot.lane.b32.xlu1 %v4145_v62, %s3127_s24 }
 0x57b   :  { %2320 = vrot.lane.b32.xlu0 %v4148_v54, %s3121_s17 }
 0x57e   :  { %2314 = vrot.lane.b32.xlu1 %v4135_v58, %s3121_s17 }
 0x57f   :  { %2238 = vrot.lane.b32.xlu0 %v4148_v54, %s3122_s2 }
 0x582   :  { %2232 = vrot.lane.b32.xlu1 %v4135_v58, %s3122_s2 }
 0x583   :  { %2156 = vrot.lane.b32.xlu0 %v4148_v54, %s3123_s20 }
 0x586   :  { %2150 = vrot.lane.b32.xlu1 %v4135_v58, %s3123_s20 }
 0x587   :  { %2074 = vrot.lane.b32.xlu0 %v4148_v54, %s3124_s21 }
 0x58a   :  { %2068 = vrot.lane.b32.xlu1 %v4135_v58, %s3124_s21 }
 0x58b   :  { %1992 = vrot.lane.b32.xlu0 %v4148_v54, %s3125_s22 }
 0x58e   :  { %1986 = vrot.lane.b32.xlu1 %v4135_v58, %s3125_s22 }
 0x58f   :  { %1910 = vrot.lane.b32.xlu0 %v4148_v54, %s3109_s29 }
 0x592   :  { %1904 = vrot.lane.b32.xlu1 %v4135_v58, %s3109_s29 }
 0x593   :  { %1828 = vrot.lane.b32.xlu0 %v4148_v54, %s3126_s23 }
 0x596   :  { %1822 = vrot.lane.b32.xlu1 %v4135_v58, %s3126_s23 }
 0x597   :  { %2324 = vrot.lane.b32.xlu0 %v4165_v2, %s3121_s17 }
 0x59a   :  { %2396 = vrot.lane.b32.xlu1 %v4135_v58, %s3127_s24 }
 0x59b   :  { %2242 = vrot.lane.b32.xlu0 %v4165_v2, %s3122_s2 }
 0x59e   :  { %2318 = vrot.lane.b32.xlu1 %v4141_v57, %s3121_s17 }
 0x59f   :  { %2160 = vrot.lane.b32.xlu0 %v4165_v2, %s3123_s20 }
 0x5a2   :  { %2236 = vrot.lane.b32.xlu1 %v4141_v57, %s3122_s2 }
 0x5a3   :  { %2078 = vrot.lane.b32.xlu0 %v4165_v2, %s3124_s21 }
 0x5a6   :  { %2322 = vrot.lane.b32.xlu1 %v4253_v25, %s3121_s17 }
 0x5a7   :  { %1996 = vrot.lane.b32.xlu0 %v4165_v2, %s3125_s22 }
 0x5aa   :  { %2154 = vrot.lane.b32.xlu1 %v4141_v57, %s3123_s20 }
 0x5ab   :  { %1914 = vrot.lane.b32.xlu0 %v4165_v2, %s3109_s29 }
 0x5ae   :  { %2240 = vrot.lane.b32.xlu1 %v4253_v25, %s3122_s2 }
 0x5af   :  { %1832 = vrot.lane.b32.xlu0 %v4165_v2, %s3126_s23 }
 0x5b2   :  { %2072 = vrot.lane.b32.xlu1 %v4141_v57, %s3124_s21 }
 0x5b3   :  { %2406 = vrot.lane.b32.xlu0 %v4165_v2, %s3127_s24 }
 0x5b6   :  { %2158 = vrot.lane.b32.xlu1 %v4253_v25, %s3123_s20 }
 0x5b7   :  { %2326 = vrot.lane.b32.xlu0 %v4171_v37, %s3121_s17 }
 0x5ba   :  { %1990 = vrot.lane.b32.xlu1 %v4141_v57, %s3125_s22 }
 0x5bb   :  { %2244 = vrot.lane.b32.xlu0 %v4171_v37, %s3122_s2 }
 0x5be   :  { %2076 = vrot.lane.b32.xlu1 %v4253_v25, %s3124_s21 }
 0x5bf   :  { %2162 = vrot.lane.b32.xlu0 %v4171_v37, %s3123_s20 }
 0x5c2   :  { %1908 = vrot.lane.b32.xlu1 %v4141_v57, %s3109_s29 }
 0x5c3   :  { %2080 = vrot.lane.b32.xlu0 %v4171_v37, %s3124_s21 }
 0x5c6   :  { %1994 = vrot.lane.b32.xlu1 %v4253_v25, %s3125_s22 }
 0x5c7   :  { %1998 = vrot.lane.b32.xlu0 %v4171_v37, %s3125_s22 }
 0x5ca   :  { %1826 = vrot.lane.b32.xlu1 %v4141_v57, %s3126_s23 }
 0x5cb   :  { %1916 = vrot.lane.b32.xlu0 %v4171_v37, %s3109_s29 }
 0x5cd   :  { %v4295_v40 = vpop.permute.xlu0 %2316 }
 0x5ce   :  { %1912 = vrot.lane.b32.xlu1 %v4253_v25, %s3109_s29 }
 0x5cf   :  { %1834 = vrot.lane.b32.xlu0 %v4171_v37, %s3126_s23 }
 0x5d0   :  { %v2313_v26 = vpop.permute.xlu1 %2312 }
 0x5d1   :  { %v4301_v27 = vpop.permute.xlu0 %2234 }
 0x5d2   :  { %2328 = vrot.lane.b32.xlu1 %v4174_v36, %s3121_s17 }
 0x5d3   :  { %2408 = vrot.lane.b32.xlu0 %v4171_v37, %s3127_s24 }
 0x5d4   :  { %v2231_v50 = vpop.permute.xlu1 %2230 }
 0x5d5   :  { %v4307_v18 = vpop.permute.xlu0 %2152 }
 0x5d6   :  { %2246 = vrot.lane.b32.xlu1 %v4174_v36, %s3122_s2 }
 0x5d7   :  { %2330 = vrot.lane.b32.xlu0 %v4168_v21, %s3121_s17 }
 0x5d8   :  { %v2149_v42 = vpop.permute.xlu1 %2148 }
 0x5d9   :  { %v4313_v24 = vpop.permute.xlu0 %2070 }
 0x5da   :  { %2164 = vrot.lane.b32.xlu1 %v4174_v36, %s3123_s20 }
 0x5db   :  { %2248 = vrot.lane.b32.xlu0 %v4168_v21, %s3122_s2 }
 0x5dc   :  { %v2067_v8 = vpop.permute.xlu1 %2066 }
 0x5dd   :  { %v4319_v56 = vpop.permute.xlu0 %1988 }
 0x5de   :  { %2082 = vrot.lane.b32.xlu1 %v4174_v36, %s3124_s21 }
 0x5df   :  { %2334 = vrot.lane.b32.xlu0 %v4323_v17, %s3121_s17 }
 0x5e0   :  { %v1985_v30 = vpop.permute.xlu1 %1984 }
 0x5e1   :  { %v4327_v52 = vpop.permute.xlu0 %1906 }
 0x5e2   :  { %2000 = vrot.lane.b32.xlu1 %v4174_v36, %s3125_s22 }
 0x5e3   :  { %2166 = vrot.lane.b32.xlu0 %v4168_v21, %s3123_s20 }
 0x5e4   :  { %v1903_v44 = vpop.permute.xlu1 %1902 }
 0x5e5   :  { %v4333_v12 = vpop.permute.xlu0 %1824 }
 0x5e6   :  { %1918 = vrot.lane.b32.xlu1 %v4174_v36, %s3109_s29 }
 0x5e7   :  { %2252 = vrot.lane.b32.xlu0 %v4323_v17, %s3122_s2 }
 0x5e8   :  { %v1821_v10 = vpop.permute.xlu1 %1820 }
 0x5e9   :  { %v4339_v28 = vpop.permute.xlu0 %2398 }
 0x5ea   :  { %1836 = vrot.lane.b32.xlu1 %v4174_v36, %s3126_s23 }
 0x5eb   :  { %2084 = vrot.lane.b32.xlu0 %v4168_v21, %s3124_s21 }
 0x5ec   :  { %v2395_v53 = vpop.permute.xlu1 %2394 }
 0x5ed   :  { %v4347_v9 = vpop.permute.xlu0 %2320 }
 0x5ee   :  { %2410 = vrot.lane.b32.xlu1 %v4174_v36, %s3127_s24 }
 0x5ef   :  { %2170 = vrot.lane.b32.xlu0 %v4323_v17, %s3123_s20 }
 0x5f0   :  { %v2315_v39 = vpop.permute.xlu1 %2314 }
 0x5f1   :  { %v4358_v20 = vsel %vm1086_vm5, %v2313_v26, %v2315_v39  ;;  %v4362_v55 = vsel %vm1086_vm5, %v2315_v39, %v4295_v40  ;;  %v4364_v59 = vpop.permute.xlu0 %2238 }
 0x5f2   :  { %2332 = vrot.lane.b32.xlu1 %v4183_v35, %s3121_s17 }
 0x5f3   :  { %2002 = vrot.lane.b32.xlu0 %v4168_v21, %s3125_s22 }
 0x5f4   :  { %v2233_v22 = vpop.permute.xlu1 %2232 }
 0x5f5   :  { %v4371_v11 = vsel %vm1003_vm9, %v2231_v50, %v2233_v22  ;;  %v4375_v15 = vsel %vm1003_vm9, %v2233_v22, %v4301_v27  ;;  %v4377_v4 = vpop.permute.xlu0 %2156 }
 0x5f6   :  { %2250 = vrot.lane.b32.xlu1 %v4183_v35, %s3122_s2 }
 0x5f7   :  { %2088 = vrot.lane.b32.xlu0 %v4323_v17, %s3124_s21 }
 0x5f8   :  { %v2151_v45 = vpop.permute.xlu1 %2150 }
 0x5f9   :  { %v4384_v32 = vsel %vm920_vm10, %v2149_v42, %v2151_v45  ;;  %v4388_v1 = vsel %vm920_vm10, %v2151_v45, %v4307_v18  ;;  %v4390_v16 = vpop.permute.xlu0 %2074 }
 0x5fa   :  { %2168 = vrot.lane.b32.xlu1 %v4183_v35, %s3123_s20 }
 0x5fb   :  { %1920 = vrot.lane.b32.xlu0 %v4168_v21, %s3109_s29 }
 0x5fc   :  { %v2069_v13 = vpop.permute.xlu1 %2068 }
 0x5fd   :  { %v4397_v48 = vsel %vm837_vm11, %v2067_v8, %v2069_v13  ;;  %v4401_v47 = vsel %vm837_vm11, %v2069_v13, %v4313_v24  ;;  %v4403_v29 = vpop.permute.xlu0 %1992 }
 0x5fe   :  { %2086 = vrot.lane.b32.xlu1 %v4183_v35, %s3124_s21 }
 0x5ff   :  { %2006 = vrot.lane.b32.xlu0 %v4323_v17, %s3125_s22 }
 0x600   :  { %v1987_v61 = vpop.permute.xlu1 %1986 }
 0x601   :  { %v4410_v0 = vsel %vm754_vm12, %v1985_v30, %v1987_v61  ;;  %v4414_v19 = vsel %vm754_vm12, %v1987_v61, %v4319_v56  ;;  %v4416_v14 = vpop.permute.xlu0 %1910 }
 0x602   :  { %2004 = vrot.lane.b32.xlu1 %v4183_v35, %s3125_s22 }
 0x603   :  { %1838 = vrot.lane.b32.xlu0 %v4168_v21, %s3126_s23 }
 0x604   :  { %v1905_v41 = vpop.permute.xlu1 %1904 }
 0x605   :  { %v4423_v34 = vsel %vm671_vm13, %v1903_v44, %v1905_v41  ;;  %v4427_v60 = vsel %vm671_vm13, %v1905_v41, %v4327_v52  ;;  %v4429_v31 = vpop.permute.xlu0 %1828 }
 0x606   :  { %1922 = vrot.lane.b32.xlu1 %v4183_v35, %s3109_s29 }
 0x607   :  { %2400 = vrot.lane.b32.xlu0 %v4141_v57, %s3127_s24 }
 0x608   :  { %v1823_v36 = vpop.permute.xlu1 %1822 }
 0x609   :  { %v4436_v46 = vsel %vm588_vm14, %v1821_v10, %v1823_v36  ;;  %v4440_v23 = vsel %vm588_vm14, %v1823_v36, %v4333_v12  ;;  %v2325_v38 = vpop.permute.xlu0 %2324 }
 0x60a   :  { %1840 = vrot.lane.b32.xlu1 %v4183_v35, %s3126_s23 }
 0x60b   :  { %1924 = vrot.lane.b32.xlu0 %v4323_v17, %s3109_s29 }
 0x60c   :  { %v2397_v6 = vpop.permute.xlu1 %2396 }
 0x60d   :  { %v4447_v3 = vsel %vm1169_vm15, %v2395_v53, %v2397_v6  ;;  %v4451_v57 = vsel %vm1169_vm15, %v2397_v6, %v4339_v28  ;;  %v2243_v33 = vpop.permute.xlu0 %2242 }
 0x60e   :  { %1830 = vrot.lane.b32.xlu1 %v4253_v25, %s3126_s23 }
 0x60f   :  { %1842 = vrot.lane.b32.xlu0 %v4323_v17, %s3126_s23 }
 0x610   :  { %v2319_v26 = vpop.permute.xlu1 %2318 }
 0x611   :  { %v4459_v50 = vsel %vm1086_vm5, %v4295_v40, %v2319_v26  ;;  %v4463_v42 = vsel %vm1086_vm5, %v2319_v26, %v4347_v9  ;;  %v2161_v8 = vpop.permute.xlu0 %2160 }
 0x612   :  { %2414 = vrot.lane.b32.xlu1 %v4183_v35, %s3127_s24 }
 0x613   :  { %2412 = vrot.lane.b32.xlu0 %v4168_v21, %s3127_s24 }
 0x614   :  { %v2237_v30 = vpop.permute.xlu1 %2236 }
 0x615   :  { %v4471_v44 = vsel %vm1003_vm9, %v4301_v27, %v2237_v30  ;;  %v4475_v40 = vsel %vm1003_vm9, %v2237_v30, %v4364_v59  ;;  %v2079_v10 = vpop.permute.xlu0 %2078 }
 0x616   :  { %2402 = vrot.lane.b32.xlu1 %v4148_v54, %s3127_s24 }
 0x617   :  { %2416 = vrot.lane.b32.xlu0 %v4323_v17, %s3127_s24 }
 0x618   :  { %v2323_v35 = vpop.permute.xlu1 %2322 }
 0x619   :  { %v4483_v21 = vsel %vm1086_vm5, %v4347_v9, %v2323_v35  ;;  %2363 = vst.msk [vmem:[#allocation3 + $0x2c8] sm:$0xff] %vm500_vm4, %v2323_v35  ;;  %v1997_v27 = vpop.permute.xlu0 %1996 }
 0x61a   :  { %2404 = vrot.lane.b32.xlu1 %v4253_v25, %s3127_s24 }
 0x61c   :  { %v2155_v53 = vpop.permute.xlu1 %2154 }
 0x61d   :  { %v4490_v39 = vsel %vm920_vm10, %v4307_v18, %v2155_v53  ;;  %v4494_v54 = vsel %vm920_vm10, %v2155_v53, %v4377_v4  ;;  %v1915_v17 = vpop.permute.xlu0 %1914 }
 0x620   :  { %v2241_v22 = vpop.permute.xlu1 %2240 }
 0x621   :  { %v4498_v9 = vsel %vm1003_vm9, %v4364_v59, %v2241_v22  ;;  %2281 = vst.msk [vmem:[#allocation3 + $0x268] sm:$0xff] %vm500_vm4, %v2241_v22  ;;  %v1833_v45 = vpop.permute.xlu0 %1832 }
 0x624   :  { %v2073_v13 = vpop.permute.xlu1 %2072 }
 0x625   :  { %v4503_v25 = vsel %vm837_vm11, %v4313_v24, %v2073_v13  ;;  %v4507_v18 = vsel %vm837_vm11, %v2073_v13, %v4390_v16  ;;  %v2407_v61 = vpop.permute.xlu0 %2406 }
 0x628   :  { %v2159_v41 = vpop.permute.xlu1 %2158 }
 0x629   :  { %v4511_v36 = vsel %vm920_vm10, %v4377_v4, %v2159_v41  ;;  %2199 = vst.msk [vmem:[#allocation3 + $0x208] sm:$0xff] %vm500_vm4, %v2159_v41  ;;  %v2327_v59 = vpop.permute.xlu0 %2326 }
 0x62a   :  { %v2341_v6 = vsel %vm1086_vm5, %v2325_v38, %v2327_v59 }
 0x62c   :  { %v1991_v26 = vpop.permute.xlu1 %1990 }
 0x62d   :  { %v4517_v24 = vsel %vm754_vm12, %v4319_v56, %v1991_v26  ;;  %v4521_v30 = vsel %vm754_vm12, %v1991_v26, %v4403_v29  ;;  %v2245_v35 = vpop.permute.xlu0 %2244 }
 0x62e   :  { %v2259_v53 = vsel %vm1003_vm9, %v2243_v33, %v2245_v35 }
 0x630   :  { %v2077_v22 = vpop.permute.xlu1 %2076 }
 0x631   :  { %v4526_v4 = vsel %vm837_vm11, %v4390_v16, %v2077_v22  ;;  %2117 = vst.msk [vmem:[#allocation3 + $0x1a8] sm:$0xff] %vm500_vm4, %v2077_v22  ;;  %v2163_v38 = vpop.permute.xlu0 %2162 }
 0x632   :  { %v2177_v13 = vsel %vm920_vm10, %v2161_v8, %v2163_v38 }
 0x634   :  { %v1909_v41 = vpop.permute.xlu1 %1908 }
 0x635   :  { %v4532_v56 = vsel %vm671_vm13, %v4327_v52, %v1909_v41  ;;  %v4536_v26 = vsel %vm671_vm13, %v1909_v41, %v4416_v14  ;;  %v2081_v33 = vpop.permute.xlu0 %2080 }
 0x636   :  { %v2095_v43 = vsel %vm837_vm11, %v2079_v10, %v2081_v33 }
 0x638   :  { %v1995_v49 = vpop.permute.xlu1 %1994 }
 0x639   :  { %v4541_v16 = vsel %vm754_vm12, %v4403_v29, %v1995_v49  ;;  %2035 = vst.msk [vmem:[#allocation3 + $0x148] sm:$0xff] %vm500_vm4, %v1995_v49  ;;  %v1999_v8 = vpop.permute.xlu0 %1998 }
 0x63a   :  { %v2013_v22 = vsel %vm754_vm12, %v1997_v27, %v1999_v8 }
 0x63c   :  { %v1827_v63 = vpop.permute.xlu1 %1826 }
 0x63d   :  { %v4547_v52 = vsel %vm588_vm14, %v4333_v12, %v1827_v63  ;;  %v4551_v41 = vsel %vm588_vm14, %v1827_v63, %v4429_v31  ;;  %v1917_v10 = vpop.permute.xlu0 %1916 }
 0x63e   :  { %4926 = vst [vmem:[#allocation12_spill] sm:$0xff] %v4547_v52  ;;  %v1931_v5 = vsel %vm671_vm13, %v1915_v17, %v1917_v10 }
 0x640   :  { %v1913_v7 = vpop.permute.xlu1 %1912 }
 0x641   :  { %v4556_v29 = vsel %vm671_vm13, %v4416_v14, %v1913_v7  ;;  %1953 = vst.msk [vmem:[#allocation3 + $0xe8] sm:$0xff] %vm500_vm4, %v1913_v7  ;;  %v1835_v49 = vpop.permute.xlu0 %1834 }
 0x642   :  { %4927 = vst [vmem:[#allocation11_spill] sm:$0xff] %v4556_v29  ;;  %v1849_v27 = vsel %vm588_vm14, %v1833_v45, %v1835_v49 }
 0x644   :  { %v2329_v51 = vpop.permute.xlu1 %2328 }
 0x645   :  { %v2342_v12 = vsel %vm1086_vm5, %v2327_v59, %v2329_v51  ;;  %v2409_v52 = vpop.permute.xlu0 %2408 }
 0x646   :  { %v4562_v63 = vsel %vm1169_vm15, %v2407_v61, %v2409_v52  ;;  %2570 = vmatprep.subr.mxu0 %v2342_v12 }
 0x647   :  { %2571 = vmatpush1.msra.mxu0 %v2341_v6 }
 0x648   :  { %v2247_v17 = vpop.permute.xlu1 %2246  ;;  %2572 = vmatprep.subr.mxu0 %v4362_v55 }
 0x649   :  { %v2260_v14 = vsel %vm1003_vm9, %v2245_v35, %v2247_v17  ;;  %v2331_v29 = vpop.permute.xlu0 %2330  ;;  %2573 = vmatpush1.msra.mxu0 %v4358_v20 }
 0x64a   :  { %v2343_v7 = vsel %vm1086_vm5, %v2329_v51, %v2331_v29  ;;  %2574 = vmatprep.subr.mxu0 %v2260_v14 }
 0x64b   :  { %2575 = vmatpush1.msra.mxu0 %v2259_v53 }
 0x64c   :  { %v2165_v45 = vpop.permute.xlu1 %2164  ;;  %2576 = vmatprep.subr.mxu0 %v4375_v15 }
 0x64d   :  { %v2178_v61 = vsel %vm920_vm10, %v2163_v38, %v2165_v45  ;;  %v2249_v59 = vpop.permute.xlu0 %2248  ;;  %2577 = vmatpush1.msra.mxu0 %v4371_v11 }
 0x64e   :  { %v4572_v6 = vsel %vm1003_vm9, %v2247_v17, %v2249_v59  ;;  %2578 = vmatprep.subr.mxu0 %v2178_v61 }
 0x64f   :  { %2579 = vmatpush1.msra.mxu0 %v2177_v13 }
 0x650   :  { %v2083_v55 = vpop.permute.xlu1 %2082  ;;  %2580 = vmatprep.subr.mxu0 %v4388_v1 }
 0x651   :  { %v2096_v51 = vsel %vm837_vm11, %v2081_v33, %v2083_v55  ;;  %v2335_v20 = vpop.permute.xlu0 %2334  ;;  %2581 = vmatpush1.msra.mxu0 %v4384_v32 }
 0x652   :  { %2369 = vst.msk [vmem:[#allocation3 + $0x2f8] sm:$0xff] %vm500_vm4, %v2335_v20  ;;  %2582 = vmatprep.subr.mxu0 %v2096_v51 }
 0x653   :  { %2583 = vmatpush1.msra.mxu0 %v2095_v43 }
 0x654   :  { %v2001_v15 = vpop.permute.xlu1 %2000  ;;  %2584 = vmatprep.subr.mxu0 %v4401_v47 }
 0x655   :  { %v2014_v11 = vsel %vm754_vm12, %v1999_v8, %v2001_v15  ;;  %v2167_v35 = vpop.permute.xlu0 %2166  ;;  %2585 = vmatpush1.msra.mxu0 %v4397_v48 }
 0x656   :  { %v4582_v53 = vsel %vm920_vm10, %v2165_v45, %v2167_v35  ;;  %2586 = vmatprep.subr.mxu0 %v2014_v11  ;;  %v2509_v45 = vld [vmem:[#allocation3 + $0x1a8] sm:$0xff]  ;;  %v4929_v11 = vld [vmem:[#allocation17_spill] sm:$0xff] }
 0x657   :  { %2587 = vmatpush1.msra.mxu0 %v2013_v22 }
 0x658   :  { %v1919_v1 = vpop.permute.xlu1 %1918  ;;  %2588 = vmatprep.subr.mxu0 %v4414_v19 }
 0x659   :  { %v1932_v32 = vsel %vm671_vm13, %v1917_v10, %v1919_v1  ;;  %v2253_v38 = vpop.permute.xlu0 %2252  ;;  %2589 = vmatpush1.msra.mxu0 %v4410_v0  ;;  %v2551_v22 = vld [vmem:[#allocation3 + $0x2f8] sm:$0xff] }
 0x65a   :  { %2287 = vst.msk [vmem:[#allocation3 + $0x298] sm:$0xff] %vm500_vm4, %v2253_v38  ;;  %2590 = vmatprep.subr.mxu0 %v1932_v32  ;;  %v4933_v32 = vld [vmem:[#allocation16_spill] sm:$0xff] }
 0x65b   :  { %2591 = vmatpush1.msra.mxu0 %v1931_v5 }
 0x65c   :  { %v4588_v43 = vpop.permute.xlu1 %1836  ;;  %2592 = vmatprep.subr.mxu0 %v4427_v60 }
 0x65d   :  { %v1850_v48 = vsel %vm588_vm14, %v1835_v49, %v4588_v43  ;;  %v2085_v47 = vpop.permute.xlu0 %2084  ;;  %2593 = vmatpush1.msra.mxu0 %v4423_v34 }
 0x65e   :  { %v4595_v19 = vsel %vm837_vm11, %v2083_v55, %v2085_v47  ;;  %2594 = vmatprep.subr.mxu0 %v1850_v48  ;;  %v4654_v55 = vld [vmem:[#allocation4 + $0x18] sm:$0xff] }
 0x65f   :  { %2595 = vmatpush1.msra.mxu0 %v1849_v27 }
 0x660   :  { %v4597_v0 = vpop.permute.xlu1 %2410  ;;  %2596 = vmatprep.subr.mxu0 %v4440_v23 }
 0x661   :  { %v2424_v5 = vsel %vm1169_vm15, %v2409_v52, %v4597_v0  ;;  %v2171_v13 = vpop.permute.xlu0 %2170  ;;  %2597 = vmatpush1.msra.mxu0 %v4436_v46 }
 0x662   :  { %2205 = vst.msk [vmem:[#allocation3 + $0x238] sm:$0xff] %vm500_vm4, %v2171_v13  ;;  %2598 = vmatprep.subr.mxu0 %v4171_v37 }
 0x663   :  { %2599 = vmatpush1.msra.mxu0 %v4165_v2 }
 0x664   :  { %v2333_v34 = vpop.permute.xlu1 %2332  ;;  %2600 = vmatprep.subr.mxu0 %v4135_v58  ;;  %v4616_v58 = vld [vmem:[#allocation4] sm:$0xff] }
 0x665   :  { %v2344_v60 = vsel %vm1086_vm5, %v2331_v29, %v2333_v34  ;;  %v2345_v33 = vsel %vm1086_vm5, %v2333_v34, %v2335_v20  ;;  %v2003_v23 = vpop.permute.xlu0 %2002  ;;  %2601 = vmatpush1.msra.mxu0 %v4145_v62  ;;  %v2539_v29 = vld [vmem:[#allocation3 + $0x298] sm:$0xff]  ;;  %v4658_v20 = vld [vmem:[#allocation4 + $0x10] sm:$0xff]  ;;  %v4934_v34 = vld [vmem:[#allocation11_spill] sm:$0xff] }
 0x666   :  { %v4611_v8 = vsel %vm754_vm12, %v2001_v15, %v2003_v23  ;;  %2630 = vmatprep.subr.mxu0 %v2424_v5  ;;  %2647 = vmatprep.subr.mxu1 %v2344_v60  ;;  %v4928_v15 = vld [vmem:[#allocation12_spill] sm:$0xff] }
 0x667   :  { %2631 = vmatpush2.msra.mxu0 %v4562_v63  ;;  %2648 = vmatpush1.msra.mxu1 %v2343_v7 }
 0x668   :  { %v2251_v37 = vpop.permute.xlu1 %2250  ;;  %2632 = vmatprep.subr.mxu0 %v4451_v57  ;;  %2649 = vmatprep.subr.mxu1 %v4463_v42  ;;  %v2545_v42 = vld [vmem:[#allocation3 + $0x2c8] sm:$0xff] }
 0x669   :  { %v2262_v2 = vsel %vm1003_vm9, %v2249_v59, %v2251_v37  ;;  %v2263_v46 = vsel %vm1003_vm9, %v2251_v37, %v2253_v38  ;;  %v2089_v62 = vpop.permute.xlu0 %2088  ;;  %2633 = vmatpush2.msra.mxu0 %v4447_v3  ;;  %2650 = vmatpush1.msra.mxu1 %v4459_v50  ;;  %v2467_v37 = vld [vmem:[#allocation3 + $0x58] sm:$0xff] }
 0x66a   :  { %2123 = vst.msk [vmem:[#allocation3 + $0x1d8] sm:$0xff] %vm500_vm4, %v2089_v62  ;;  %2651 = vmatprep.subr.mxu1 %v2262_v2  ;;  %2724 = vmatprep.subr.mxu0 %v2551_v22  ;;  %v4935_v2 = vld [vmem:[#allocation15_spill] sm:$0xff] }
 0x66b   :  { %2635 = vmatmul.mubr.f32.vlgmr.msra.gmra.mxu0 %v4616_v58  ;;  %2652 = vmatpush1.msra.mxu1 %v4572_v6 }
 0x66c   :  { %v2169_v57 = vpop.permute.xlu1 %2168  ;;  %2725 = vmatpush1.msra.mxu0 %v2345_v33  ;;  %2653 = vmatprep.subr.mxu1 %v4475_v40  ;;  %v2533_v40 = vld [vmem:[#allocation3 + $0x268] sm:$0xff] }
 0x66d   :  { %v2180_v52 = vsel %vm920_vm10, %v2167_v35, %v2169_v57  ;;  %v2181_v3 = vsel %vm920_vm10, %v2169_v57, %v2171_v13  ;;  %2726 = vmatprep.subr.mxu0 %v2545_v42  ;;  %v1921_v50 = vpop.permute.xlu0 %1920  ;;  %2654 = vmatpush1.msra.mxu1 %v4471_v44  ;;  %v4930_v35 = vld [vmem:[#allocation18_spill] sm:$0xff] }
 0x66e   :  { %v1933_v10 = vsel %vm671_vm13, %v1919_v1, %v1921_v50  ;;  %2727 = vmatpush1.msra.mxu0 %v4483_v21  ;;  %2655 = vmatprep.subr.mxu1 %v2180_v52  ;;  %v2527_v21 = vld [vmem:[#allocation3 + $0x238] sm:$0xff]  ;;  %v4932_v1 = vld [vmem:[#allocation14_spill] sm:$0xff] }
 0x66f   :  { %2728 = vmatprep.subr.mxu0 %v2539_v29  ;;  %2656 = vmatpush1.msra.mxu1 %v4582_v53  ;;  %v4700_v29 = vld [vmem:[%s4884_s9] sm:$0xff] }
 0x670   :  { %v2087_v49 = vpop.permute.xlu1 %2086  ;;  %2729 = vmatpush1.msra.mxu0 %v2263_v46  ;;  %2657 = vmatprep.subr.mxu1 %v4494_v54  ;;  %v2521_v54 = vld [vmem:[#allocation3 + $0x208] sm:$0xff] }
 0x671   :  { %v2098_v27 = vsel %vm837_vm11, %v2085_v47, %v2087_v49  ;;  %v2099_v12 = vsel %vm837_vm11, %v2087_v49, %v2089_v62  ;;  %2730 = vmatprep.subr.mxu0 %v2533_v40  ;;  %v2007_v44 = vpop.permute.xlu0 %2006  ;;  %2658 = vmatpush1.msra.mxu1 %v4490_v39  ;;  %v2515_v7 = vld [vmem:[#allocation3 + $0x1d8] sm:$0xff]  ;;  %v2485_v47 = vld [vmem:[#allocation3 + $0xe8] sm:$0xff]  ;;  %v3038_v62 = vld [vmem:[#allocation3 + $0x20] sm:$0xff] }
 0x672   :  { %2041 = vst.msk [vmem:[#allocation3 + $0x178] sm:$0xff] %vm500_vm4, %v2007_v44  ;;  %2731 = vmatpush1.msra.mxu0 %v4498_v9  ;;  %2659 = vmatprep.subr.mxu1 %v2098_v27  ;;  %v2461_v46 = vld [vmem:[#allocation3 + $0x28] sm:$0xff]  ;;  %v4716_v27 = vld [vmem:[%s4884_s9 + $0x30] sm:$0xff] }
 0x673   :  { %2732 = vmatprep.subr.mxu0 %v2527_v21  ;;  %2660 = vmatpush1.msra.mxu1 %v4595_v19 }
 0x674   :  { %v2005_v63 = vpop.permute.xlu1 %2004  ;;  %2733 = vmatpush1.msra.mxu0 %v2181_v3  ;;  %2661 = vmatprep.subr.mxu1 %v4507_v18 }
 0x675   :  { %v2016_v17 = vsel %vm754_vm12, %v2003_v23, %v2005_v63  ;;  %v2017_v14 = vsel %vm754_vm12, %v2005_v63, %v2007_v44  ;;  %2734 = vmatprep.subr.mxu0 %v2521_v54  ;;  %v1839_v39 = vpop.permute.xlu0 %1838  ;;  %2662 = vmatpush1.msra.mxu1 %v4503_v25  ;;  %v4724_v44 = vld [vmem:[%s4884_s9 + $0x38] sm:$0xff]  ;;  %v4732_v54 = vld [vmem:[%s4884_s9 + $0x10] sm:$0xff] }
 0x676   :  { %v1851_v9 = vsel %vm588_vm14, %v4588_v43, %v1839_v39  ;;  %2735 = vmatpush1.msra.mxu0 %v4511_v36  ;;  %2663 = vmatprep.subr.mxu1 %v2016_v17 }
 0x677   :  { %2736 = vmatprep.subr.mxu0 %v2515_v7  ;;  %2664 = vmatpush1.msra.mxu1 %v4611_v8 }
 0x678   :  { %v1923_v18 = vpop.permute.xlu1 %1922  ;;  %2737 = vmatpush1.msra.mxu0 %v2099_v12  ;;  %2665 = vmatprep.subr.mxu1 %v4521_v30  ;;  %v2497_v30 = vld [vmem:[#allocation3 + $0x148] sm:$0xff] }
 0x679   :  { %v1934_v61 = vsel %vm671_vm13, %v1921_v50, %v1923_v18  ;;  %2738 = vmatprep.subr.mxu0 %v2509_v45  ;;  %v2401_v59 = vpop.permute.xlu0 %2400  ;;  %2666 = vmatpush1.msra.mxu1 %v4517_v24  ;;  %v2503_v25 = vld [vmem:[#allocation3 + $0x178] sm:$0xff] }
 0x67a   :  { %v2420_v36 = vsel %vm1169_vm15, %v4339_v28, %v2401_v59  ;;  %2739 = vmatpush1.msra.mxu0 %v4526_v4  ;;  %2667 = vmatprep.subr.mxu1 %v1934_v61 }
 0x67b   :  { %2740 = vmatprep.subr.mxu0 %v2503_v25  ;;  %2668 = vmatpush1.msra.mxu1 %v1933_v10 }
 0x67c   :  { %v1841_v6 = vpop.permute.xlu1 %1840  ;;  %2741 = vmatpush1.msra.mxu0 %v2017_v14  ;;  %2669 = vmatprep.subr.mxu1 %v4536_v26 }
 0x67d   :  { %v1852_v51 = vsel %vm588_vm14, %v1839_v39, %v1841_v6  ;;  %2742 = vmatprep.subr.mxu0 %v2497_v30  ;;  %v1925_v24 = vpop.permute.xlu0 %1924  ;;  %2670 = vmatpush1.msra.mxu1 %v4532_v56 }
 0x67e   :  { %v1935_v28 = vsel %vm671_vm13, %v1923_v18, %v1925_v24  ;;  %1959 = vst.msk [vmem:[#allocation3 + $0x118] sm:$0xff] %vm500_vm4, %v1925_v24  ;;  %2743 = vmatpush1.msra.mxu0 %v4541_v16  ;;  %2671 = vmatprep.subr.mxu1 %v1852_v51 }
 0x67f   :  { %2672 = vmatpush1.msra.mxu1 %v1851_v9  ;;  %2987 = vmatprep.mubr.msk.f32.mxu0 %vm95_vm0, %v4654_v55 }
 0x680   :  { %v1831_v4 = vpop.permute.xlu1 %1830  ;;  %2673 = vmatprep.subr.mxu1 %v4551_v41  ;;  %2641 = vmatmul.mubr.f32.gmra.mxu0 %v4658_v20  ;;  %v4931_v41 = vld [vmem:[#allocation13_spill] sm:$0xff] }
 0x681   :  { %v1848_v56 = vsel %vm588_vm14, %v4429_v31, %v1831_v4  ;;  %1871 = vst.msk [vmem:[#allocation3 + $0x88] sm:$0xff] %vm500_vm4, %v1831_v4  ;;  %v1843_v26 = vpop.permute.xlu0 %1842  ;;  %2674 = vmatpush1.msra.mxu1 %v4928_v15  ;;  %2990 = vmatprep.mubr.msk.f32.mxu0 %vm95_vm0, %v4929_v11  ;;  %v4775_v15 = vld [vmem:[%s4884_s9 + $0x48] sm:$0xff] }
 0x682   :  { %v1853_v16 = vsel %vm588_vm14, %v1841_v6, %v1843_v26  ;;  %1877 = vst.msk [vmem:[#allocation3 + $0xb8] sm:$0xff] %vm500_vm4, %v1843_v26  ;;  %2675 = vmatprep.subr.mxu1 %v4930_v35  ;;  %v4784_v35 = vld [vmem:[%s4884_s9 + $0x20] sm:$0xff] }
 0x683   :  { %2676 = vmatpush1.msra.mxu1 %v4931_v41 }
 0x684   :  { %v2415_v53 = vpop.permute.xlu1 %2414  ;;  %2677 = vmatprep.subr.mxu1 %v4932_v1 }
 0x685   :  { %v2413_v31 = vpop.permute.xlu0 %2412  ;;  %2678 = vmatpush1.msra.mxu1 %v4933_v32  ;;  %v2491_v38 = vld [vmem:[#allocation3 + $0x118] sm:$0xff] }
 0x686   :  { %v2425_v43 = vsel %vm1169_vm15, %v4597_v0, %v2413_v31  ;;  %v2426_v48 = vsel %vm1169_vm15, %v2413_v31, %v2415_v53  ;;  %2744 = vmatprep.subr.mxu0 %v2491_v38  ;;  %v4796_v38 = vld [vmem:[%s4884_s9 + $0x28] sm:$0xff] }
 0x687   :  { %2745 = vmatpush1.msra.mxu0 %v1935_v28  ;;  %2707 = vmatprep.subr.mxu1 %v2426_v48 }
 0x688   :  { %v2403_v19 = vpop.permute.xlu1 %2402  ;;  %2746 = vmatprep.subr.mxu0 %v2485_v47  ;;  %2708 = vmatpush2.msra.mxu1 %v2425_v43  ;;  %v2473_v0 = vld [vmem:[#allocation3 + $0x88] sm:$0xff] }
 0x689   :  { %v2421_v5 = vsel %vm1169_vm15, %v2401_v59, %v2403_v19  ;;  %v2417_v13 = vpop.permute.xlu0 %2416  ;;  %2747 = vmatpush1.msra.mxu0 %v4934_v34  ;;  %v2479_v60 = vld [vmem:[#allocation3 + $0xb8] sm:$0xff] }
 0x68a   :  { %v2427_v33 = vsel %vm1169_vm15, %v2415_v53, %v2417_v13  ;;  %2451 = vst.msk [vmem:[#allocation3 + $0x358] sm:$0xff] %vm500_vm4, %v2417_v13  ;;  %2748 = vmatprep.subr.mxu0 %v2479_v60  ;;  %2709 = vmatprep.subr.mxu1 %v2421_v5  ;;  %v4752_v59 = vld [vmem:[%s4884_s9 + $0x18] sm:$0xff]  ;;  %v4809_v60 = vld [vmem:[%s4884_s9 + $0x50] sm:$0xff] }
 0x68b   :  { %2749 = vmatpush1.msra.mxu0 %v1853_v16  ;;  %2710 = vmatpush2.msra.mxu1 %v2420_v36  ;;  %v4760_v36 = vld [vmem:[%s4884_s9 + $0x40] sm:$0xff] }
 0x68c   :  { %v2405_v23 = vpop.permute.xlu1 %2404  ;;  %2750 = vmatprep.subr.mxu0 %v2473_v0  ;;  %2712 = vmatmul.mubr.f32.vlgmr.msra.gmra.mxu1 %v4616_v58 }
 0x68d   :  { %v2422_v8 = vsel %vm1169_vm15, %v2403_v19, %v2405_v23  ;;  %2445 = vst.msk [vmem:[#allocation3 + $0x328] sm:$0xff] %vm500_vm4, %v2405_v23  ;;  %2751 = vmatpush1.msra.mxu0 %v1848_v56  ;;  %2989 = vmatprep.mubr.msk.f32.mxu1 %vm95_vm0, %v4654_v55 }
 0x68e   :  { %2752 = vmatprep.subr.mxu0 %v2467_v37 }
 0x68f   :  { %2753 = vmatpush1.msra.mxu0 %v4935_v2 }
 0x690   :  { %2754 = vmatprep.subr.mxu0 %v2461_v46  ;;  %2718 = vmatmul.mubr.f32.gmra.mxu1 %v4658_v20 }
 0x691   :  { %2755 = vmatpush1.msra.mxu0 %v3038_v62  ;;  %v2563_v22 = vld [vmem:[#allocation3 + $0x358] sm:$0xff] }
 0x692   :  { %2784 = vmatprep.subr.mxu0 %v2563_v22  ;;  %v4822_v62 = vld [vmem:[%s4884_s9 + $0x58] sm:$0xff] }
 0x693   :  { %2785 = vmatpush2.msra.mxu0 %v2427_v33 }
 0x694   :  { %v2557_v57 = vld [vmem:[#allocation3 + $0x328] sm:$0xff] }
 0x695   :  { %2786 = vmatprep.subr.mxu0 %v2557_v57 }
 0x696   :  { %2787 = vmatpush2.msra.mxu0 %v2422_v8 }
 0x697   :  { %2789 = vmatmul.mubr.f32.vlgmr.msra.gmra.mxu0 %v4616_v58  ;;  %v4708_v58 = vld [vmem:[%s4884_s9 + $0x8] sm:$0xff] }
 0x698   :  { %2991 = vmatprep.mubr.msk.f32.mxu0 %vm95_vm0, %v4654_v55 }
 0x69b   :  { %2795 = vmatmul.mubr.f32.gmra.mxu0 %v4658_v20 }
 0x72b   :  { %v2636_v42 = vpop.f32.mrf.mxu0 }
 0x72c   :  { %v4703_v49 = vmul.f32 %v4700_v29, %v2636_v42 }
 0x72d   :  { %v2638_v52 = vpop.f32.mrf.mxu0 }
 0x72e   :  { %v4711_v40 = vmul.f32 %v4708_v58, %v2638_v52  ;;  %v2829_v39 = vmul.f32 %v4703_v49, %v4703_v49 }
 0x730   :  { %v2830_v9 = vmul.f32 %v4711_v40, %v4711_v40  ;;  %v2813_v7 = vadd.f32 %v4711_v40, %v4703_v49 }
 0x732   :  { %v2841_v24 = vadd.f32 %v2830_v9, %v2829_v39 }
 0x740   :  { %v2642_v3 = vpop.f32.mrf.mxu0 }
 0x741   :  { %v4719_v12 = vmul.f32 %v4716_v27, %v2642_v3 }
 0x742   :  { %v2644_v50 = vpop.f32.mrf.mxu0 }
 0x743   :  { %v4727_v21 = vmul.f32 %v4724_v44, %v2644_v50  ;;  %v2835_v18 = vmul.f32 %v4719_v12, %v4719_v12 }
 0x745   :  { %v2836_v45 = vmul.f32 %v4727_v21, %v4727_v21  ;;  %v2821_v30 = vadd.f32 %v4727_v21, %v4719_v12 }
 0x747   :  { %v2849_v20 = vadd.f32 %v2836_v45, %v2835_v18 }
 0x74c   :  { %v2713_v10 = vpop.f32.mrf.mxu1 }
 0x74d   :  { %v4735_v17 = vmul.f32 %v4732_v54, %v2713_v10 }
 0x74e   :  { %v2715_v63 = vpop.f32.mrf.mxu1 }
 0x74f   :  { %v2831_v61 = vmul.f32 %v4735_v17, %v4735_v17  ;;  %v4755_v25 = vmul.f32 %v4752_v59, %v2715_v63  ;;  %v2814_v55 = vadd.f32 %v2813_v7, %v4735_v17 }
 0x750   :  { %v2719_v14 = vpop.f32.mrf.mxu1 }
 0x751   :  { %v4763_v6 = vmul.f32 %v4760_v36, %v2719_v14  ;;  %v2842_v28 = vadd.f32 %v2841_v24, %v2831_v61  ;;  %v2832_v4 = vmul.f32 %v4755_v25, %v4755_v25  ;;  %v2815_v16 = vadd.f32 %v2814_v55, %v4755_v25 }
 0x752   :  { %v2721_v51 = vpop.f32.mrf.mxu1 }
 0x753   :  { %v2837_v26 = vmul.f32 %v4763_v6, %v4763_v6  ;;  %v4778_v11 = vmul.f32 %v4775_v15, %v2721_v51  ;;  %v2822_v53 = vadd.f32 %v2821_v30, %v4763_v6  ;;  %v2843_v48 = vadd.f32 %v2842_v28, %v2832_v4 }
 0x755   :  { %v2850_v47 = vadd.f32 %v2849_v20, %v2837_v26  ;;  %v2838_v19 = vmul.f32 %v4778_v11, %v4778_v11  ;;  %v2823_v34 = vadd.f32 %v2822_v53, %v4778_v11 }
 0x757   :  { %v2790_v56 = vpop.f32.mrf.mxu0  ;;  %v2851_v42 = vadd.f32 %v2850_v47, %v2838_v19 }
 0x758   :  { %v4787_v41 = vmul.f32 %v4784_v35, %v2790_v56 }
 0x759   :  { %v2792_v1 = vpop.f32.mrf.mxu0 }
 0x75a   :  { %v2816_v31 = vadd.f32 %v2815_v16, %v4787_v41  ;;  %v2833_v32 = vmul.f32 %v4787_v41, %v4787_v41  ;;  %v4799_v43 = vmul.f32 %v4796_v38, %v2792_v1  ;;  %v2865_v16 = vld [vmem:[%s4882_s7] sm:$0xff] }
 0x75b   :  { %v2796_v5 = vpop.f32.mrf.mxu0 }
 0x75c   :  { %v2834_v13 = vmul.f32 %v4799_v43, %v4799_v43  ;;  %v4812_v33 = vmul.f32 %v4809_v60, %v2796_v5  ;;  %v2817_v0 = vsel %vm500_vm4, %v4799_v43, 0.0  ;;  %v2844_v37 = vadd.f32 %v2843_v48, %v2833_v32  ;;  %v2866_v32 = vld [vmem:[%s4882_s7 + $0x8] sm:$0xff]  ;;  %s3129_s7 = smov [#allocation7]  }
 0x75d   :  { %v2798_v23 = vpop.f32.mrf.mxu0  ;;  %v2818_v8 = vadd.f32 %v2817_v0, %v2816_v31  ;;  %v2873_v31 = vld [vmem:[%s4883_s8] sm:$0xff] }
 0x75e   :  { %v2824_v2 = vadd.f32 %v2823_v34, %v4812_v33  ;;  %v2839_v46 = vmul.f32 %v4812_v33, %v4812_v33  ;;  %v4825_v22 = vmul.f32 %v4822_v62, %v2798_v23  ;;  %v2845_v57 = vsel %vm500_vm4, %v2834_v13, 0.0  ;;  %v2874_v13 = vld [vmem:[%s4883_s8 + $0x8] sm:$0xff]  ;;  %s2964_s8 = sshll.u32 %s3129_s7, 4  ;;  %s2965_s8 = int_to_ptr.vmem [resolvable:$true] %s2964_s8 }
 0x75f   :  { %2819 = vadd.xlane.f32.xlu0 %v2818_v8  ;;  %v2846_v50 = vadd.f32 %v2845_v57, %v2844_v37  ;;  %s3071_s21 = scalar_lea.vmem %s2965_s8, 1536  ;;  %p3076_p6 = scmp.lt.s32.totalorder %s2965_s8, %s2965_s8 }
 0x760   :  { %v2840_v52 = vmul.f32 %v4825_v22, %v4825_v22  ;;  %v2825_v3 = vsel %vm500_vm4, %v4825_v22, 0.0  ;;  %v2852_v63 = vadd.f32 %v2851_v42, %v2839_v46  ;;  %p3072_p5 = scmp.ne.s32.totalorder %s2965_s8, %s3071_s21  ;;  %p3077_p7 = scmp.lt.s32.totalorder %s3071_s21, %s3071_s21 }
 0x761   :  { %v2826_v10 = vadd.f32 %v2825_v3, %v2824_v2 }
 0x762   :  { %v2853_v14 = vsel %vm500_vm4, %v2840_v52, 0.0  ;;  %p3078_p8 = por %p3077_p7, %p3076_p6 }
 0x763   :  { %2847 = vadd.xlane.f32.xlu0 %v2846_v50  ;;  %2827 = vadd.xlane.f32.xlu1 %v2826_v10  ;;  %v2854_v39 = vadd.f32 %v2853_v14, %v2852_v63 }
 0x764   :  { %p3079_p9 = pnand %p3078_p8, %p3072_p5 }
 0x767   :  { %2855 = vadd.xlane.f32.xlu0 %v2854_v39 }
 0x7e8   :  { %v2820_v9 = vpop.xlane.xlu0 %2819 }
 0x7e9   :  { %v2857_v7 = vmul.f32 0.001953125, %v2820_v9 }
 0x7eb   :  { %v2861_v61 = vmul.f32 %v2857_v7, %v2857_v7 }
 0x7ec   :  { %v2848_v18 = vpop.xlane.xlu0 %2847  ;;  %v2828_v45 = vpop.xlane.xlu1 %2827 }
 0x7ed   :  { %v2859_v30 = vmul.f32 0.001953125, %v2848_v18  ;;  %v2858_v55 = vmul.f32 0.001953125, %v2828_v45 }
 0x7ef   :  { %v2863_v51 = vsub.f32 %v2859_v30, %v2861_v61  ;;  %v2862_v28 = vmul.f32 %v2858_v55, %v2858_v55 }
 0x7f0   :  { %v2856_v24 = vpop.xlane.xlu0 %2855 }
 0x7f1   :  { %v2867_v20 = vadd.f32 1e-05, %v2863_v51  ;;  %v2860_v4 = vmul.f32 0.001953125, %v2856_v24 }
 0x7f3   :  { %3034 = vrsqrt.f32 %v2867_v20  ;;  %v2864_v56 = vsub.f32 %v2860_v4, %v2862_v28 }
 0x7f5   :  { %v2868_v26 = vadd.f32 1e-05, %v2864_v56 }
 0x7f7   :  { %3036 = vrsqrt.f32 %v2868_v26 }
 0x800   :  { %v3035_v53 = vpop.eup %3034 }
 0x801   :  { %v2871_v1 = vmul.f32 %v3035_v53, %v2865_v16 }
 0x803   :  { %2881 = vperm.xlu1 %3029, %v2871_v1   ;;  %v2875_v48 = vmul.f32 %v2871_v1, %v2857_v7 }
 0x804   :  { %v3037_v47 = vpop.eup %3036 }
 0x805   :  { %v2877_v19 = vsub.f32 %v2873_v31, %v2875_v48  ;;  %v2872_v5 = vmul.f32 %v3037_v47, %v2866_v32 }
 0x807   :  { %2903 = vperm.xlu1 %3029, %v2877_v19   ;;  %2886 = vperm.xlu0 %3028, %v2872_v5   ;;  %v2876_v34 = vmul.f32 %v2872_v5, %v2858_v55 }
 0x809   :  { %v2878_v0 = vsub.f32 %v2874_v13, %v2876_v34 }
 0x80b   :  { %2908 = vperm.xlu1 %3029, %v2878_v0  }
 0x87e   :  { %v2882_v23 = vpop.permute.xlu1 %2881 }
 0x87f   :  { %v2889_v8 = vmul.f32 %v2882_v23, %v4703_v49  ;;  %v2890_v37 = vmul.f32 %v2882_v23, %v4711_v40  ;;  %v2891_v2 = vmul.f32 %v2882_v23, %v4735_v17  ;;  %v2892_v46 = vmul.f32 %v2882_v23, %v4755_v25 }
 0x880   :  { %v2893_v52 = vmul.f32 %v2882_v23, %v4787_v41  ;;  %v2894_v3 = vmul.f32 %v2882_v23, %v4799_v43 }
 0x882   :  { %v2887_v57 = vpop.permute.xlu0 %2886  ;;  %v2904_v42 = vpop.permute.xlu1 %2903 }
 0x883   :  { %v2895_v50 = vmul.f32 %v2887_v57, %v4719_v12  ;;  %v2896_v10 = vmul.f32 %v2887_v57, %v4727_v21  ;;  %v2897_v63 = vmul.f32 %v2887_v57, %v4763_v6  ;;  %v2898_v49 = vmul.f32 %v2887_v57, %v4778_v11 }
 0x884   :  { %v2911_v14 = vadd.f32 %v2904_v42, %v2889_v8  ;;  %v2912_v40 = vadd.f32 %v2904_v42, %v2890_v37  ;;  %v2913_v39 = vadd.f32 %v2904_v42, %v2891_v2  ;;  %v2914_v17 = vadd.f32 %v2904_v42, %v2892_v46 }
 0x885   :  { %v2915_v9 = vadd.f32 %v2904_v42, %v2893_v52  ;;  %v2916_v25 = vadd.f32 %v2904_v42, %v2894_v3  ;;  %v2899_v7 = vmul.f32 %v2887_v57, %v4812_v33  ;;  %v2900_v41 = vmul.f32 %v2887_v57, %v4825_v22 }
 0x886   :  { %v2923_v18 = vmax.f32 %v2911_v14, 0.0  ;;  %v2924_v43 = vmax.f32 %v2912_v40, 0.0  ;;  %v2909_v45 = vpop.permute.xlu1 %2908  ;;  %v2925_v12 = vmax.f32 %v2913_v39, 0.0  ;;  %v2926_v61 = vmax.f32 %v2914_v17, 0.0 }
 0x887   :  { %v2927_v21 = vmax.f32 %v2915_v9, 0.0  ;;  %v2928_v30 = vmax.f32 %v2916_v25, 0.0  ;;  %v2917_v55 = vadd.f32 %v2909_v45, %v2895_v50  ;;  %v2918_v51 = vadd.f32 %v2909_v45, %v2896_v10 }
 0x888   :  { %v2935_v6 = vmul.f32 %v4700_v29, %v2923_v18  ;;  %v2936_v11 = vmul.f32 %v4708_v58, %v2924_v43  ;;  %v2937_v24 = vmul.f32 %v4732_v54, %v2925_v12  ;;  %v2938_v20 = vmul.f32 %v4752_v59, %v2926_v61 }
 0x889   :  { %v2939_v33 = vmul.f32 %v4784_v35, %v2927_v21  ;;  %v2940_v22 = vmul.f32 %v4796_v38, %v2928_v30  ;;  %v2919_v28 = vadd.f32 %v2909_v45, %v2897_v63  ;;  %v2920_v4 = vadd.f32 %v2909_v45, %v2898_v49 }
 0x88a   :  { %2947 = vst [vmem:[#allocation7] sm:$0xff] %v2935_v6  ;;  %2948 = vst [vmem:[#allocation7 + $0x8] sm:$0xff] %v2936_v11  ;;  %v2921_v56 = vadd.f32 %v2909_v45, %v2899_v7  ;;  %v2922_v26 = vadd.f32 %v2909_v45, %v2900_v41  ;;  %v2929_v29 = vmax.f32 %v2917_v55, 0.0  ;;  %v2930_v58 = vmax.f32 %v2918_v51, 0.0 }
 0x88b   :  { %2949 = vst [vmem:[#allocation7 + $0x10] sm:$0xff] %v2937_v24  ;;  %2950 = vst [vmem:[#allocation7 + $0x18] sm:$0xff] %v2938_v20  ;;  %v2931_v54 = vmax.f32 %v2919_v28, 0.0  ;;  %v2932_v59 = vmax.f32 %v2920_v4, 0.0 }
 0x88c   :  { %2951 = vst [vmem:[#allocation7 + $0x20] sm:$0xff] %v2939_v33  ;;  %2952 = vst.msk [vmem:[#allocation7 + $0x28] sm:$0xff] %vm500_vm4, %v2940_v22  ;;  %v2933_v35 = vmax.f32 %v2921_v56, 0.0  ;;  %v2934_v16 = vmax.f32 %v2922_v26, 0.0  ;;  %v2941_v38 = vmul.f32 %v4716_v27, %v2929_v29  ;;  %v2942_v53 = vmul.f32 %v4724_v44, %v2930_v58 }
 0x88d   :  { %v2943_v1 = vmul.f32 %v4760_v36, %v2931_v54  ;;  %v2944_v31 = vmul.f32 %v4775_v15, %v2932_v59 }
 0x88e   :  { %v2945_v32 = vmul.f32 %v4809_v60, %v2933_v35  ;;  %v2946_v48 = vmul.f32 %v4822_v62, %v2934_v16  ;;  %2953 = vst [vmem:[#allocation7 + $0x30] sm:$0xff] %v2941_v38  ;;  %2954 = vst [vmem:[#allocation7 + $0x38] sm:$0xff] %v2942_v53 }
 0x88f   :  { %2955 = vst [vmem:[#allocation7 + $0x40] sm:$0xff] %v2943_v1  ;;  %2956 = vst [vmem:[#allocation7 + $0x48] sm:$0xff] %v2944_v31 }
 0x890   :  { %2957 = vst [vmem:[#allocation7 + $0x50] sm:$0xff] %v2945_v32  ;;  %2958 = vst.msk [vmem:[#allocation7 + $0x58] sm:$0xff] %vm500_vm4, %v2946_v48 }
 0x891   :  { %3082 = shalt.err (!%p3079_p9)
}
 0x892   :  { %s3130_s22 = smov 768  }
 0x893   :  { %2970 = dma.vmem_to_hbm [thread:$0]  %s2965_s8, 1536, %s4885_s10, [#allocation6], %s3130_s22, %s3130_s22, %s3117_s16  }
 0x894   :  { %3093 = dma.done.wait [#allocation6], 1536  }
 0x895   :  { %3094 = vsyncadd [#allocation6], 4294965760 }
 0x896   :  { %2974 = vsyncpa [#allocation5], 1 }
 0x897   :  { %2975 = vsyncpa [#allocation6], 1 }

</bundles_post_ra>
